<compile_context>
chip_gen: v6e
topology: v6e:2x2x1
jax: 0.10.0
libtpu: 0.0.40
codegen_flags: <defaults>
</compile_context>

<pallas_src>
import math

import jax
import jax.numpy as jnp
from jax.experimental import pallas as pl
from jax.experimental.pallas import tpu as pltpu

D_MODEL = 32
N_HEADS = 4
D_HEAD = D_MODEL // N_HEADS
D_FF = 64
SRC_VOCAB = 40
TGT_VOCAB = 40
V_PAD = 128                      # lane-dense padded vocab for the projection
N_PROPS = 8
PE_LEN = 64                      # packed positional-encoding table length
NEG_INF = -1e9
LN_EPS = 1e-5                    # matches torch.nn.LayerNorm default

# Column offsets inside row-block 0 of the packed per-layer weight slab:
#   [ Wq|Wk|Wv (self) | Wo (self) | Wq (cross) | Wk|Wv (cross) | Wo (cross) | W1 ]
OFF_QKV_SELF = 0                                   # 3*D = 96
OFF_O_SELF = OFF_QKV_SELF + 3 * D_MODEL            # 96
OFF_Q_CROSS = OFF_O_SELF + D_MODEL                 # 128
OFF_KV_CROSS = OFF_Q_CROSS + D_MODEL               # 160
OFF_O_CROSS = OFF_KV_CROSS + 2 * D_MODEL           # 224
OFF_W1 = OFF_O_CROSS + D_MODEL                     # 256
W_COLS = OFF_W1 + D_FF                             # 320

# Row offsets inside the packed per-layer weight slab  [97, 320]:
ROW_WIN = 0                      # rows 0:32   -> all D_MODEL-input weights
ROW_W2 = D_MODEL                 # rows 32:96  -> FFN W2 in cols 0:32
ROW_BIN = D_MODEL + D_FF         # row  96     -> packed input biases (320 cols)
W_ROWS = ROW_BIN + 1             # 97

# Rows inside the per-layer small slab [8, 32]:
#   0..2 = ln1/ln2/ln3 gamma, 3..5 = ln1/ln2/ln3 beta, 6 = FFN b2, 7 = zeros


# ---------------------------------------------------------------------------
# The single fused Pallas kernel (one batch element per grid step)
# ---------------------------------------------------------------------------
def _fused_transformer_kernel(
    src_tok_ref, scaf_tok_ref, tgt_tok_ref, pe_ref, props_ref,
    src_mask_ref, scaf_mask_ref, tgt_mask_ref,
    prop_wb_ref, enc_w_ref, enc_v_ref, dec_w_ref, dec_v_ref, proj_ref,
    logits_ref,
):
    f32 = jnp.float32
    sqrt_d = math.sqrt(D_MODEL)
    scale = 1.0 / math.sqrt(D_HEAD)

    s_src = src_tok_ref.shape[0]
    s_scaf = scaf_tok_ref.shape[0]
    s_tgt = tgt_tok_ref.shape[0]

    # ---------------- helpers (traced once, fully inlined) ----------------
    def layer_norm(x, g, b):                      # x: [S,D], g/b: [1,D]
        mu = jnp.mean(x, axis=-1, keepdims=True)
        var = jnp.mean(jnp.square(x - mu), axis=-1, keepdims=True)
        return (x - mu) * jax.lax.rsqrt(var + LN_EPS) * g + b

    def softmax(s):                               # s: [H,Sq,Sk]
        s = s - jnp.max(s, axis=-1, keepdims=True)
        p = jnp.exp(s)
        denom = jnp.sum(p, axis=-1, keepdims=True)
        return p * pl.reciprocal(denom, approx=True)

    def split_heads(x2, col_off):                 # [S, >=col_off+D] -> [H,S,Dh]
        return jnp.stack(
            [x2[:, col_off + h * D_HEAD: col_off + (h + 1) * D_HEAD]
             for h in range(N_HEADS)], axis=0)

    def merge_heads(o):                           # [H,Sq,Dh] -> [Sq, H*Dh]
        return jnp.concatenate([o[h] for h in range(N_HEADS)], axis=-1)

    def attention(qh, kh, vh, bias, w_o, b_o):
        # qh/kh/vh: [H,S,Dh]; bias broadcastable to [H,Sq,Sk].
        # One batched scores einsum + one softmax + one batched PV einsum
        # (was a 4-way unrolled head loop), then a single output matmul.
        s = jnp.einsum("hqd,hkd->hqk", qh, kh,
                       preferred_element_type=f32) * scale + bias
        p = softmax(s)
        o = jnp.einsum("hqk,hkd->hqd", p, vh, preferred_element_type=f32)
        return jnp.dot(merge_heads(o), w_o, preferred_element_type=f32) + b_o

    def self_attention(x, w_ref, bias):
        qkv = (jnp.dot(x,
                       w_ref[ROW_WIN:ROW_WIN + D_MODEL,
                             OFF_QKV_SELF:OFF_QKV_SELF + 3 * D_MODEL],
                       preferred_element_type=f32)
               + w_ref[ROW_BIN:ROW_BIN + 1,
                       OFF_QKV_SELF:OFF_QKV_SELF + 3 * D_MODEL])
        qh = split_heads(qkv, 0)
        kh = split_heads(qkv, D_MODEL)
        vh = split_heads(qkv, 2 * D_MODEL)
        return attention(
            qh, kh, vh, bias,
            w_ref[ROW_WIN:ROW_WIN + D_MODEL, OFF_O_SELF:OFF_O_SELF + D_MODEL],
            w_ref[ROW_BIN:ROW_BIN + 1, OFF_O_SELF:OFF_O_SELF + D_MODEL])

    def cross_attention(x_q, x_kv, w_ref, bias):
        q = (jnp.dot(x_q,
                     w_ref[ROW_WIN:ROW_WIN + D_MODEL,
                           OFF_Q_CROSS:OFF_Q_CROSS + D_MODEL],
                     preferred_element_type=f32)
             + w_ref[ROW_BIN:ROW_BIN + 1, OFF_Q_CROSS:OFF_Q_CROSS + D_MODEL])
        kv = (jnp.dot(x_kv,
                      w_ref[ROW_WIN:ROW_WIN + D_MODEL,
                            OFF_KV_CROSS:OFF_KV_CROSS + 2 * D_MODEL],
                      preferred_element_type=f32)
              + w_ref[ROW_BIN:ROW_BIN + 1,
                      OFF_KV_CROSS:OFF_KV_CROSS + 2 * D_MODEL])
        qh = split_heads(q, 0)
        kh = split_heads(kv, 0)
        vh = split_heads(kv, D_MODEL)
        return attention(
            qh, kh, vh, bias,
            w_ref[ROW_WIN:ROW_WIN + D_MODEL, OFF_O_CROSS:OFF_O_CROSS + D_MODEL],
            w_ref[ROW_BIN:ROW_BIN + 1, OFF_O_CROSS:OFF_O_CROSS + D_MODEL])

    def feed_forward(x, w_ref, v_ref):
        h = (jnp.dot(x, w_ref[ROW_WIN:ROW_WIN + D_MODEL, OFF_W1:OFF_W1 + D_FF],
                     preferred_element_type=f32)
             + w_ref[ROW_BIN:ROW_BIN + 1, OFF_W1:OFF_W1 + D_FF])
        h = jnp.maximum(h, 0.0)
        return (jnp.dot(h, w_ref[ROW_W2:ROW_W2 + D_FF, 0:D_MODEL],
                        preferred_element_type=f32)
                + v_ref[6:7, :])                                   # b2

    def enc_dec_layer(x_self, x_mem, self_bias, mem_bias, w_ref, v_ref):
        a = self_attention(x_self, w_ref, self_bias)
        x = layer_norm(x_self + a, v_ref[0:1, :], v_ref[3:4, :])
        c = cross_attention(x, x_mem, w_ref, mem_bias)
        x = layer_norm(x + c, v_ref[1:2, :], v_ref[4:5, :])
        f = feed_forward(x, w_ref, v_ref)
        return layer_norm(x + f, v_ref[2:3, :], v_ref[5:6, :])

    def mask_to_bias(m):                          # float mask -> additive bias
        return jnp.where(m > 0, 0.0, NEG_INF).astype(f32)

    # ---------------- embeddings + positional encodings -------------------
    src = src_tok_ref[...] * sqrt_d + pe_ref[0:s_src, :]
    scaf = scaf_tok_ref[...] * sqrt_d + pe_ref[0:s_scaf, :]
    tgt = tgt_tok_ref[...] * sqrt_d + pe_ref[0:s_tgt, :]

    # per-property Linear(1, d_model) embeddings -> [n_props, D]
    prop_emb = (props_ref[...] * prop_wb_ref[0:N_PROPS, :]
                + prop_wb_ref[N_PROPS:2 * N_PROPS, :])

    # encoder memory = [scaffold ; property tokens]
    memory = jnp.concatenate([scaf, prop_emb], axis=0)            # [S_mem, D]

    # ---------------- attention biases (built once per block) -------------
    src_bias = mask_to_bias(src_mask_ref[...])[None, :, :]        # [1,1,S_src]
    mem_mask = jnp.concatenate(
        [scaf_mask_ref[...], jnp.ones((1, N_PROPS), f32)], axis=-1)
    mem_bias = mask_to_bias(mem_mask)[None, :, :]                 # [1,1,S_mem]
    tgt_bias = mask_to_bias(tgt_mask_ref[...])[None, :, :]        # [1,S_tgt,S_tgt]

    # ---------------- encoder / decoder ------------------------------------
    enc_out = enc_dec_layer(src, memory, src_bias, mem_bias, enc_w_ref, enc_v_ref)
    dec_out = enc_dec_layer(tgt, enc_out, tgt_bias, src_bias, dec_w_ref, dec_v_ref)

    # ---------------- lane-dense vocab projection ([S_tgt, 128]) ----------
    logits_ref[...] = (
        jnp.dot(dec_out, proj_ref[0:D_MODEL, :], preferred_element_type=f32)
        + proj_ref[D_MODEL:D_MODEL + 1, :]).astype(logits_ref.dtype)


# ---------------------------------------------------------------------------
# One-time packing (hoisted out of the jitted forward)
# ---------------------------------------------------------------------------
def positional_encoding(seq_len, d_model):
    pos = jnp.arange(seq_len, dtype=jnp.float32)[:, None]
    i = jnp.arange(0, d_model, 2, dtype=jnp.float32)
    angle = pos / jnp.power(10000.0, i / d_model)
    pe = jnp.zeros((seq_len, d_model), dtype=jnp.float32)
    pe = pe.at[:, 0::2].set(jnp.sin(angle))
    pe = pe.at[:, 1::2].set(jnp.cos(angle))
    return pe  # [S, D]


def pack_params(params, pe_len=PE_LEN):
    """Pack all weights into a few lane-dense slabs. Call ONCE at load time."""

    def pack_layer(p):
        w_in = jnp.concatenate(
            [p["self_attn"]["wq"], p["self_attn"]["wk"], p["self_attn"]["wv"],
             p["self_attn"]["wo"],
             p["cross_attn"]["wq"],
             p["cross_attn"]["wk"], p["cross_attn"]["wv"],
             p["cross_attn"]["wo"],
             p["ffn"]["w1"]], axis=1)                              # [D, 320]
        b_in = jnp.concatenate(
            [p["self_attn"]["bq"], p["self_attn"]["bk"], p["self_attn"]["bv"],
             p["self_attn"]["bo"],
             p["cross_attn"]["bq"],
             p["cross_attn"]["bk"], p["cross_attn"]["bv"],
             p["cross_attn"]["bo"],
             p["ffn"]["b1"]], axis=0)[None, :]                     # [1, 320]
        w2 = jnp.pad(p["ffn"]["w2"], ((0, 0), (0, W_COLS - D_MODEL)))  # [64,320]
        w_slab = jnp.concatenate([w_in, w2, b_in], axis=0)         # [97, 320]
        v_slab = jnp.stack(
            [p["ln1_g"], p["ln2_g"], p["ln3_g"],
             p["ln1_b"], p["ln2_b"], p["ln3_b"],
             p["ffn"]["b2"], jnp.zeros((D_MODEL,), jnp.float32)], axis=0)  # [8,32]
        return w_slab, v_slab

    enc_w, enc_v = pack_layer(params["enc"])
    dec_w, dec_v = pack_layer(params["dec"])
    proj = jnp.concatenate(
        [jnp.pad(params["proj_w"], ((0, 0), (0, V_PAD - TGT_VOCAB))),
         jnp.pad(params["proj_b"], (0, V_PAD - TGT_VOCAB))[None, :]], axis=0)

    return {
        "src_embed": params["src_embed"],
        "tgt_embed": params["tgt_embed"],
        "prop_wb": jnp.concatenate([params["prop_w"], params["prop_b"]], axis=0),
        "enc_w": enc_w, "enc_v": enc_v,
        "dec_w": dec_w, "dec_v": dec_v,
        "proj": proj,                                              # [33, 128]
        "pe": positional_encoding(pe_len, D_MODEL),                # [PE_LEN, D]
    }


# ---------------------------------------------------------------------------
# Jitted forward: gathers + mask reshape in JAX, everything else in the kernel
# ---------------------------------------------------------------------------
@jax.jit
def transformer_forward(packed, src_seq, src_scaffold, tgt, scaffold_mask,
                        src_mask, tgt_mask, mw, logp, hbd, hba, tpsa,
                        rotatable_bonds, qed, sa_score):
    bsz, s_src = src_seq.shape
    s_scaf = src_scaffold.shape[1]
    s_tgt = tgt.shape[1]

    # TODO(synk): embedding-table gathers stay in JAX (data-dependent gather).
    src_tok = jnp.take(packed["src_embed"], src_seq, axis=0)
    scaf_tok = jnp.take(packed["src_embed"], src_scaffold, axis=0)
    tgt_tok = jnp.take(packed["tgt_embed"], tgt, axis=0)

    props = jnp.stack(
        [mw, logp, hbd, hba, tpsa, rotatable_bonds, qed, sa_score], axis=1
    ).astype(jnp.float32)[:, :, None]                              # [B, 8, 1]

    src_mask_3d = src_mask.reshape(bsz, 1, s_src).astype(jnp.float32)
    scaf_mask_3d = scaffold_mask.reshape(bsz, 1, s_scaf).astype(jnp.float32)
    tgt_mask_2d = jnp.broadcast_to(
        tgt_mask, (1, 1, s_tgt, s_tgt)).reshape(s_tgt, s_tgt).astype(jnp.float32)

    def full_spec(arr):                     # weights: resident, constant block
        n = arr.ndim
        return pl.BlockSpec(arr.shape, lambda b: (0,) * n)

    logits_padded = pl.pallas_call(
        _fused_transformer_kernel,
        grid=(bsz,),
        in_specs=[
            pl.BlockSpec((None, s_src, D_MODEL), lambda b: (b, 0, 0)),
            pl.BlockSpec((None, s_scaf, D_MODEL), lambda b: (b, 0, 0)),
            pl.BlockSpec((None, s_tgt, D_MODEL), lambda b: (b, 0, 0)),
            full_spec(packed["pe"]),
            pl.BlockSpec((None, N_PROPS, 1), lambda b: (b, 0, 0)),
            pl.BlockSpec((None, 1, s_src), lambda b: (b, 0, 0)),
            pl.BlockSpec((None, 1, s_scaf), lambda b: (b, 0, 0)),
            pl.BlockSpec((s_tgt, s_tgt), lambda b: (0, 0)),
            full_spec(packed["prop_wb"]),
            full_spec(packed["enc_w"]), full_spec(packed["enc_v"]),
            full_spec(packed["dec_w"]), full_spec(packed["dec_v"]),
            full_spec(packed["proj"]),
        ],
        out_specs=pl.BlockSpec((None, s_tgt, V_PAD), lambda b: (b, 0, 0)),
        out_shape=jax.ShapeDtypeStruct((bsz, s_tgt, V_PAD), jnp.float32),
        compiler_params=pltpu.CompilerParams(
            dimension_semantics=("parallel",)),
    )(src_tok, scaf_tok, tgt_tok, packed["pe"], props,
      src_mask_3d, scaf_mask_3d, tgt_mask_2d,
      packed["prop_wb"], packed["enc_w"], packed["enc_v"],
      packed["dec_w"], packed["dec_v"], packed["proj"])

    return logits_padded[:, :, :TGT_VOCAB]


# ---------------------------------------------------------------------------
# Deterministic parameter init (same structure / semantics as the reference)
# ---------------------------------------------------------------------------
def init_params(key):
    kit = iter(jax.random.split(key, 64))

    def nrm(shape, scale=0.02):
        return scale * jax.random.normal(next(kit), shape, dtype=jnp.float32)

    def mha_p():
        return {
            "wq": nrm((D_MODEL, D_MODEL)), "bq": jnp.zeros((D_MODEL,), jnp.float32),
            "wk": nrm((D_MODEL, D_MODEL)), "bk": jnp.zeros((D_MODEL,), jnp.float32),
            "wv": nrm((D_MODEL, D_MODEL)), "bv": jnp.zeros((D_MODEL,), jnp.float32),
            "wo": nrm((D_MODEL, D_MODEL)), "bo": jnp.zeros((D_MODEL,), jnp.float32),
        }

    def ffn_p():
        return {"w1": nrm((D_MODEL, D_FF)), "b1": jnp.zeros((D_FF,), jnp.float32),
                "w2": nrm((D_FF, D_MODEL)), "b2": jnp.zeros((D_MODEL,), jnp.float32)}

    def layer_p():
        return {
            "self_attn": mha_p(), "cross_attn": mha_p(), "ffn": ffn_p(),
            "ln1_g": jnp.ones((D_MODEL,), jnp.float32), "ln1_b": jnp.zeros((D_MODEL,), jnp.float32),
            "ln2_g": jnp.ones((D_MODEL,), jnp.float32), "ln2_b": jnp.zeros((D_MODEL,), jnp.float32),
            "ln3_g": jnp.ones((D_MODEL,), jnp.float32), "ln3_b": jnp.zeros((D_MODEL,), jnp.float32),
        }

    return {
        "src_embed": nrm((SRC_VOCAB, D_MODEL), 1.0),
        "tgt_embed": nrm((TGT_VOCAB, D_MODEL), 1.0),
        "prop_w": nrm((N_PROPS, D_MODEL)),
        "prop_b": jnp.zeros((N_PROPS, D_MODEL), jnp.float32),
        "enc": layer_p(),
        "dec": layer_p(),
        "proj_w": nrm((D_MODEL, TGT_VOCAB)),
        "proj_b": jnp.zeros((TGT_VOCAB,), jnp.float32),
    }


# ---------------------------------------------------------------------------
if __name__ == "__main__":
    root = jax.random.PRNGKey(0)
    kp, kd = jax.random.split(root)

    params = init_params(kp)
    packed = pack_params(params)            # one-time packing, outside the jit

    B, S_SRC, S_SCAF, S_TGT = 2, 8, 8, 8
    k1, k2, k3, k4 = jax.random.split(kd, 4)
    src_seq = jax.random.randint(k1, (B, S_SRC), 0, SRC_VOCAB, dtype=jnp.int32)
    src_scaffold = jax.random.randint(k2, (B, S_SCAF), 0, SRC_VOCAB, dtype=jnp.int32)
    tgt = jax.random.randint(k3, (B, S_TGT), 0, TGT_VOCAB, dtype=jnp.int32)

    src_mask = jnp.ones((B, 1, 1, S_SRC), jnp.float32)
    scaffold_mask = jnp.ones((B, 1, 1, S_SCAF), jnp.float32)
    tgt_mask = jnp.tril(jnp.ones((S_TGT, S_TGT), jnp.float32))[None, None]

    pk = jax.random.split(k4, 8)
    mw, logp, hbd, hba, tpsa, rot, qed, sa = [
        jax.random.normal(pk[i], (B,), jnp.float32) for i in range(8)
    ]

    out = transformer_forward(packed, src_seq, src_scaffold, tgt, scaffold_mask,
                              src_mask, tgt_mask, mw, logp, hbd, hba, tpsa,
                              rot, qed, sa)
    out = jax.block_until_ready(out)
    assert out.shape == (B, S_TGT, TGT_VOCAB)
    assert bool(jnp.all(jnp.isfinite(out)))
    print("KERNEL_OK")
</pallas_src>

<mosaic_0001>
module attributes {stable_mosaic.version = 11 : i64} {
  func.func @_fused_transformer_kernel(%arg0: i32, %arg1: memref<1x8x32xf32, #tpu.memory_space<vmem>>, %arg2: memref<1x8x32xf32, #tpu.memory_space<vmem>>, %arg3: memref<1x8x32xf32, #tpu.memory_space<vmem>>, %arg4: memref<64x32xf32, #tpu.memory_space<vmem>>, %arg5: memref<1x8x1xf32, #tpu.memory_space<vmem>>, %arg6: memref<1x1x8xf32, #tpu.memory_space<vmem>>, %arg7: memref<1x1x8xf32, #tpu.memory_space<vmem>>, %arg8: memref<8x8xf32, #tpu.memory_space<vmem>>, %arg9: memref<16x32xf32, #tpu.memory_space<vmem>>, %arg10: memref<97x320xf32, #tpu.memory_space<vmem>>, %arg11: memref<8x32xf32, #tpu.memory_space<vmem>>, %arg12: memref<97x320xf32, #tpu.memory_space<vmem>>, %arg13: memref<8x32xf32, #tpu.memory_space<vmem>>, %arg14: memref<33x128xf32, #tpu.memory_space<vmem>>, %arg15: memref<1x8x128xf32, #tpu.memory_space<vmem>>) attributes {dimension_semantics = [#tpu.dimension_semantics<parallel>], iteration_bounds = array<i64: 2>, scalar_prefetch = 0 : i64, scratch_operands = 0 : i64, tpu.core_type = #tpu.core_type<tc>, window_params = [{transform_indices = @transform_0, window_bounds = array<i64: 1, 8, 32>}, {transform_indices = @transform_1, window_bounds = array<i64: 1, 8, 32>}, {transform_indices = @transform_2, window_bounds = array<i64: 1, 8, 32>}, {pipeline_mode = #tpu.pipeline_mode<synchronous>, transform_indices = @transform_3, window_bounds = array<i64: 64, 32>}, {transform_indices = @transform_4, window_bounds = array<i64: 1, 8, 1>}, {transform_indices = @transform_5, window_bounds = array<i64: 1, 1, 8>}, {transform_indices = @transform_6, window_bounds = array<i64: 1, 1, 8>}, {pipeline_mode = #tpu.pipeline_mode<synchronous>, transform_indices = @transform_7, window_bounds = array<i64: 8, 8>}, {pipeline_mode = #tpu.pipeline_mode<synchronous>, transform_indices = @transform_8, window_bounds = array<i64: 16, 32>}, {pipeline_mode = #tpu.pipeline_mode<synchronous>, transform_indices = @transform_9, window_bounds = array<i64: 97, 320>}, {pipeline_mode = #tpu.pipeline_mode<synchronous>, transform_indices = @transform_10, window_bounds = array<i64: 8, 32>}, {pipeline_mode = #tpu.pipeline_mode<synchronous>, transform_indices = @transform_11, window_bounds = array<i64: 97, 320>}, {pipeline_mode = #tpu.pipeline_mode<synchronous>, transform_indices = @transform_12, window_bounds = array<i64: 8, 32>}, {pipeline_mode = #tpu.pipeline_mode<synchronous>, transform_indices = @transform_13, window_bounds = array<i64: 33, 128>}, {transform_indices = @transform_14, window_bounds = array<i64: 1, 8, 128>}]} {
    %c0 = arith.constant 0 : index
    %c0_0 = arith.constant 0 : index
    %c0_1 = arith.constant 0 : index
    %0 = vector.load %arg1[%c0, %c0_0, %c0_1] : memref<1x8x32xf32, #tpu.memory_space<vmem>>, vector<1x8x32xf32>
    %1 = vector.shape_cast %0 : vector<1x8x32xf32> to vector<8x32xf32>
    %cst = arith.constant 5.65685415 : f32
    %2 = vector.broadcast %cst : f32 to vector<8x32xf32>
    %3 = arith.mulf %1, %2 : vector<8x32xf32>
    %c0_2 = arith.constant 0 : index
    %c0_3 = arith.constant 0 : index
    %4 = vector.load %arg4[%c0_2, %c0_3] : memref<64x32xf32, #tpu.memory_space<vmem>>, vector<8x32xf32>
    %5 = arith.addf %3, %4 : vector<8x32xf32>
    %c0_4 = arith.constant 0 : index
    %c0_5 = arith.constant 0 : index
    %c0_6 = arith.constant 0 : index
    %6 = vector.load %arg2[%c0_4, %c0_5, %c0_6] : memref<1x8x32xf32, #tpu.memory_space<vmem>>, vector<1x8x32xf32>
    %7 = vector.shape_cast %6 : vector<1x8x32xf32> to vector<8x32xf32>
    %cst_7 = arith.constant 5.65685415 : f32
    %8 = vector.broadcast %cst_7 : f32 to vector<8x32xf32>
    %9 = arith.mulf %7, %8 : vector<8x32xf32>
    %c0_8 = arith.constant 0 : index
    %c0_9 = arith.constant 0 : index
    %10 = vector.load %arg4[%c0_8, %c0_9] : memref<64x32xf32, #tpu.memory_space<vmem>>, vector<8x32xf32>
    %11 = arith.addf %9, %10 : vector<8x32xf32>
    %c0_10 = arith.constant 0 : index
    %c0_11 = arith.constant 0 : index
    %c0_12 = arith.constant 0 : index
    %12 = vector.load %arg3[%c0_10, %c0_11, %c0_12] : memref<1x8x32xf32, #tpu.memory_space<vmem>>, vector<1x8x32xf32>
    %13 = vector.shape_cast %12 : vector<1x8x32xf32> to vector<8x32xf32>
    %cst_13 = arith.constant 5.65685415 : f32
    %14 = vector.broadcast %cst_13 : f32 to vector<8x32xf32>
    %15 = arith.mulf %13, %14 : vector<8x32xf32>
    %c0_14 = arith.constant 0 : index
    %c0_15 = arith.constant 0 : index
    %16 = vector.load %arg4[%c0_14, %c0_15] : memref<64x32xf32, #tpu.memory_space<vmem>>, vector<8x32xf32>
    %17 = arith.addf %15, %16 : vector<8x32xf32>
    %c0_16 = arith.constant 0 : index
    %c0_17 = arith.constant 0 : index
    %c0_18 = arith.constant 0 : index
    %18 = vector.load %arg5[%c0_16, %c0_17, %c0_18] : memref<1x8x1xf32, #tpu.memory_space<vmem>>, vector<1x8x1xf32>
    %19 = vector.shape_cast %18 : vector<1x8x1xf32> to vector<8x1xf32>
    %c0_19 = arith.constant 0 : index
    %c0_20 = arith.constant 0 : index
    %20 = vector.load %arg9[%c0_19, %c0_20] : memref<16x32xf32, #tpu.memory_space<vmem>>, vector<8x32xf32>
    %21 = vector.broadcast %19 : vector<8x1xf32> to vector<8x32xf32>
    %22 = arith.mulf %21, %20 : vector<8x32xf32>
    %c8 = arith.constant 8 : index
    %c0_21 = arith.constant 0 : index
    %23 = vector.load %arg9[%c8, %c0_21] : memref<16x32xf32, #tpu.memory_space<vmem>>, vector<8x32xf32>
    %24 = arith.addf %22, %23 : vector<8x32xf32>
    %25 = tpu.concatenate %11, %24 in 0 : vector<8x32xf32>, vector<8x32xf32> -> vector<16x32xf32>
    %c0_22 = arith.constant 0 : index
    %c0_23 = arith.constant 0 : index
    %c0_24 = arith.constant 0 : index
    %26 = vector.load %arg6[%c0_22, %c0_23, %c0_24] : memref<1x1x8xf32, #tpu.memory_space<vmem>>, vector<1x1x8xf32>
    %27 = vector.shape_cast %26 : vector<1x1x8xf32> to vector<1x8xf32>
    %cst_25 = arith.constant 0.000000e+00 : f32
    %28 = vector.broadcast %cst_25 : f32 to vector<1x8xf32>
    %29 = arith.cmpf ogt, %27, %28 : vector<1x8xf32>
    %cst_26 = arith.constant 0.000000e+00 : f32
    %cst_27 = arith.constant -1.000000e+09 : f32
    %30 = vector.broadcast %cst_26 : f32 to vector<1x8xf32>
    %31 = vector.broadcast %cst_27 : f32 to vector<1x8xf32>
    %32 = arith.select %29, %30, %31 : vector<1x8xi1>, vector<1x8xf32>
    %33 = vector.shape_cast %32 : vector<1x8xf32> to vector<1x1x8xf32>
    %c0_28 = arith.constant 0 : index
    %c0_29 = arith.constant 0 : index
    %c0_30 = arith.constant 0 : index
    %34 = vector.load %arg7[%c0_28, %c0_29, %c0_30] : memref<1x1x8xf32, #tpu.memory_space<vmem>>, vector<1x1x8xf32>
    %35 = vector.shape_cast %34 : vector<1x1x8xf32> to vector<1x8xf32>
    %cst_31 = arith.constant 1.000000e+00 : f32
    %36 = vector.broadcast %cst_31 : f32 to vector<1x8xf32>
    %37 = tpu.concatenate %35, %36 in 1 : vector<1x8xf32>, vector<1x8xf32> -> vector<1x16xf32>
    %cst_32 = arith.constant 0.000000e+00 : f32
    %38 = vector.broadcast %cst_32 : f32 to vector<1x16xf32>
    %39 = arith.cmpf ogt, %37, %38 : vector<1x16xf32>
    %cst_33 = arith.constant 0.000000e+00 : f32
    %cst_34 = arith.constant -1.000000e+09 : f32
    %40 = vector.broadcast %cst_33 : f32 to vector<1x16xf32>
    %41 = vector.broadcast %cst_34 : f32 to vector<1x16xf32>
    %42 = arith.select %39, %40, %41 : vector<1x16xi1>, vector<1x16xf32>
    %43 = vector.shape_cast %42 : vector<1x16xf32> to vector<1x1x16xf32>
    %c0_35 = arith.constant 0 : index
    %c0_36 = arith.constant 0 : index
    %44 = vector.load %arg8[%c0_35, %c0_36] : memref<8x8xf32, #tpu.memory_space<vmem>>, vector<8x8xf32>
    %cst_37 = arith.constant 0.000000e+00 : f32
    %45 = vector.broadcast %cst_37 : f32 to vector<8x8xf32>
    %46 = arith.cmpf ogt, %44, %45 : vector<8x8xf32>
    %cst_38 = arith.constant 0.000000e+00 : f32
    %cst_39 = arith.constant -1.000000e+09 : f32
    %47 = vector.broadcast %cst_38 : f32 to vector<8x8xf32>
    %48 = vector.broadcast %cst_39 : f32 to vector<8x8xf32>
    %49 = arith.select %46, %47, %48 : vector<8x8xi1>, vector<8x8xf32>
    %50 = vector.shape_cast %49 : vector<8x8xf32> to vector<1x8x8xf32>
    %c0_40 = arith.constant 0 : index
    %c0_41 = arith.constant 0 : index
    %51 = vector.load %arg10[%c0_40, %c0_41] : memref<97x320xf32, #tpu.memory_space<vmem>>, vector<32x96xf32>
    %cst_42 = arith.constant dense<0.000000e+00> : vector<8x96xf32>
    %52 = tpu.matmul %5, %51, %cst_42 {dimension_numbers = #tpu.dot_dimension_numbers<[1], [0], [0], [1], [0, 0, 1, 1], [], []>} : vector<8x32xf32>, vector<32x96xf32>, vector<8x96xf32> -> vector<8x96xf32>
    %c96 = arith.constant 96 : index
    %c0_43 = arith.constant 0 : index
    %53 = vector.load %arg10[%c96, %c0_43] : memref<97x320xf32, #tpu.memory_space<vmem>>, vector<1x96xf32>
    %54 = vector.broadcast %53 : vector<1x96xf32> to vector<8x96xf32>
    %55 = arith.addf %52, %54 : vector<8x96xf32>
    %56 = vector.extract_strided_slice %55 {offsets = [0, 0], sizes = [8, 8], strides = [1, 1]} : vector<8x96xf32> to vector<8x8xf32>
    %57 = vector.extract_strided_slice %55 {offsets = [0, 8], sizes = [8, 8], strides = [1, 1]} : vector<8x96xf32> to vector<8x8xf32>
    %58 = vector.extract_strided_slice %55 {offsets = [0, 16], sizes = [8, 8], strides = [1, 1]} : vector<8x96xf32> to vector<8x8xf32>
    %59 = vector.extract_strided_slice %55 {offsets = [0, 24], sizes = [8, 8], strides = [1, 1]} : vector<8x96xf32> to vector<8x8xf32>
    %60 = vector.shape_cast %56 : vector<8x8xf32> to vector<1x8x8xf32>
    %61 = vector.shape_cast %57 : vector<8x8xf32> to vector<1x8x8xf32>
    %62 = vector.shape_cast %58 : vector<8x8xf32> to vector<1x8x8xf32>
    %63 = vector.shape_cast %59 : vector<8x8xf32> to vector<1x8x8xf32>
    %64 = tpu.concatenate %60, %61, %62, %63 in 0 : vector<1x8x8xf32>, vector<1x8x8xf32>, vector<1x8x8xf32>, vector<1x8x8xf32> -> vector<4x8x8xf32>
    %65 = vector.extract_strided_slice %55 {offsets = [0, 32], sizes = [8, 8], strides = [1, 1]} : vector<8x96xf32> to vector<8x8xf32>
    %66 = vector.extract_strided_slice %55 {offsets = [0, 40], sizes = [8, 8], strides = [1, 1]} : vector<8x96xf32> to vector<8x8xf32>
    %67 = vector.extract_strided_slice %55 {offsets = [0, 48], sizes = [8, 8], strides = [1, 1]} : vector<8x96xf32> to vector<8x8xf32>
    %68 = vector.extract_strided_slice %55 {offsets = [0, 56], sizes = [8, 8], strides = [1, 1]} : vector<8x96xf32> to vector<8x8xf32>
    %69 = vector.shape_cast %65 : vector<8x8xf32> to vector<1x8x8xf32>
    %70 = vector.shape_cast %66 : vector<8x8xf32> to vector<1x8x8xf32>
    %71 = vector.shape_cast %67 : vector<8x8xf32> to vector<1x8x8xf32>
    %72 = vector.shape_cast %68 : vector<8x8xf32> to vector<1x8x8xf32>
    %73 = tpu.concatenate %69, %70, %71, %72 in 0 : vector<1x8x8xf32>, vector<1x8x8xf32>, vector<1x8x8xf32>, vector<1x8x8xf32> -> vector<4x8x8xf32>
    %74 = vector.extract_strided_slice %55 {offsets = [0, 64], sizes = [8, 8], strides = [1, 1]} : vector<8x96xf32> to vector<8x8xf32>
    %75 = vector.extract_strided_slice %55 {offsets = [0, 72], sizes = [8, 8], strides = [1, 1]} : vector<8x96xf32> to vector<8x8xf32>
    %76 = vector.extract_strided_slice %55 {offsets = [0, 80], sizes = [8, 8], strides = [1, 1]} : vector<8x96xf32> to vector<8x8xf32>
    %77 = vector.extract_strided_slice %55 {offsets = [0, 88], sizes = [8, 8], strides = [1, 1]} : vector<8x96xf32> to vector<8x8xf32>
    %78 = vector.shape_cast %74 : vector<8x8xf32> to vector<1x8x8xf32>
    %79 = vector.shape_cast %75 : vector<8x8xf32> to vector<1x8x8xf32>
    %80 = vector.shape_cast %76 : vector<8x8xf32> to vector<1x8x8xf32>
    %81 = vector.shape_cast %77 : vector<8x8xf32> to vector<1x8x8xf32>
    %82 = tpu.concatenate %78, %79, %80, %81 in 0 : vector<1x8x8xf32>, vector<1x8x8xf32>, vector<1x8x8xf32>, vector<1x8x8xf32> -> vector<4x8x8xf32>
    %c0_44 = arith.constant 0 : index
    %c96_45 = arith.constant 96 : index
    %83 = vector.load %arg10[%c0_44, %c96_45] : memref<97x320xf32, #tpu.memory_space<vmem>>, vector<32x32xf32>
    %c96_46 = arith.constant 96 : index
    %c96_47 = arith.constant 96 : index
    %84 = vector.load %arg10[%c96_46, %c96_47] : memref<97x320xf32, #tpu.memory_space<vmem>>, vector<1x32xf32>
    "tpu.trace_start"() <{level = 10 : i32, message = "hqd,hkd->hqk"}> : () -> ()
    %cst_48 = arith.constant dense<0.000000e+00> : vector<4x8x8xf32>
    %85 = tpu.matmul %64, %73, %cst_48 {dimension_numbers = #tpu.dot_dimension_numbers<[2], [2], [1], [1], [0, 0, 0, 1, 1, 1], [0], [0]>} : vector<4x8x8xf32>, vector<4x8x8xf32>, vector<4x8x8xf32> -> vector<4x8x8xf32>
    "tpu.trace_stop"() : () -> ()
    %cst_49 = arith.constant 0.353553385 : f32
    %86 = vector.broadcast %cst_49 : f32 to vector<4x8x8xf32>
    %87 = arith.mulf %85, %86 : vector<4x8x8xf32>
    %88 = vector.broadcast %33 : vector<1x1x8xf32> to vector<4x8x8xf32>
    %89 = arith.addf %87, %88 : vector<4x8x8xf32>
    %cst_50 = arith.constant dense<0xFF800000> : vector<4x8xf32>
    %90 = vector.multi_reduction <maximumf>, %89, %cst_50 [2] : vector<4x8x8xf32> to vector<4x8xf32>
    %91 = vector.shape_cast %90 : vector<4x8xf32> to vector<4x8x1xf32>
    %92 = vector.broadcast %91 : vector<4x8x1xf32> to vector<4x8x8xf32>
    %93 = arith.subf %89, %92 : vector<4x8x8xf32>
    %94 = math.exp %93 : vector<4x8x8xf32>
    %cst_51 = arith.constant dense<0.000000e+00> : vector<4x8xf32>
    %95 = vector.multi_reduction <add>, %94, %cst_51 [2] : vector<4x8x8xf32> to vector<4x8xf32>
    %96 = vector.shape_cast %95 : vector<4x8xf32> to vector<4x8x1xf32>
    %97 = tpu.reciprocal %96 {approx = true} : vector<4x8x1xf32> -> vector<4x8x1xf32>
    %98 = vector.broadcast %97 : vector<4x8x1xf32> to vector<4x8x8xf32>
    %99 = arith.mulf %94, %98 : vector<4x8x8xf32>
    "tpu.trace_start"() <{level = 10 : i32, message = "hqk,hkd->hqd"}> : () -> ()
    %cst_52 = arith.constant dense<0.000000e+00> : vector<4x8x8xf32>
    %100 = tpu.matmul %99, %82, %cst_52 {dimension_numbers = #tpu.dot_dimension_numbers<[2], [1], [1], [2], [0, 0, 0, 1, 1, 2], [0], [0]>} : vector<4x8x8xf32>, vector<4x8x8xf32>, vector<4x8x8xf32> -> vector<4x8x8xf32>
    "tpu.trace_stop"() : () -> ()
    %101 = vector.extract_strided_slice %100 {offsets = [0, 0, 0], sizes = [1, 8, 8], strides = [1, 1, 1]} : vector<4x8x8xf32> to vector<1x8x8xf32>
    %102 = vector.shape_cast %101 : vector<1x8x8xf32> to vector<8x8xf32>
    %103 = vector.extract_strided_slice %100 {offsets = [1, 0, 0], sizes = [1, 8, 8], strides = [1, 1, 1]} : vector<4x8x8xf32> to vector<1x8x8xf32>
    %104 = vector.shape_cast %103 : vector<1x8x8xf32> to vector<8x8xf32>
    %105 = vector.extract_strided_slice %100 {offsets = [2, 0, 0], sizes = [1, 8, 8], strides = [1, 1, 1]} : vector<4x8x8xf32> to vector<1x8x8xf32>
    %106 = vector.shape_cast %105 : vector<1x8x8xf32> to vector<8x8xf32>
    %107 = vector.extract_strided_slice %100 {offsets = [3, 0, 0], sizes = [1, 8, 8], strides = [1, 1, 1]} : vector<4x8x8xf32> to vector<1x8x8xf32>
    %108 = vector.shape_cast %107 : vector<1x8x8xf32> to vector<8x8xf32>
    %109 = tpu.concatenate %102, %104, %106, %108 in 1 : vector<8x8xf32>, vector<8x8xf32>, vector<8x8xf32>, vector<8x8xf32> -> vector<8x32xf32>
    %cst_53 = arith.constant dense<0.000000e+00> : vector<8x32xf32>
    %110 = tpu.matmul %109, %83, %cst_53 {dimension_numbers = #tpu.dot_dimension_numbers<[1], [0], [0], [1], [0, 0, 1, 1], [], []>} : vector<8x32xf32>, vector<32x32xf32>, vector<8x32xf32> -> vector<8x32xf32>
    %111 = vector.broadcast %84 : vector<1x32xf32> to vector<8x32xf32>
    %112 = arith.addf %110, %111 : vector<8x32xf32>
    %113 = arith.addf %5, %112 : vector<8x32xf32>
    %c0_54 = arith.constant 0 : index
    %c0_55 = arith.constant 0 : index
    %114 = vector.load %arg11[%c0_54, %c0_55] : memref<8x32xf32, #tpu.memory_space<vmem>>, vector<1x32xf32>
    %c3 = arith.constant 3 : index
    %c0_56 = arith.constant 0 : index
    %115 = vector.load %arg11[%c3, %c0_56] : memref<8x32xf32, #tpu.memory_space<vmem>>, vector<1x32xf32>
    %cst_57 = arith.constant dense<0.000000e+00> : vector<8xf32>
    %116 = vector.multi_reduction <add>, %113, %cst_57 [1] : vector<8x32xf32> to vector<8xf32>
    %117 = vector.shape_cast %116 : vector<8xf32> to vector<8x1xf32>
    %cst_58 = arith.constant 3.200000e+01 : f32
    %118 = vector.broadcast %cst_58 : f32 to vector<8x1xf32>
    %119 = arith.divf %117, %118 : vector<8x1xf32>
    %120 = vector.broadcast %119 : vector<8x1xf32> to vector<8x32xf32>
    %121 = arith.subf %113, %120 : vector<8x32xf32>
    %122 = arith.mulf %121, %121 : vector<8x32xf32>
    %cst_59 = arith.constant dense<0.000000e+00> : vector<8xf32>
    %123 = vector.multi_reduction <add>, %122, %cst_59 [1] : vector<8x32xf32> to vector<8xf32>
    %124 = vector.shape_cast %123 : vector<8xf32> to vector<8x1xf32>
    %cst_60 = arith.constant 3.200000e+01 : f32
    %125 = vector.broadcast %cst_60 : f32 to vector<8x1xf32>
    %126 = arith.divf %124, %125 : vector<8x1xf32>
    %127 = vector.broadcast %119 : vector<8x1xf32> to vector<8x32xf32>
    %128 = arith.subf %113, %127 : vector<8x32xf32>
    %cst_61 = arith.constant 9.99999974E-6 : f32
    %129 = vector.broadcast %cst_61 : f32 to vector<8x1xf32>
    %130 = arith.addf %126, %129 : vector<8x1xf32>
    %131 = math.rsqrt %130 : vector<8x1xf32>
    %132 = vector.broadcast %131 : vector<8x1xf32> to vector<8x32xf32>
    %133 = arith.mulf %128, %132 : vector<8x32xf32>
    %134 = vector.broadcast %114 : vector<1x32xf32> to vector<8x32xf32>
    %135 = arith.mulf %133, %134 : vector<8x32xf32>
    %136 = vector.broadcast %115 : vector<1x32xf32> to vector<8x32xf32>
    %137 = arith.addf %135, %136 : vector<8x32xf32>
    %c0_62 = arith.constant 0 : index
    %c128 = arith.constant 128 : index
    %138 = vector.load %arg10[%c0_62, %c128] : memref<97x320xf32, #tpu.memory_space<vmem>>, vector<32x32xf32>
    %cst_63 = arith.constant dense<0.000000e+00> : vector<8x32xf32>
    %139 = tpu.matmul %137, %138, %cst_63 {dimension_numbers = #tpu.dot_dimension_numbers<[1], [0], [0], [1], [0, 0, 1, 1], [], []>} : vector<8x32xf32>, vector<32x32xf32>, vector<8x32xf32> -> vector<8x32xf32>
    %c96_64 = arith.constant 96 : index
    %c128_65 = arith.constant 128 : index
    %140 = vector.load %arg10[%c96_64, %c128_65] : memref<97x320xf32, #tpu.memory_space<vmem>>, vector<1x32xf32>
    %141 = vector.broadcast %140 : vector<1x32xf32> to vector<8x32xf32>
    %142 = arith.addf %139, %141 : vector<8x32xf32>
    %c0_66 = arith.constant 0 : index
    %c160 = arith.constant 160 : index
    %143 = vector.load %arg10[%c0_66, %c160] : memref<97x320xf32, #tpu.memory_space<vmem>>, vector<32x64xf32>
    %cst_67 = arith.constant dense<0.000000e+00> : vector<16x64xf32>
    %144 = tpu.matmul %25, %143, %cst_67 {dimension_numbers = #tpu.dot_dimension_numbers<[1], [0], [0], [1], [0, 0, 1, 1], [], []>} : vector<16x32xf32>, vector<32x64xf32>, vector<16x64xf32> -> vector<16x64xf32>
    %c96_68 = arith.constant 96 : index
    %c160_69 = arith.constant 160 : index
    %145 = vector.load %arg10[%c96_68, %c160_69] : memref<97x320xf32, #tpu.memory_space<vmem>>, vector<1x64xf32>
    %146 = vector.broadcast %145 : vector<1x64xf32> to vector<16x64xf32>
    %147 = arith.addf %144, %146 : vector<16x64xf32>
    %148 = vector.extract_strided_slice %142 {offsets = [0, 0], sizes = [8, 8], strides = [1, 1]} : vector<8x32xf32> to vector<8x8xf32>
    %149 = vector.extract_strided_slice %142 {offsets = [0, 8], sizes = [8, 8], strides = [1, 1]} : vector<8x32xf32> to vector<8x8xf32>
    %150 = vector.extract_strided_slice %142 {offsets = [0, 16], sizes = [8, 8], strides = [1, 1]} : vector<8x32xf32> to vector<8x8xf32>
    %151 = vector.extract_strided_slice %142 {offsets = [0, 24], sizes = [8, 8], strides = [1, 1]} : vector<8x32xf32> to vector<8x8xf32>
    %152 = vector.shape_cast %148 : vector<8x8xf32> to vector<1x8x8xf32>
    %153 = vector.shape_cast %149 : vector<8x8xf32> to vector<1x8x8xf32>
    %154 = vector.shape_cast %150 : vector<8x8xf32> to vector<1x8x8xf32>
    %155 = vector.shape_cast %151 : vector<8x8xf32> to vector<1x8x8xf32>
    %156 = tpu.concatenate %152, %153, %154, %155 in 0 : vector<1x8x8xf32>, vector<1x8x8xf32>, vector<1x8x8xf32>, vector<1x8x8xf32> -> vector<4x8x8xf32>
    %157 = vector.extract_strided_slice %147 {offsets = [0, 0], sizes = [16, 8], strides = [1, 1]} : vector<16x64xf32> to vector<16x8xf32>
    %158 = vector.extract_strided_slice %147 {offsets = [0, 8], sizes = [16, 8], strides = [1, 1]} : vector<16x64xf32> to vector<16x8xf32>
    %159 = vector.extract_strided_slice %147 {offsets = [0, 16], sizes = [16, 8], strides = [1, 1]} : vector<16x64xf32> to vector<16x8xf32>
    %160 = vector.extract_strided_slice %147 {offsets = [0, 24], sizes = [16, 8], strides = [1, 1]} : vector<16x64xf32> to vector<16x8xf32>
    %161 = vector.shape_cast %157 : vector<16x8xf32> to vector<1x16x8xf32>
    %162 = vector.shape_cast %158 : vector<16x8xf32> to vector<1x16x8xf32>
    %163 = vector.shape_cast %159 : vector<16x8xf32> to vector<1x16x8xf32>
    %164 = vector.shape_cast %160 : vector<16x8xf32> to vector<1x16x8xf32>
    %165 = tpu.concatenate %161, %162, %163, %164 in 0 : vector<1x16x8xf32>, vector<1x16x8xf32>, vector<1x16x8xf32>, vector<1x16x8xf32> -> vector<4x16x8xf32>
    %166 = vector.extract_strided_slice %147 {offsets = [0, 32], sizes = [16, 8], strides = [1, 1]} : vector<16x64xf32> to vector<16x8xf32>
    %167 = vector.extract_strided_slice %147 {offsets = [0, 40], sizes = [16, 8], strides = [1, 1]} : vector<16x64xf32> to vector<16x8xf32>
    %168 = vector.extract_strided_slice %147 {offsets = [0, 48], sizes = [16, 8], strides = [1, 1]} : vector<16x64xf32> to vector<16x8xf32>
    %169 = vector.extract_strided_slice %147 {offsets = [0, 56], sizes = [16, 8], strides = [1, 1]} : vector<16x64xf32> to vector<16x8xf32>
    %170 = vector.shape_cast %166 : vector<16x8xf32> to vector<1x16x8xf32>
    %171 = vector.shape_cast %167 : vector<16x8xf32> to vector<1x16x8xf32>
    %172 = vector.shape_cast %168 : vector<16x8xf32> to vector<1x16x8xf32>
    %173 = vector.shape_cast %169 : vector<16x8xf32> to vector<1x16x8xf32>
    %174 = tpu.concatenate %170, %171, %172, %173 in 0 : vector<1x16x8xf32>, vector<1x16x8xf32>, vector<1x16x8xf32>, vector<1x16x8xf32> -> vector<4x16x8xf32>
    %c0_70 = arith.constant 0 : index
    %c224 = arith.constant 224 : index
    %175 = vector.load %arg10[%c0_70, %c224] : memref<97x320xf32, #tpu.memory_space<vmem>>, vector<32x32xf32>
    %c96_71 = arith.constant 96 : index
    %c224_72 = arith.constant 224 : index
    %176 = vector.load %arg10[%c96_71, %c224_72] : memref<97x320xf32, #tpu.memory_space<vmem>>, vector<1x32xf32>
    "tpu.trace_start"() <{level = 10 : i32, message = "hqd,hkd->hqk"}> : () -> ()
    %cst_73 = arith.constant dense<0.000000e+00> : vector<4x8x16xf32>
    %177 = tpu.matmul %156, %165, %cst_73 {dimension_numbers = #tpu.dot_dimension_numbers<[2], [2], [1], [1], [0, 0, 0, 1, 1, 1], [0], [0]>} : vector<4x8x8xf32>, vector<4x16x8xf32>, vector<4x8x16xf32> -> vector<4x8x16xf32>
    "tpu.trace_stop"() : () -> ()
    %cst_74 = arith.constant 0.353553385 : f32
    %178 = vector.broadcast %cst_74 : f32 to vector<4x8x16xf32>
    %179 = arith.mulf %177, %178 : vector<4x8x16xf32>
    %180 = vector.broadcast %43 : vector<1x1x16xf32> to vector<4x8x16xf32>
    %181 = arith.addf %179, %180 : vector<4x8x16xf32>
    %cst_75 = arith.constant dense<0xFF800000> : vector<4x8xf32>
    %182 = vector.multi_reduction <maximumf>, %181, %cst_75 [2] : vector<4x8x16xf32> to vector<4x8xf32>
    %183 = vector.shape_cast %182 : vector<4x8xf32> to vector<4x8x1xf32>
    %184 = vector.broadcast %183 : vector<4x8x1xf32> to vector<4x8x16xf32>
    %185 = arith.subf %181, %184 : vector<4x8x16xf32>
    %186 = math.exp %185 : vector<4x8x16xf32>
    %cst_76 = arith.constant dense<0.000000e+00> : vector<4x8xf32>
    %187 = vector.multi_reduction <add>, %186, %cst_76 [2] : vector<4x8x16xf32> to vector<4x8xf32>
    %188 = vector.shape_cast %187 : vector<4x8xf32> to vector<4x8x1xf32>
    %189 = tpu.reciprocal %188 {approx = true} : vector<4x8x1xf32> -> vector<4x8x1xf32>
    %190 = vector.broadcast %189 : vector<4x8x1xf32> to vector<4x8x16xf32>
    %191 = arith.mulf %186, %190 : vector<4x8x16xf32>
    "tpu.trace_start"() <{level = 10 : i32, message = "hqk,hkd->hqd"}> : () -> ()
    %cst_77 = arith.constant dense<0.000000e+00> : vector<4x8x8xf32>
    %192 = tpu.matmul %191, %174, %cst_77 {dimension_numbers = #tpu.dot_dimension_numbers<[2], [1], [1], [2], [0, 0, 0, 1, 1, 2], [0], [0]>} : vector<4x8x16xf32>, vector<4x16x8xf32>, vector<4x8x8xf32> -> vector<4x8x8xf32>
    "tpu.trace_stop"() : () -> ()
    %193 = vector.extract_strided_slice %192 {offsets = [0, 0, 0], sizes = [1, 8, 8], strides = [1, 1, 1]} : vector<4x8x8xf32> to vector<1x8x8xf32>
    %194 = vector.shape_cast %193 : vector<1x8x8xf32> to vector<8x8xf32>
    %195 = vector.extract_strided_slice %192 {offsets = [1, 0, 0], sizes = [1, 8, 8], strides = [1, 1, 1]} : vector<4x8x8xf32> to vector<1x8x8xf32>
    %196 = vector.shape_cast %195 : vector<1x8x8xf32> to vector<8x8xf32>
    %197 = vector.extract_strided_slice %192 {offsets = [2, 0, 0], sizes = [1, 8, 8], strides = [1, 1, 1]} : vector<4x8x8xf32> to vector<1x8x8xf32>
    %198 = vector.shape_cast %197 : vector<1x8x8xf32> to vector<8x8xf32>
    %199 = vector.extract_strided_slice %192 {offsets = [3, 0, 0], sizes = [1, 8, 8], strides = [1, 1, 1]} : vector<4x8x8xf32> to vector<1x8x8xf32>
    %200 = vector.shape_cast %199 : vector<1x8x8xf32> to vector<8x8xf32>
    %201 = tpu.concatenate %194, %196, %198, %200 in 1 : vector<8x8xf32>, vector<8x8xf32>, vector<8x8xf32>, vector<8x8xf32> -> vector<8x32xf32>
    %cst_78 = arith.constant dense<0.000000e+00> : vector<8x32xf32>
    %202 = tpu.matmul %201, %175, %cst_78 {dimension_numbers = #tpu.dot_dimension_numbers<[1], [0], [0], [1], [0, 0, 1, 1], [], []>} : vector<8x32xf32>, vector<32x32xf32>, vector<8x32xf32> -> vector<8x32xf32>
    %203 = vector.broadcast %176 : vector<1x32xf32> to vector<8x32xf32>
    %204 = arith.addf %202, %203 : vector<8x32xf32>
    %205 = arith.addf %137, %204 : vector<8x32xf32>
    %c1 = arith.constant 1 : index
    %c0_79 = arith.constant 0 : index
    %206 = vector.load %arg11[%c1, %c0_79] : memref<8x32xf32, #tpu.memory_space<vmem>>, vector<1x32xf32>
    %c4 = arith.constant 4 : index
    %c0_80 = arith.constant 0 : index
    %207 = vector.load %arg11[%c4, %c0_80] : memref<8x32xf32, #tpu.memory_space<vmem>>, vector<1x32xf32>
    %cst_81 = arith.constant dense<0.000000e+00> : vector<8xf32>
    %208 = vector.multi_reduction <add>, %205, %cst_81 [1] : vector<8x32xf32> to vector<8xf32>
    %209 = vector.shape_cast %208 : vector<8xf32> to vector<8x1xf32>
    %cst_82 = arith.constant 3.200000e+01 : f32
    %210 = vector.broadcast %cst_82 : f32 to vector<8x1xf32>
    %211 = arith.divf %209, %210 : vector<8x1xf32>
    %212 = vector.broadcast %211 : vector<8x1xf32> to vector<8x32xf32>
    %213 = arith.subf %205, %212 : vector<8x32xf32>
    %214 = arith.mulf %213, %213 : vector<8x32xf32>
    %cst_83 = arith.constant dense<0.000000e+00> : vector<8xf32>
    %215 = vector.multi_reduction <add>, %214, %cst_83 [1] : vector<8x32xf32> to vector<8xf32>
    %216 = vector.shape_cast %215 : vector<8xf32> to vector<8x1xf32>
    %cst_84 = arith.constant 3.200000e+01 : f32
    %217 = vector.broadcast %cst_84 : f32 to vector<8x1xf32>
    %218 = arith.divf %216, %217 : vector<8x1xf32>
    %219 = vector.broadcast %211 : vector<8x1xf32> to vector<8x32xf32>
    %220 = arith.subf %205, %219 : vector<8x32xf32>
    %cst_85 = arith.constant 9.99999974E-6 : f32
    %221 = vector.broadcast %cst_85 : f32 to vector<8x1xf32>
    %222 = arith.addf %218, %221 : vector<8x1xf32>
    %223 = math.rsqrt %222 : vector<8x1xf32>
    %224 = vector.broadcast %223 : vector<8x1xf32> to vector<8x32xf32>
    %225 = arith.mulf %220, %224 : vector<8x32xf32>
    %226 = vector.broadcast %206 : vector<1x32xf32> to vector<8x32xf32>
    %227 = arith.mulf %225, %226 : vector<8x32xf32>
    %228 = vector.broadcast %207 : vector<1x32xf32> to vector<8x32xf32>
    %229 = arith.addf %227, %228 : vector<8x32xf32>
    %c0_86 = arith.constant 0 : index
    %c256 = arith.constant 256 : index
    %230 = vector.load %arg10[%c0_86, %c256] : memref<97x320xf32, #tpu.memory_space<vmem>>, vector<32x64xf32>
    %cst_87 = arith.constant dense<0.000000e+00> : vector<8x64xf32>
    %231 = tpu.matmul %229, %230, %cst_87 {dimension_numbers = #tpu.dot_dimension_numbers<[1], [0], [0], [1], [0, 0, 1, 1], [], []>} : vector<8x32xf32>, vector<32x64xf32>, vector<8x64xf32> -> vector<8x64xf32>
    %c96_88 = arith.constant 96 : index
    %c256_89 = arith.constant 256 : index
    %232 = vector.load %arg10[%c96_88, %c256_89] : memref<97x320xf32, #tpu.memory_space<vmem>>, vector<1x64xf32>
    %233 = vector.broadcast %232 : vector<1x64xf32> to vector<8x64xf32>
    %234 = arith.addf %231, %233 : vector<8x64xf32>
    %cst_90 = arith.constant 0.000000e+00 : f32
    %235 = vector.broadcast %cst_90 : f32 to vector<8x64xf32>
    %236 = arith.maximumf %234, %235 : vector<8x64xf32>
    %c32 = arith.constant 32 : index
    %c0_91 = arith.constant 0 : index
    %237 = vector.load %arg10[%c32, %c0_91] : memref<97x320xf32, #tpu.memory_space<vmem>>, vector<64x32xf32>
    %cst_92 = arith.constant dense<0.000000e+00> : vector<8x32xf32>
    %238 = tpu.matmul %236, %237, %cst_92 {dimension_numbers = #tpu.dot_dimension_numbers<[1], [0], [0], [1], [0, 0, 1, 1], [], []>} : vector<8x64xf32>, vector<64x32xf32>, vector<8x32xf32> -> vector<8x32xf32>
    %c6 = arith.constant 6 : index
    %c0_93 = arith.constant 0 : index
    %239 = vector.load %arg11[%c6, %c0_93] : memref<8x32xf32, #tpu.memory_space<vmem>>, vector<1x32xf32>
    %240 = vector.broadcast %239 : vector<1x32xf32> to vector<8x32xf32>
    %241 = arith.addf %238, %240 : vector<8x32xf32>
    %242 = arith.addf %229, %241 : vector<8x32xf32>
    %c2 = arith.constant 2 : index
    %c0_94 = arith.constant 0 : index
    %243 = vector.load %arg11[%c2, %c0_94] : memref<8x32xf32, #tpu.memory_space<vmem>>, vector<1x32xf32>
    %c5 = arith.constant 5 : index
    %c0_95 = arith.constant 0 : index
    %244 = vector.load %arg11[%c5, %c0_95] : memref<8x32xf32, #tpu.memory_space<vmem>>, vector<1x32xf32>
    %cst_96 = arith.constant dense<0.000000e+00> : vector<8xf32>
    %245 = vector.multi_reduction <add>, %242, %cst_96 [1] : vector<8x32xf32> to vector<8xf32>
    %246 = vector.shape_cast %245 : vector<8xf32> to vector<8x1xf32>
    %cst_97 = arith.constant 3.200000e+01 : f32
    %247 = vector.broadcast %cst_97 : f32 to vector<8x1xf32>
    %248 = arith.divf %246, %247 : vector<8x1xf32>
    %249 = vector.broadcast %248 : vector<8x1xf32> to vector<8x32xf32>
    %250 = arith.subf %242, %249 : vector<8x32xf32>
    %251 = arith.mulf %250, %250 : vector<8x32xf32>
    %cst_98 = arith.constant dense<0.000000e+00> : vector<8xf32>
    %252 = vector.multi_reduction <add>, %251, %cst_98 [1] : vector<8x32xf32> to vector<8xf32>
    %253 = vector.shape_cast %252 : vector<8xf32> to vector<8x1xf32>
    %cst_99 = arith.constant 3.200000e+01 : f32
    %254 = vector.broadcast %cst_99 : f32 to vector<8x1xf32>
    %255 = arith.divf %253, %254 : vector<8x1xf32>
    %256 = vector.broadcast %248 : vector<8x1xf32> to vector<8x32xf32>
    %257 = arith.subf %242, %256 : vector<8x32xf32>
    %cst_100 = arith.constant 9.99999974E-6 : f32
    %258 = vector.broadcast %cst_100 : f32 to vector<8x1xf32>
    %259 = arith.addf %255, %258 : vector<8x1xf32>
    %260 = math.rsqrt %259 : vector<8x1xf32>
    %261 = vector.broadcast %260 : vector<8x1xf32> to vector<8x32xf32>
    %262 = arith.mulf %257, %261 : vector<8x32xf32>
    %263 = vector.broadcast %243 : vector<1x32xf32> to vector<8x32xf32>
    %264 = arith.mulf %262, %263 : vector<8x32xf32>
    %265 = vector.broadcast %244 : vector<1x32xf32> to vector<8x32xf32>
    %266 = arith.addf %264, %265 : vector<8x32xf32>
    %c0_101 = arith.constant 0 : index
    %c0_102 = arith.constant 0 : index
    %267 = vector.load %arg12[%c0_101, %c0_102] : memref<97x320xf32, #tpu.memory_space<vmem>>, vector<32x96xf32>
    %cst_103 = arith.constant dense<0.000000e+00> : vector<8x96xf32>
    %268 = tpu.matmul %17, %267, %cst_103 {dimension_numbers = #tpu.dot_dimension_numbers<[1], [0], [0], [1], [0, 0, 1, 1], [], []>} : vector<8x32xf32>, vector<32x96xf32>, vector<8x96xf32> -> vector<8x96xf32>
    %c96_104 = arith.constant 96 : index
    %c0_105 = arith.constant 0 : index
    %269 = vector.load %arg12[%c96_104, %c0_105] : memref<97x320xf32, #tpu.memory_space<vmem>>, vector<1x96xf32>
    %270 = vector.broadcast %269 : vector<1x96xf32> to vector<8x96xf32>
    %271 = arith.addf %268, %270 : vector<8x96xf32>
    %272 = vector.extract_strided_slice %271 {offsets = [0, 0], sizes = [8, 8], strides = [1, 1]} : vector<8x96xf32> to vector<8x8xf32>
    %273 = vector.extract_strided_slice %271 {offsets = [0, 8], sizes = [8, 8], strides = [1, 1]} : vector<8x96xf32> to vector<8x8xf32>
    %274 = vector.extract_strided_slice %271 {offsets = [0, 16], sizes = [8, 8], strides = [1, 1]} : vector<8x96xf32> to vector<8x8xf32>
    %275 = vector.extract_strided_slice %271 {offsets = [0, 24], sizes = [8, 8], strides = [1, 1]} : vector<8x96xf32> to vector<8x8xf32>
    %276 = vector.shape_cast %272 : vector<8x8xf32> to vector<1x8x8xf32>
    %277 = vector.shape_cast %273 : vector<8x8xf32> to vector<1x8x8xf32>
    %278 = vector.shape_cast %274 : vector<8x8xf32> to vector<1x8x8xf32>
    %279 = vector.shape_cast %275 : vector<8x8xf32> to vector<1x8x8xf32>
    %280 = tpu.concatenate %276, %277, %278, %279 in 0 : vector<1x8x8xf32>, vector<1x8x8xf32>, vector<1x8x8xf32>, vector<1x8x8xf32> -> vector<4x8x8xf32>
    %281 = vector.extract_strided_slice %271 {offsets = [0, 32], sizes = [8, 8], strides = [1, 1]} : vector<8x96xf32> to vector<8x8xf32>
    %282 = vector.extract_strided_slice %271 {offsets = [0, 40], sizes = [8, 8], strides = [1, 1]} : vector<8x96xf32> to vector<8x8xf32>
    %283 = vector.extract_strided_slice %271 {offsets = [0, 48], sizes = [8, 8], strides = [1, 1]} : vector<8x96xf32> to vector<8x8xf32>
    %284 = vector.extract_strided_slice %271 {offsets = [0, 56], sizes = [8, 8], strides = [1, 1]} : vector<8x96xf32> to vector<8x8xf32>
    %285 = vector.shape_cast %281 : vector<8x8xf32> to vector<1x8x8xf32>
    %286 = vector.shape_cast %282 : vector<8x8xf32> to vector<1x8x8xf32>
    %287 = vector.shape_cast %283 : vector<8x8xf32> to vector<1x8x8xf32>
    %288 = vector.shape_cast %284 : vector<8x8xf32> to vector<1x8x8xf32>
    %289 = tpu.concatenate %285, %286, %287, %288 in 0 : vector<1x8x8xf32>, vector<1x8x8xf32>, vector<1x8x8xf32>, vector<1x8x8xf32> -> vector<4x8x8xf32>
    %290 = vector.extract_strided_slice %271 {offsets = [0, 64], sizes = [8, 8], strides = [1, 1]} : vector<8x96xf32> to vector<8x8xf32>
    %291 = vector.extract_strided_slice %271 {offsets = [0, 72], sizes = [8, 8], strides = [1, 1]} : vector<8x96xf32> to vector<8x8xf32>
    %292 = vector.extract_strided_slice %271 {offsets = [0, 80], sizes = [8, 8], strides = [1, 1]} : vector<8x96xf32> to vector<8x8xf32>
    %293 = vector.extract_strided_slice %271 {offsets = [0, 88], sizes = [8, 8], strides = [1, 1]} : vector<8x96xf32> to vector<8x8xf32>
    %294 = vector.shape_cast %290 : vector<8x8xf32> to vector<1x8x8xf32>
    %295 = vector.shape_cast %291 : vector<8x8xf32> to vector<1x8x8xf32>
    %296 = vector.shape_cast %292 : vector<8x8xf32> to vector<1x8x8xf32>
    %297 = vector.shape_cast %293 : vector<8x8xf32> to vector<1x8x8xf32>
    %298 = tpu.concatenate %294, %295, %296, %297 in 0 : vector<1x8x8xf32>, vector<1x8x8xf32>, vector<1x8x8xf32>, vector<1x8x8xf32> -> vector<4x8x8xf32>
    %c0_106 = arith.constant 0 : index
    %c96_107 = arith.constant 96 : index
    %299 = vector.load %arg12[%c0_106, %c96_107] : memref<97x320xf32, #tpu.memory_space<vmem>>, vector<32x32xf32>
    %c96_108 = arith.constant 96 : index
    %c96_109 = arith.constant 96 : index
    %300 = vector.load %arg12[%c96_108, %c96_109] : memref<97x320xf32, #tpu.memory_space<vmem>>, vector<1x32xf32>
    "tpu.trace_start"() <{level = 10 : i32, message = "hqd,hkd->hqk"}> : () -> ()
    %cst_110 = arith.constant dense<0.000000e+00> : vector<4x8x8xf32>
    %301 = tpu.matmul %280, %289, %cst_110 {dimension_numbers = #tpu.dot_dimension_numbers<[2], [2], [1], [1], [0, 0, 0, 1, 1, 1], [0], [0]>} : vector<4x8x8xf32>, vector<4x8x8xf32>, vector<4x8x8xf32> -> vector<4x8x8xf32>
    "tpu.trace_stop"() : () -> ()
    %cst_111 = arith.constant 0.353553385 : f32
    %302 = vector.broadcast %cst_111 : f32 to vector<4x8x8xf32>
    %303 = arith.mulf %301, %302 : vector<4x8x8xf32>
    %304 = vector.broadcast %50 : vector<1x8x8xf32> to vector<4x8x8xf32>
    %305 = arith.addf %303, %304 : vector<4x8x8xf32>
    %cst_112 = arith.constant dense<0xFF800000> : vector<4x8xf32>
    %306 = vector.multi_reduction <maximumf>, %305, %cst_112 [2] : vector<4x8x8xf32> to vector<4x8xf32>
    %307 = vector.shape_cast %306 : vector<4x8xf32> to vector<4x8x1xf32>
    %308 = vector.broadcast %307 : vector<4x8x1xf32> to vector<4x8x8xf32>
    %309 = arith.subf %305, %308 : vector<4x8x8xf32>
    %310 = math.exp %309 : vector<4x8x8xf32>
    %cst_113 = arith.constant dense<0.000000e+00> : vector<4x8xf32>
    %311 = vector.multi_reduction <add>, %310, %cst_113 [2] : vector<4x8x8xf32> to vector<4x8xf32>
    %312 = vector.shape_cast %311 : vector<4x8xf32> to vector<4x8x1xf32>
    %313 = tpu.reciprocal %312 {approx = true} : vector<4x8x1xf32> -> vector<4x8x1xf32>
    %314 = vector.broadcast %313 : vector<4x8x1xf32> to vector<4x8x8xf32>
    %315 = arith.mulf %310, %314 : vector<4x8x8xf32>
    "tpu.trace_start"() <{level = 10 : i32, message = "hqk,hkd->hqd"}> : () -> ()
    %cst_114 = arith.constant dense<0.000000e+00> : vector<4x8x8xf32>
    %316 = tpu.matmul %315, %298, %cst_114 {dimension_numbers = #tpu.dot_dimension_numbers<[2], [1], [1], [2], [0, 0, 0, 1, 1, 2], [0], [0]>} : vector<4x8x8xf32>, vector<4x8x8xf32>, vector<4x8x8xf32> -> vector<4x8x8xf32>
    "tpu.trace_stop"() : () -> ()
    %317 = vector.extract_strided_slice %316 {offsets = [0, 0, 0], sizes = [1, 8, 8], strides = [1, 1, 1]} : vector<4x8x8xf32> to vector<1x8x8xf32>
    %318 = vector.shape_cast %317 : vector<1x8x8xf32> to vector<8x8xf32>
    %319 = vector.extract_strided_slice %316 {offsets = [1, 0, 0], sizes = [1, 8, 8], strides = [1, 1, 1]} : vector<4x8x8xf32> to vector<1x8x8xf32>
    %320 = vector.shape_cast %319 : vector<1x8x8xf32> to vector<8x8xf32>
    %321 = vector.extract_strided_slice %316 {offsets = [2, 0, 0], sizes = [1, 8, 8], strides = [1, 1, 1]} : vector<4x8x8xf32> to vector<1x8x8xf32>
    %322 = vector.shape_cast %321 : vector<1x8x8xf32> to vector<8x8xf32>
    %323 = vector.extract_strided_slice %316 {offsets = [3, 0, 0], sizes = [1, 8, 8], strides = [1, 1, 1]} : vector<4x8x8xf32> to vector<1x8x8xf32>
    %324 = vector.shape_cast %323 : vector<1x8x8xf32> to vector<8x8xf32>
    %325 = tpu.concatenate %318, %320, %322, %324 in 1 : vector<8x8xf32>, vector<8x8xf32>, vector<8x8xf32>, vector<8x8xf32> -> vector<8x32xf32>
    %cst_115 = arith.constant dense<0.000000e+00> : vector<8x32xf32>
    %326 = tpu.matmul %325, %299, %cst_115 {dimension_numbers = #tpu.dot_dimension_numbers<[1], [0], [0], [1], [0, 0, 1, 1], [], []>} : vector<8x32xf32>, vector<32x32xf32>, vector<8x32xf32> -> vector<8x32xf32>
    %327 = vector.broadcast %300 : vector<1x32xf32> to vector<8x32xf32>
    %328 = arith.addf %326, %327 : vector<8x32xf32>
    %329 = arith.addf %17, %328 : vector<8x32xf32>
    %c0_116 = arith.constant 0 : index
    %c0_117 = arith.constant 0 : index
    %330 = vector.load %arg13[%c0_116, %c0_117] : memref<8x32xf32, #tpu.memory_space<vmem>>, vector<1x32xf32>
    %c3_118 = arith.constant 3 : index
    %c0_119 = arith.constant 0 : index
    %331 = vector.load %arg13[%c3_118, %c0_119] : memref<8x32xf32, #tpu.memory_space<vmem>>, vector<1x32xf32>
    %cst_120 = arith.constant dense<0.000000e+00> : vector<8xf32>
    %332 = vector.multi_reduction <add>, %329, %cst_120 [1] : vector<8x32xf32> to vector<8xf32>
    %333 = vector.shape_cast %332 : vector<8xf32> to vector<8x1xf32>
    %cst_121 = arith.constant 3.200000e+01 : f32
    %334 = vector.broadcast %cst_121 : f32 to vector<8x1xf32>
    %335 = arith.divf %333, %334 : vector<8x1xf32>
    %336 = vector.broadcast %335 : vector<8x1xf32> to vector<8x32xf32>
    %337 = arith.subf %329, %336 : vector<8x32xf32>
    %338 = arith.mulf %337, %337 : vector<8x32xf32>
    %cst_122 = arith.constant dense<0.000000e+00> : vector<8xf32>
    %339 = vector.multi_reduction <add>, %338, %cst_122 [1] : vector<8x32xf32> to vector<8xf32>
    %340 = vector.shape_cast %339 : vector<8xf32> to vector<8x1xf32>
    %cst_123 = arith.constant 3.200000e+01 : f32
    %341 = vector.broadcast %cst_123 : f32 to vector<8x1xf32>
    %342 = arith.divf %340, %341 : vector<8x1xf32>
    %343 = vector.broadcast %335 : vector<8x1xf32> to vector<8x32xf32>
    %344 = arith.subf %329, %343 : vector<8x32xf32>
    %cst_124 = arith.constant 9.99999974E-6 : f32
    %345 = vector.broadcast %cst_124 : f32 to vector<8x1xf32>
    %346 = arith.addf %342, %345 : vector<8x1xf32>
    %347 = math.rsqrt %346 : vector<8x1xf32>
    %348 = vector.broadcast %347 : vector<8x1xf32> to vector<8x32xf32>
    %349 = arith.mulf %344, %348 : vector<8x32xf32>
    %350 = vector.broadcast %330 : vector<1x32xf32> to vector<8x32xf32>
    %351 = arith.mulf %349, %350 : vector<8x32xf32>
    %352 = vector.broadcast %331 : vector<1x32xf32> to vector<8x32xf32>
    %353 = arith.addf %351, %352 : vector<8x32xf32>
    %c0_125 = arith.constant 0 : index
    %c128_126 = arith.constant 128 : index
    %354 = vector.load %arg12[%c0_125, %c128_126] : memref<97x320xf32, #tpu.memory_space<vmem>>, vector<32x32xf32>
    %cst_127 = arith.constant dense<0.000000e+00> : vector<8x32xf32>
    %355 = tpu.matmul %353, %354, %cst_127 {dimension_numbers = #tpu.dot_dimension_numbers<[1], [0], [0], [1], [0, 0, 1, 1], [], []>} : vector<8x32xf32>, vector<32x32xf32>, vector<8x32xf32> -> vector<8x32xf32>
    %c96_128 = arith.constant 96 : index
    %c128_129 = arith.constant 128 : index
    %356 = vector.load %arg12[%c96_128, %c128_129] : memref<97x320xf32, #tpu.memory_space<vmem>>, vector<1x32xf32>
    %357 = vector.broadcast %356 : vector<1x32xf32> to vector<8x32xf32>
    %358 = arith.addf %355, %357 : vector<8x32xf32>
    %c0_130 = arith.constant 0 : index
    %c160_131 = arith.constant 160 : index
    %359 = vector.load %arg12[%c0_130, %c160_131] : memref<97x320xf32, #tpu.memory_space<vmem>>, vector<32x64xf32>
    %cst_132 = arith.constant dense<0.000000e+00> : vector<8x64xf32>
    %360 = tpu.matmul %266, %359, %cst_132 {dimension_numbers = #tpu.dot_dimension_numbers<[1], [0], [0], [1], [0, 0, 1, 1], [], []>} : vector<8x32xf32>, vector<32x64xf32>, vector<8x64xf32> -> vector<8x64xf32>
    %c96_133 = arith.constant 96 : index
    %c160_134 = arith.constant 160 : index
    %361 = vector.load %arg12[%c96_133, %c160_134] : memref<97x320xf32, #tpu.memory_space<vmem>>, vector<1x64xf32>
    %362 = vector.broadcast %361 : vector<1x64xf32> to vector<8x64xf32>
    %363 = arith.addf %360, %362 : vector<8x64xf32>
    %364 = vector.extract_strided_slice %358 {offsets = [0, 0], sizes = [8, 8], strides = [1, 1]} : vector<8x32xf32> to vector<8x8xf32>
    %365 = vector.extract_strided_slice %358 {offsets = [0, 8], sizes = [8, 8], strides = [1, 1]} : vector<8x32xf32> to vector<8x8xf32>
    %366 = vector.extract_strided_slice %358 {offsets = [0, 16], sizes = [8, 8], strides = [1, 1]} : vector<8x32xf32> to vector<8x8xf32>
    %367 = vector.extract_strided_slice %358 {offsets = [0, 24], sizes = [8, 8], strides = [1, 1]} : vector<8x32xf32> to vector<8x8xf32>
    %368 = vector.shape_cast %364 : vector<8x8xf32> to vector<1x8x8xf32>
    %369 = vector.shape_cast %365 : vector<8x8xf32> to vector<1x8x8xf32>
    %370 = vector.shape_cast %366 : vector<8x8xf32> to vector<1x8x8xf32>
    %371 = vector.shape_cast %367 : vector<8x8xf32> to vector<1x8x8xf32>
    %372 = tpu.concatenate %368, %369, %370, %371 in 0 : vector<1x8x8xf32>, vector<1x8x8xf32>, vector<1x8x8xf32>, vector<1x8x8xf32> -> vector<4x8x8xf32>
    %373 = vector.extract_strided_slice %363 {offsets = [0, 0], sizes = [8, 8], strides = [1, 1]} : vector<8x64xf32> to vector<8x8xf32>
    %374 = vector.extract_strided_slice %363 {offsets = [0, 8], sizes = [8, 8], strides = [1, 1]} : vector<8x64xf32> to vector<8x8xf32>
    %375 = vector.extract_strided_slice %363 {offsets = [0, 16], sizes = [8, 8], strides = [1, 1]} : vector<8x64xf32> to vector<8x8xf32>
    %376 = vector.extract_strided_slice %363 {offsets = [0, 24], sizes = [8, 8], strides = [1, 1]} : vector<8x64xf32> to vector<8x8xf32>
    %377 = vector.shape_cast %373 : vector<8x8xf32> to vector<1x8x8xf32>
    %378 = vector.shape_cast %374 : vector<8x8xf32> to vector<1x8x8xf32>
    %379 = vector.shape_cast %375 : vector<8x8xf32> to vector<1x8x8xf32>
    %380 = vector.shape_cast %376 : vector<8x8xf32> to vector<1x8x8xf32>
    %381 = tpu.concatenate %377, %378, %379, %380 in 0 : vector<1x8x8xf32>, vector<1x8x8xf32>, vector<1x8x8xf32>, vector<1x8x8xf32> -> vector<4x8x8xf32>
    %382 = vector.extract_strided_slice %363 {offsets = [0, 32], sizes = [8, 8], strides = [1, 1]} : vector<8x64xf32> to vector<8x8xf32>
    %383 = vector.extract_strided_slice %363 {offsets = [0, 40], sizes = [8, 8], strides = [1, 1]} : vector<8x64xf32> to vector<8x8xf32>
    %384 = vector.extract_strided_slice %363 {offsets = [0, 48], sizes = [8, 8], strides = [1, 1]} : vector<8x64xf32> to vector<8x8xf32>
    %385 = vector.extract_strided_slice %363 {offsets = [0, 56], sizes = [8, 8], strides = [1, 1]} : vector<8x64xf32> to vector<8x8xf32>
    %386 = vector.shape_cast %382 : vector<8x8xf32> to vector<1x8x8xf32>
    %387 = vector.shape_cast %383 : vector<8x8xf32> to vector<1x8x8xf32>
    %388 = vector.shape_cast %384 : vector<8x8xf32> to vector<1x8x8xf32>
    %389 = vector.shape_cast %385 : vector<8x8xf32> to vector<1x8x8xf32>
    %390 = tpu.concatenate %386, %387, %388, %389 in 0 : vector<1x8x8xf32>, vector<1x8x8xf32>, vector<1x8x8xf32>, vector<1x8x8xf32> -> vector<4x8x8xf32>
    %c0_135 = arith.constant 0 : index
    %c224_136 = arith.constant 224 : index
    %391 = vector.load %arg12[%c0_135, %c224_136] : memref<97x320xf32, #tpu.memory_space<vmem>>, vector<32x32xf32>
    %c96_137 = arith.constant 96 : index
    %c224_138 = arith.constant 224 : index
    %392 = vector.load %arg12[%c96_137, %c224_138] : memref<97x320xf32, #tpu.memory_space<vmem>>, vector<1x32xf32>
    "tpu.trace_start"() <{level = 10 : i32, message = "hqd,hkd->hqk"}> : () -> ()
    %cst_139 = arith.constant dense<0.000000e+00> : vector<4x8x8xf32>
    %393 = tpu.matmul %372, %381, %cst_139 {dimension_numbers = #tpu.dot_dimension_numbers<[2], [2], [1], [1], [0, 0, 0, 1, 1, 1], [0], [0]>} : vector<4x8x8xf32>, vector<4x8x8xf32>, vector<4x8x8xf32> -> vector<4x8x8xf32>
    "tpu.trace_stop"() : () -> ()
    %cst_140 = arith.constant 0.353553385 : f32
    %394 = vector.broadcast %cst_140 : f32 to vector<4x8x8xf32>
    %395 = arith.mulf %393, %394 : vector<4x8x8xf32>
    %396 = vector.broadcast %33 : vector<1x1x8xf32> to vector<4x8x8xf32>
    %397 = arith.addf %395, %396 : vector<4x8x8xf32>
    %cst_141 = arith.constant dense<0xFF800000> : vector<4x8xf32>
    %398 = vector.multi_reduction <maximumf>, %397, %cst_141 [2] : vector<4x8x8xf32> to vector<4x8xf32>
    %399 = vector.shape_cast %398 : vector<4x8xf32> to vector<4x8x1xf32>
    %400 = vector.broadcast %399 : vector<4x8x1xf32> to vector<4x8x8xf32>
    %401 = arith.subf %397, %400 : vector<4x8x8xf32>
    %402 = math.exp %401 : vector<4x8x8xf32>
    %cst_142 = arith.constant dense<0.000000e+00> : vector<4x8xf32>
    %403 = vector.multi_reduction <add>, %402, %cst_142 [2] : vector<4x8x8xf32> to vector<4x8xf32>
    %404 = vector.shape_cast %403 : vector<4x8xf32> to vector<4x8x1xf32>
    %405 = tpu.reciprocal %404 {approx = true} : vector<4x8x1xf32> -> vector<4x8x1xf32>
    %406 = vector.broadcast %405 : vector<4x8x1xf32> to vector<4x8x8xf32>
    %407 = arith.mulf %402, %406 : vector<4x8x8xf32>
    "tpu.trace_start"() <{level = 10 : i32, message = "hqk,hkd->hqd"}> : () -> ()
    %cst_143 = arith.constant dense<0.000000e+00> : vector<4x8x8xf32>
    %408 = tpu.matmul %407, %390, %cst_143 {dimension_numbers = #tpu.dot_dimension_numbers<[2], [1], [1], [2], [0, 0, 0, 1, 1, 2], [0], [0]>} : vector<4x8x8xf32>, vector<4x8x8xf32>, vector<4x8x8xf32> -> vector<4x8x8xf32>
    "tpu.trace_stop"() : () -> ()
    %409 = vector.extract_strided_slice %408 {offsets = [0, 0, 0], sizes = [1, 8, 8], strides = [1, 1, 1]} : vector<4x8x8xf32> to vector<1x8x8xf32>
    %410 = vector.shape_cast %409 : vector<1x8x8xf32> to vector<8x8xf32>
    %411 = vector.extract_strided_slice %408 {offsets = [1, 0, 0], sizes = [1, 8, 8], strides = [1, 1, 1]} : vector<4x8x8xf32> to vector<1x8x8xf32>
    %412 = vector.shape_cast %411 : vector<1x8x8xf32> to vector<8x8xf32>
    %413 = vector.extract_strided_slice %408 {offsets = [2, 0, 0], sizes = [1, 8, 8], strides = [1, 1, 1]} : vector<4x8x8xf32> to vector<1x8x8xf32>
    %414 = vector.shape_cast %413 : vector<1x8x8xf32> to vector<8x8xf32>
    %415 = vector.extract_strided_slice %408 {offsets = [3, 0, 0], sizes = [1, 8, 8], strides = [1, 1, 1]} : vector<4x8x8xf32> to vector<1x8x8xf32>
    %416 = vector.shape_cast %415 : vector<1x8x8xf32> to vector<8x8xf32>
    %417 = tpu.concatenate %410, %412, %414, %416 in 1 : vector<8x8xf32>, vector<8x8xf32>, vector<8x8xf32>, vector<8x8xf32> -> vector<8x32xf32>
    %cst_144 = arith.constant dense<0.000000e+00> : vector<8x32xf32>
    %418 = tpu.matmul %417, %391, %cst_144 {dimension_numbers = #tpu.dot_dimension_numbers<[1], [0], [0], [1], [0, 0, 1, 1], [], []>} : vector<8x32xf32>, vector<32x32xf32>, vector<8x32xf32> -> vector<8x32xf32>
    %419 = vector.broadcast %392 : vector<1x32xf32> to vector<8x32xf32>
    %420 = arith.addf %418, %419 : vector<8x32xf32>
    %421 = arith.addf %353, %420 : vector<8x32xf32>
    %c1_145 = arith.constant 1 : index
    %c0_146 = arith.constant 0 : index
    %422 = vector.load %arg13[%c1_145, %c0_146] : memref<8x32xf32, #tpu.memory_space<vmem>>, vector<1x32xf32>
    %c4_147 = arith.constant 4 : index
    %c0_148 = arith.constant 0 : index
    %423 = vector.load %arg13[%c4_147, %c0_148] : memref<8x32xf32, #tpu.memory_space<vmem>>, vector<1x32xf32>
    %cst_149 = arith.constant dense<0.000000e+00> : vector<8xf32>
    %424 = vector.multi_reduction <add>, %421, %cst_149 [1] : vector<8x32xf32> to vector<8xf32>
    %425 = vector.shape_cast %424 : vector<8xf32> to vector<8x1xf32>
    %cst_150 = arith.constant 3.200000e+01 : f32
    %426 = vector.broadcast %cst_150 : f32 to vector<8x1xf32>
    %427 = arith.divf %425, %426 : vector<8x1xf32>
    %428 = vector.broadcast %427 : vector<8x1xf32> to vector<8x32xf32>
    %429 = arith.subf %421, %428 : vector<8x32xf32>
    %430 = arith.mulf %429, %429 : vector<8x32xf32>
    %cst_151 = arith.constant dense<0.000000e+00> : vector<8xf32>
    %431 = vector.multi_reduction <add>, %430, %cst_151 [1] : vector<8x32xf32> to vector<8xf32>
    %432 = vector.shape_cast %431 : vector<8xf32> to vector<8x1xf32>
    %cst_152 = arith.constant 3.200000e+01 : f32
    %433 = vector.broadcast %cst_152 : f32 to vector<8x1xf32>
    %434 = arith.divf %432, %433 : vector<8x1xf32>
    %435 = vector.broadcast %427 : vector<8x1xf32> to vector<8x32xf32>
    %436 = arith.subf %421, %435 : vector<8x32xf32>
    %cst_153 = arith.constant 9.99999974E-6 : f32
    %437 = vector.broadcast %cst_153 : f32 to vector<8x1xf32>
    %438 = arith.addf %434, %437 : vector<8x1xf32>
    %439 = math.rsqrt %438 : vector<8x1xf32>
    %440 = vector.broadcast %439 : vector<8x1xf32> to vector<8x32xf32>
    %441 = arith.mulf %436, %440 : vector<8x32xf32>
    %442 = vector.broadcast %422 : vector<1x32xf32> to vector<8x32xf32>
    %443 = arith.mulf %441, %442 : vector<8x32xf32>
    %444 = vector.broadcast %423 : vector<1x32xf32> to vector<8x32xf32>
    %445 = arith.addf %443, %444 : vector<8x32xf32>
    %c0_154 = arith.constant 0 : index
    %c256_155 = arith.constant 256 : index
    %446 = vector.load %arg12[%c0_154, %c256_155] : memref<97x320xf32, #tpu.memory_space<vmem>>, vector<32x64xf32>
    %cst_156 = arith.constant dense<0.000000e+00> : vector<8x64xf32>
    %447 = tpu.matmul %445, %446, %cst_156 {dimension_numbers = #tpu.dot_dimension_numbers<[1], [0], [0], [1], [0, 0, 1, 1], [], []>} : vector<8x32xf32>, vector<32x64xf32>, vector<8x64xf32> -> vector<8x64xf32>
    %c96_157 = arith.constant 96 : index
    %c256_158 = arith.constant 256 : index
    %448 = vector.load %arg12[%c96_157, %c256_158] : memref<97x320xf32, #tpu.memory_space<vmem>>, vector<1x64xf32>
    %449 = vector.broadcast %448 : vector<1x64xf32> to vector<8x64xf32>
    %450 = arith.addf %447, %449 : vector<8x64xf32>
    %cst_159 = arith.constant 0.000000e+00 : f32
    %451 = vector.broadcast %cst_159 : f32 to vector<8x64xf32>
    %452 = arith.maximumf %450, %451 : vector<8x64xf32>
    %c32_160 = arith.constant 32 : index
    %c0_161 = arith.constant 0 : index
    %453 = vector.load %arg12[%c32_160, %c0_161] : memref<97x320xf32, #tpu.memory_space<vmem>>, vector<64x32xf32>
    %cst_162 = arith.constant dense<0.000000e+00> : vector<8x32xf32>
    %454 = tpu.matmul %452, %453, %cst_162 {dimension_numbers = #tpu.dot_dimension_numbers<[1], [0], [0], [1], [0, 0, 1, 1], [], []>} : vector<8x64xf32>, vector<64x32xf32>, vector<8x32xf32> -> vector<8x32xf32>
    %c6_163 = arith.constant 6 : index
    %c0_164 = arith.constant 0 : index
    %455 = vector.load %arg13[%c6_163, %c0_164] : memref<8x32xf32, #tpu.memory_space<vmem>>, vector<1x32xf32>
    %456 = vector.broadcast %455 : vector<1x32xf32> to vector<8x32xf32>
    %457 = arith.addf %454, %456 : vector<8x32xf32>
    %458 = arith.addf %445, %457 : vector<8x32xf32>
    %c2_165 = arith.constant 2 : index
    %c0_166 = arith.constant 0 : index
    %459 = vector.load %arg13[%c2_165, %c0_166] : memref<8x32xf32, #tpu.memory_space<vmem>>, vector<1x32xf32>
    %c5_167 = arith.constant 5 : index
    %c0_168 = arith.constant 0 : index
    %460 = vector.load %arg13[%c5_167, %c0_168] : memref<8x32xf32, #tpu.memory_space<vmem>>, vector<1x32xf32>
    %cst_169 = arith.constant dense<0.000000e+00> : vector<8xf32>
    %461 = vector.multi_reduction <add>, %458, %cst_169 [1] : vector<8x32xf32> to vector<8xf32>
    %462 = vector.shape_cast %461 : vector<8xf32> to vector<8x1xf32>
    %cst_170 = arith.constant 3.200000e+01 : f32
    %463 = vector.broadcast %cst_170 : f32 to vector<8x1xf32>
    %464 = arith.divf %462, %463 : vector<8x1xf32>
    %465 = vector.broadcast %464 : vector<8x1xf32> to vector<8x32xf32>
    %466 = arith.subf %458, %465 : vector<8x32xf32>
    %467 = arith.mulf %466, %466 : vector<8x32xf32>
    %cst_171 = arith.constant dense<0.000000e+00> : vector<8xf32>
    %468 = vector.multi_reduction <add>, %467, %cst_171 [1] : vector<8x32xf32> to vector<8xf32>
    %469 = vector.shape_cast %468 : vector<8xf32> to vector<8x1xf32>
    %cst_172 = arith.constant 3.200000e+01 : f32
    %470 = vector.broadcast %cst_172 : f32 to vector<8x1xf32>
    %471 = arith.divf %469, %470 : vector<8x1xf32>
    %472 = vector.broadcast %464 : vector<8x1xf32> to vector<8x32xf32>
    %473 = arith.subf %458, %472 : vector<8x32xf32>
    %cst_173 = arith.constant 9.99999974E-6 : f32
    %474 = vector.broadcast %cst_173 : f32 to vector<8x1xf32>
    %475 = arith.addf %471, %474 : vector<8x1xf32>
    %476 = math.rsqrt %475 : vector<8x1xf32>
    %477 = vector.broadcast %476 : vector<8x1xf32> to vector<8x32xf32>
    %478 = arith.mulf %473, %477 : vector<8x32xf32>
    %479 = vector.broadcast %459 : vector<1x32xf32> to vector<8x32xf32>
    %480 = arith.mulf %478, %479 : vector<8x32xf32>
    %481 = vector.broadcast %460 : vector<1x32xf32> to vector<8x32xf32>
    %482 = arith.addf %480, %481 : vector<8x32xf32>
    %c0_174 = arith.constant 0 : index
    %c0_175 = arith.constant 0 : index
    %483 = vector.load %arg14[%c0_174, %c0_175] : memref<33x128xf32, #tpu.memory_space<vmem>>, vector<32x128xf32>
    %cst_176 = arith.constant dense<0.000000e+00> : vector<8x128xf32>
    %484 = tpu.matmul %482, %483, %cst_176 {dimension_numbers = #tpu.dot_dimension_numbers<[1], [0], [0], [1], [0, 0, 1, 1], [], []>} : vector<8x32xf32>, vector<32x128xf32>, vector<8x128xf32> -> vector<8x128xf32>
    %c32_177 = arith.constant 32 : index
    %c0_178 = arith.constant 0 : index
    %485 = vector.load %arg14[%c32_177, %c0_178] : memref<33x128xf32, #tpu.memory_space<vmem>>, vector<1x128xf32>
    %486 = vector.broadcast %485 : vector<1x128xf32> to vector<8x128xf32>
    %487 = arith.addf %484, %486 : vector<8x128xf32>
    %c0_179 = arith.constant 0 : index
    %c0_180 = arith.constant 0 : index
    %c0_181 = arith.constant 0 : index
    %488 = vector.load %arg15[%c0_179, %c0_180, %c0_181] : memref<1x8x128xf32, #tpu.memory_space<vmem>>, vector<1x8x128xf32>
    %489 = vector.shape_cast %488 : vector<1x8x128xf32> to vector<8x128xf32>
    %490 = vector.shape_cast %487 : vector<8x128xf32> to vector<1x8x128xf32>
    tpu.vector_store %arg15[%c0_179, %c0_180, %c0_181], %490 {strides = array<i32>} : memref<1x8x128xf32, #tpu.memory_space<vmem>>, vector<1x8x128xf32>,
    return
  }
  func.func @transform_0(%arg0: i32) -> (i32, i32, i32) {
    %c0_i32 = arith.constant 0 : i32
    %c0_i32_0 = arith.constant 0 : i32
    %c0_i32_1 = arith.constant 0 : i32
    return %arg0, %c0_i32, %c0_i32_0 : i32, i32, i32
  }
  func.func @transform_1(%arg0: i32) -> (i32, i32, i32) {
    %c0_i32 = arith.constant 0 : i32
    %c0_i32_0 = arith.constant 0 : i32
    %c0_i32_1 = arith.constant 0 : i32
    return %arg0, %c0_i32, %c0_i32_0 : i32, i32, i32
  }
  func.func @transform_2(%arg0: i32) -> (i32, i32, i32) {
    %c0_i32 = arith.constant 0 : i32
    %c0_i32_0 = arith.constant 0 : i32
    %c0_i32_1 = arith.constant 0 : i32
    return %arg0, %c0_i32, %c0_i32_0 : i32, i32, i32
  }
  func.func @transform_3(%arg0: i32) -> (i32, i32) {
    %c0_i32 = arith.constant 0 : i32
    %c0_i32_0 = arith.constant 0 : i32
    %c0_i32_1 = arith.constant 0 : i32
    return %c0_i32, %c0_i32_0 : i32, i32
  }
  func.func @transform_4(%arg0: i32) -> (i32, i32, i32) {
    %c0_i32 = arith.constant 0 : i32
    %c0_i32_0 = arith.constant 0 : i32
    %c0_i32_1 = arith.constant 0 : i32
    return %arg0, %c0_i32, %c0_i32_0 : i32, i32, i32
  }
  func.func @transform_5(%arg0: i32) -> (i32, i32, i32) {
    %c0_i32 = arith.constant 0 : i32
    %c0_i32_0 = arith.constant 0 : i32
    %c0_i32_1 = arith.constant 0 : i32
    return %arg0, %c0_i32, %c0_i32_0 : i32, i32, i32
  }
  func.func @transform_6(%arg0: i32) -> (i32, i32, i32) {
    %c0_i32 = arith.constant 0 : i32
    %c0_i32_0 = arith.constant 0 : i32
    %c0_i32_1 = arith.constant 0 : i32
    return %arg0, %c0_i32, %c0_i32_0 : i32, i32, i32
  }
  func.func @transform_7(%arg0: i32) -> (i32, i32) {
    %c0_i32 = arith.constant 0 : i32
    %c0_i32_0 = arith.constant 0 : i32
    %c0_i32_1 = arith.constant 0 : i32
    return %c0_i32, %c0_i32_0 : i32, i32
  }
  func.func @transform_8(%arg0: i32) -> (i32, i32) {
    %c0_i32 = arith.constant 0 : i32
    %c0_i32_0 = arith.constant 0 : i32
    %c0_i32_1 = arith.constant 0 : i32
    return %c0_i32, %c0_i32_0 : i32, i32
  }
  func.func @transform_9(%arg0: i32) -> (i32, i32) {
    %c0_i32 = arith.constant 0 : i32
    %c0_i32_0 = arith.constant 0 : i32
    %c0_i32_1 = arith.constant 0 : i32
    return %c0_i32, %c0_i32_0 : i32, i32
  }
  func.func @transform_10(%arg0: i32) -> (i32, i32) {
    %c0_i32 = arith.constant 0 : i32
    %c0_i32_0 = arith.constant 0 : i32
    %c0_i32_1 = arith.constant 0 : i32
    return %c0_i32, %c0_i32_0 : i32, i32
  }
  func.func @transform_11(%arg0: i32) -> (i32, i32) {
    %c0_i32 = arith.constant 0 : i32
    %c0_i32_0 = arith.constant 0 : i32
    %c0_i32_1 = arith.constant 0 : i32
    return %c0_i32, %c0_i32_0 : i32, i32
  }
  func.func @transform_12(%arg0: i32) -> (i32, i32) {
    %c0_i32 = arith.constant 0 : i32
    %c0_i32_0 = arith.constant 0 : i32
    %c0_i32_1 = arith.constant 0 : i32
    return %c0_i32, %c0_i32_0 : i32, i32
  }
  func.func @transform_13(%arg0: i32) -> (i32, i32) {
    %c0_i32 = arith.constant 0 : i32
    %c0_i32_0 = arith.constant 0 : i32
    %c0_i32_1 = arith.constant 0 : i32
    return %c0_i32, %c0_i32_0 : i32, i32
  }
  func.func @transform_14(%arg0: i32) -> (i32, i32, i32) {
    %c0_i32 = arith.constant 0 : i32
    %c0_i32_0 = arith.constant 0 : i32
    %c0_i32_1 = arith.constant 0 : i32
    return %arg0, %c0_i32, %c0_i32_0 : i32, i32, i32
  }
}

</mosaic_0001>

<bundles_post_ra>
// kernel: transformer_forward.1
= control target key start
LH: loop header
LB: loop body
LE: loop exit
PB: predicated region body
PF: predicated region fallthrough
CT: control target
= control target key end

     0   :  { %s6735_s0 = inlined_call_operand.vmem [shape: f32[2,8,32], index: 0, kind: input, shape index: {}]   ;;  %s6736_s1 = inlined_call_operand.vmem [shape: f32[2,8,32], index: 1, kind: input, shape index: {}]   ;;  %s6737_s2 = inlined_call_operand.vmem [shape: f32[2,8,32], index: 2, kind: input, shape index: {}]   ;;  %s6738_s3 = inlined_call_operand.vmem [shape: f32[64,32], index: 3, kind: input, shape index: {}]   ;;  %s6739_s4 = inlined_call_operand.vmem [shape: f32[2,8,1], index: 4, kind: input, shape index: {}]   ;;  %s6740_s5 = inlined_call_operand.vmem [shape: f32[2,1,8], index: 5, kind: input, shape index: {}]   ;;  %s6741_s6 = inlined_call_operand.vmem [shape: f32[2,1,8], index: 6, kind: input, shape index: {}]   ;;  %s6742_s7 = inlined_call_operand.vmem [shape: f32[8,8], index: 7, kind: input, shape index: {}]   ;;  %s6743_s8 = inlined_call_operand.vmem [shape: f32[16,32], index: 8, kind: input, shape index: {}]   ;;  %s6744_s9 = inlined_call_operand.vmem [shape: f32[97,320], index: 9, kind: input, shape index: {}]   ;;  %s6745_s10 = inlined_call_operand.vmem [shape: f32[8,32], index: 10, kind: input, shape index: {}]   ;;  %s6746_s11 = inlined_call_operand.vmem [shape: f32[97,320], index: 11, kind: input, shape index: {}]   ;;  %s6747_s12 = inlined_call_operand.vmem [shape: f32[8,32], index: 12, kind: input, shape index: {}]   ;;  %s6748_s13 = inlined_call_operand.vmem [shape: f32[33,128], index: 13, kind: input, shape index: {}]   ;;  %s6749_s14 = inlined_call_operand.hbm [shape: f32[2,8,128], index: 14, kind: output, shape index: {}]  }
   0x1   :  { %6772 = sst [smem:[#allocation9_spill]] %s6735_s0 }
   0x2   :  { %6773 = sst [smem:[#allocation10_spill]] %s6736_s1 }
   0x3   :  { %6774 = sst [smem:[#allocation11_spill]] %s6739_s4 }
   0x4   :  { %6775 = sst [smem:[#allocation12_spill]] %s6740_s5 }
   0x5   :  { %6776 = sst [smem:[#allocation13_spill]] %s6741_s6 }
   0x6   :  { %6777 = sst [smem:[#allocation14_spill]] %s6743_s8 }
   0x7   :  { %19 = vsyncpa [#allocation3], 0 }
   0x8   :  { %21 = vsyncpa [#allocation3 + $0x1], 0  ;;  %s5795_s29 = smov 0   ;;  %s5797_s30 = smov 0  }
   0x9   :  { %s5799_s15 = smov 0   ;;  %s5801_s16 = smov 0  }
   0xa LB: > { %6778 = sst [smem:[#allocation5_spill]] %s5700_s15  ;;  %s5816_s17 = sadd.s32 4294967295, %s5704_s16   ;;  %s5704_s16 = sphi %s5801_s16, %s6800_s16   ;;  %s5700_s15 = sphi %s5799_s15, %s6802_s15   ;;  %s5696_s30 = sphi %s5797_s30, %s6804_s30   ;;  %s5692_s29 = sphi %s5795_s29, %s6803_s29  }
   0xb   : > { %s4905_s18 = sadd.s32 4294967294, %s5704_s16   ;;  %s5820_s19 = sadd.s32 1, %s5704_s16  }
   0xc   : > { %6779 = sst [smem:[#allocation6_spill]] %s5820_s19  ;;  %s358_s20 = sadd.s32 1, %s5700_s15 }
   0xd   : > { %s355_s21 = ssub.s32 %s5704_s16, %s5820_s19  ;;  %p368_p0 = scmp.ne.s32.totalorder %s5700_s15, %s5696_s30 }
   0xe   : > { %p356_p1 = scmp.eq.s32.totalorder %s355_s21, 0  ;;  %p369_p2 = scmp.eq.s32.totalorder %s5816_s17, 1 }
   0xf   : > { %p374_p3 = scmp.ne.s32.totalorder %s5696_s30, %s5692_s29  ;;  %p375_p4 = scmp.eq.s32.totalorder %s4905_s18, 1 }
  0x10   : > { %s5831_s22 = scalar_select %p356_p1, %s5700_s15, %s358_s20  }
  0x11   : > { %p5833_p5 = por %p369_p2, %p368_p0  ;;  %p5837_p6 = por %p375_p4, %p374_p3 }
  0x12   : > { %6780 = sst [smem:[#allocation7_spill]] %s5831_s22  ;;  %p4908_p7 = scmp.ge.s32.totalorder %s5704_s16, 1 }
  0x13   : > { %s6782_s24 = scalar_select %p5837_p6, 1, 0 }
  0x14   : > { %p457_p8 = scmp.lt.s32.totalorder %s5704_s16, 3 }
  0x15   : > { %6783 = sst [smem:[#allocation8_spill]] %s6782_s24 }
  0x16   : > { %p458_p9 = pnand %p4908_p7, %p457_p8 }
  0x17   : > { %p520_p10 = scmp.lt.s32.totalorder (!%p458_p9), %s5816_s17, 1  ;;  %s6784_s0 = sld [smem:[#allocation9_spill]] (!%p458_p9) }
  0x18   : > { %461 = sbr.rel (%p458_p9) target bundleno = 7762 (0x1e52), region = 76  ;;  %s6753_s26 = smov (!%p458_p9), 104  }
  0x19   : > { %s6765_s27 = smov (!%p458_p9), 120   ;;  %s6767_s28 = smov (!%p458_p9), 96  }
  0x1a   : > { %s6785_s5 = sld [smem:[#allocation12_spill]] (!%p458_p9)  ;;  %s6751_s21 = smov (!%p458_p9), 64  }
  0x1b   : > { %s6761_s15 = smov (!%p458_p9), 32   ;;  %s6786_s1 = sld [smem:[#allocation10_spill]] (!%p458_p9) }
  0x1c   : > { %s6787_s4 = sld [smem:[#allocation11_spill]] (!%p458_p9) }
  0x1d   : > { %v5846_v0 = vld [vmem:[%s6744_s9 + $0x48] sm:$0xff]  ;;  %v5706_v1 = vmov 0.0   ;;  %v5853_v2 = vld [vmem:[%s6744_s9 + $0x30] sm:$0xff]  ;;  %vm5707_vm0 = vmmov 0   ;;  %s5859_s18 = scalar_select %p520_p10, %s5816_s17, 1  ;;  %v5866_v3 = vld [vmem:[%s6744_s9 + $0x18] sm:$0xff]  ;;  %v968_v20 = vlaneseq }
  0x1e   : > { %5157 = vmatprep.subr.mxu0 %v5706_v1  ;;  %5165 = vmatprep.mubr.msk.f32.mxu0 %vm5707_vm0, %v5706_v1  ;;  %v5878_v4 = vld [vmem:[%s6744_s9] sm:$0xff]  ;;  %vm578_vm1 = vcmask 261120   ;;  %vm566_vm2 = vcmask 64512   ;;  %v5712_v24 = vmov -1e+09   ;;  %vm1338_vm4 = vcmask 130048  }
  0x1f   : > { %5158 = vmatpush3.msra.mxu0 %v5846_v0  ;;  %5168 = vmatprep.subr.mxu1 %v5706_v1  ;;  %s5872_s25 = sshll.u32 %s5859_s18, 3  ;;  %v5888_v6 = vld [vmem:[%s6738_s3] sm:$0xff]  ;;  %v5952_v22 = vshrl.u32 %v968_v20, 7  ;;  %vm1340_vm5 = vcmask 195584   ;;  %s6788_s8 = sld [smem:[#allocation14_spill]]  ;;  %vm2559_vm7 = vcmask 523264  }
  0x20   : > { %5159 = vmatprep.subr.mxu0 %v5706_v1  ;;  %5170 = vmatprep.mubr.msk.f32.mxu1 %vm5707_vm0, %v5706_v1  ;;  %s523_s20 = scalar_lea.vmem %s6784_s0, %s5872_s25  ;;  %v5903_v9 = vld [vmem:[%s6744_s9 + $0x120] ss:$0 sm:$0xff]  ;;  %s538_s22 = scalar_lea.vmem %s6785_s5, %s5859_s18 }
  0x21   : > { %5160 = vmatpush3.msra.mxu0 %v5853_v2  ;;  %v542_v5 = vld [vmem:[%s523_s20] sm:$0xff]  ;;  %s6763_s20 = smov 112   ;;  %v970_v23 = vsub.s32 0, %v5952_v22  ;;  %s6792_s6 = sld [smem:[#allocation13_spill]] }
  0x22   : > { %5161 = vmatprep.subr.mxu0 %v5706_v1  ;;  %v543_v7 = vmul.f32 5.656854, %v542_v5  ;;  %v562_v21 = vld [vmem:[%s538_s22] sm:$0x1]  ;;  %s6759_s22 = smov 8   ;;  %s531_s19 = scalar_lea.vmem %s6737_s2, %s5872_s25 }
  0x23   : > { %5162 = vmatpush3.msra.mxu0 %v5866_v3  ;;  %vm563_vm3 = vcmp.gt.f32.partialorder %v562_v21, 0.0  ;;  %s6797_s0 = smov 96   ;;  %s6798_s5 = smov 64  }
  0x24   : > { %5163 = vmatprep.subr.mxu0 %v5706_v1  ;;  %v5893_v8 = vadd.f32 %v5888_v6, %v543_v7  ;;  %v564_v25 = vsel %vm563_vm3, 0.0, %v5712_v24 }
  0x25   : > { %5164 = vmatpush3.msra.mxu0 %v5878_v4  ;;  %v5958_v26 = vrot.slane %v564_v25, %v970_v23 }
  0x26   : > { %5188 = vmatprep.subr.mxu0 %v5706_v1  ;;  %5166 = vmatmul.mubr.msk.f32.vlgmr.msra.gmra.mxu0 %vm578_vm1, %v5893_v8 }
  0x27   : > { %5190 = vmatprep.mubr.msk.f32.mxu0 %vm5707_vm0, %v5706_v1 }
  0xe6   : > { %v648_v10 = vpop.f32.mrf.mxu0 }
  0xe7   : > { %v5906_v11 = vadd.f32 %v648_v10, %v5903_v9 }
  0xe8   : > { %v5167_v12 = vpop.f32.mrf.mxu0 }
  0xe9   : > { %657 = vrot.lane.b32.xlu1 %v5906_v11, %s6753_s26  ;;  %653 = vrot.lane.b32.xlu0 %v5906_v11, %s6765_s27  ;;  %s6755_s26 = smov 24   ;;  %s6791_s27 = smov 104  }
  0xed   : > { %659 = vrot.lane.b32.xlu1 %v5906_v11, %s6767_s28  ;;  %655 = vrot.lane.b32.xlu0 %v5906_v11, %s6763_s20  ;;  %s6794_s20 = smov 8  }
 0x15b   : > { %v5916_v13 = vpop.permute.xlu1 %657  ;;  %v654_v14 = vpop.permute.xlu0 %653 }
 0x15c   : > { %735 = vrot.lane.b32.xlu0 %v654_v14, %s6767_s28 }
 0x15f   : > { %v660_v15 = vpop.permute.xlu1 %659  ;;  %v5919_v16 = vpop.permute.xlu0 %655 }
 0x160   : > { %5169 = vmatpush3.xpose.msk.msra.mxu1 %vm566_vm2, %v660_v15  ;;  %887 = vrot.lane.b32.xlu0 %v5916_v13, %s6767_s28 }
 0x161   : > { %811 = vrot.lane.b32.xlu1 %v5919_v16, %s6767_s28  ;;  %5173 = vmatprep.subr.mxu1 %v5706_v1 }
 0x163   : > { %5171 = vmatmul.mubr.msk.f32.vlgmr.msra.gmra.mxu1 %vm566_vm2, %v5906_v11 }
 0x164   : > { %5175 = vmatprep.mubr.msk.f32.mxu1 %vm5707_vm0, %v5706_v1 }
 0x1ce   : > { %v736_v17 = vpop.permute.xlu0 %735 }
 0x1cf   : > { %5174 = vmatpush3.xpose.msk.msra.mxu1 %vm566_vm2, %v736_v17 }
 0x1d0   : > { %5178 = vmatprep.subr.mxu1 %v5706_v1 }
 0x1d2   : > { %5176 = vmatmul.mubr.msk.f32.vlgmr.msra.gmra.mxu1 %vm566_vm2, %v654_v14  ;;  %v888_v19 = vpop.permute.xlu0 %887 }
 0x1d3   : > { %v812_v18 = vpop.permute.xlu1 %811  ;;  %5180 = vmatprep.mubr.msk.f32.mxu1 %vm5707_vm0, %v5706_v1 }
 0x1d4   : > { %5179 = vmatpush3.xpose.msk.msra.mxu1 %vm566_vm2, %v812_v18 }
 0x1d5   : > { %5183 = vmatprep.subr.mxu1 %v5706_v1 }
 0x1d7   : > { %5181 = vmatmul.mubr.msk.f32.vlgmr.msra.gmra.mxu1 %vm566_vm2, %v5919_v16 }
 0x1d8   : > { %5184 = vmatpush3.xpose.msk.msra.mxu1 %vm566_vm2, %v888_v19  ;;  %5185 = vmatprep.mubr.msk.f32.mxu1 %vm5707_vm0, %v5706_v1 }
 0x1d9   : > { %5193 = vmatprep.subr.mxu1 %v5706_v1 }
 0x1db   : > { %5186 = vmatmul.mubr.msk.f32.vlgmr.msra.gmra.mxu1 %vm566_vm2, %v5916_v13 }
 0x1dc   : > { %5195 = vmatprep.mubr.msk.f32.mxu1 %vm5707_vm0, %v5706_v1 }
 0x223   : > { %v731_v27 = vpop.f32.mrf.mxu1 }
 0x224   : > { %v963_v28 = vmul.f32 0.35355338, %v731_v27 }
 0x225   : > { %v5172_v29 = vpop.f32.mrf.mxu1 }
 0x226   : > { %v973_v30 = vadd.f32 %v5958_v26, %v963_v28 }
 0x228   : > { %v977_v31 = vsel %vm566_vm2, %v973_v30, -inf }
 0x229   : > { %978 = vmax.xlane.f32.xlu1 %v977_v31 }
 0x292   : > { %v807_v32 = vpop.f32.mrf.mxu1 }
 0x293   : > { %v964_v33 = vmul.f32 0.35355338, %v807_v32 }
 0x294   : > { %v5177_v34 = vpop.f32.mrf.mxu1 }
 0x295   : > { %v974_v35 = vadd.f32 %v5958_v26, %v964_v33 }
 0x297   : > { %v883_v36 = vpop.f32.mrf.mxu1  ;;  %v980_v37 = vsel %vm566_vm2, %v974_v35, -inf }
 0x298   : > { %v965_v38 = vmul.f32 0.35355338, %v883_v36  ;;  %981 = vmax.xlane.f32.xlu0 %v980_v37 }
 0x299   : > { %v5182_v39 = vpop.f32.mrf.mxu1 }
 0x29a   : > { %v975_v40 = vadd.f32 %v5958_v26, %v965_v38 }
 0x29b   : > { %v959_v41 = vpop.f32.mrf.mxu1 }
 0x29c   : > { %v966_v42 = vmul.f32 0.35355338, %v959_v41  ;;  %v983_v43 = vsel %vm566_vm2, %v975_v40, -inf }
 0x29d   : > { %984 = vmax.xlane.f32.xlu0 %v983_v43  ;;  %v5187_v44 = vpop.f32.mrf.mxu1 }
 0x29e   : > { %v976_v45 = vadd.f32 %v5958_v26, %v966_v42 }
 0x2a0   : > { %v986_v46 = vsel %vm566_vm2, %v976_v45, -inf }
 0x2a1   : > { %987 = vmax.xlane.f32.xlu1 %v986_v46 }
 0x2b2   : > { %1097 = vrot.lane.b32.xlu1 %v654_v14, %s6751_s21  ;;  %v979_v47 = vpop.xlane.xlu1 %978 }
 0x2b3   : > { %1021 = vrot.lane.b32.xlu0 %v5906_v11, %s6751_s21  ;;  %v989_v48 = vsub.f32 %v973_v30, %v979_v47 }
 0x2b5   : > { %v993_v49 = vmul.f32 1.442695, %v989_v48 }
 0x2b7   : > { %5567 = vpow2.f32 %v993_v49 }
 0x2c4   : > { %v5568_v50 = vpop.eup %5567 }
 0x2c5   : > { %v1001_v51 = vsel %vm566_vm2, %v5568_v50, 0.0 }
 0x2d2   : > { %1002 = vadd.xlane.f32.xlu0 %v1001_v51  ;;  %v5718_v51 = vmov 0  }
 0x2d3   : > { %5566 = vset.pattern.permute.xlu0 %v5718_v51 }
 0x321   : > { %v982_v52 = vpop.xlane.xlu0 %981 }
 0x322   : > { %v990_v53 = vsub.f32 %v974_v35, %v982_v52  ;;  %v6037_v52 = vld [vmem:[%s6744_s9 + $0x20] sm:$0xff] }
 0x324   : > { %v995_v54 = vmul.f32 1.442695, %v990_v53  ;;  %v6044_v53 = vld [vmem:[%s6744_s9 + $0x8] sm:$0xff] }
 0x326   : > { %5569 = vpow2.f32 %v995_v54  ;;  %v985_v55 = vpop.xlane.xlu0 %984 }
 0x327   : > { %v991_v56 = vsub.f32 %v975_v40, %v985_v55 }
 0x329   : > { %v997_v57 = vmul.f32 1.442695, %v991_v56 }
 0x32a   : > { %v988_v58 = vpop.xlane.xlu1 %987  ;;  %v1022_v59 = vpop.permute.xlu0 %1021 }
 0x32b   : > { %5571 = vpow2.f32 %v997_v57  ;;  %v992_v60 = vsub.f32 %v976_v45, %v988_v58  ;;  %5189 = vmatpush3.msra.mxu0 %v1022_v59 }
 0x32c   : > { %5198 = vmatprep.subr.mxu0 %v5706_v1 }
 0x32d   : > { %v999_v61 = vmul.f32 1.442695, %v992_v60 }
 0x32e   : > { %v1098_v62 = vpop.permute.xlu1 %1097 }
 0x32f   : > { %5573 = vpow2.f32 %v999_v61  ;;  %5194 = vmatpush3.msra.mxu1 %v1098_v62 }
 0x330   : > { %5203 = vmatprep.subr.mxu1 %v5706_v1 }
 0x333   : > { %v5570_v63 = vpop.eup %5569 }
 0x334   : > { %v1004_v5 = vsel %vm566_vm2, %v5570_v63, 0.0 }
 0x335   : > { %1005 = vadd.xlane.f32.xlu1 %v1004_v5 }
 0x338   : > { %v5572_v7 = vpop.eup %5571 }
 0x339   : > { %v1007_v10 = vsel %vm566_vm2, %v5572_v7, 0.0 }
 0x33a   : > { %1008 = vadd.xlane.f32.xlu0 %v1007_v10 }
 0x33c   : > { %v5574_v11 = vpop.eup %5573 }
 0x33d   : > { %v1010_v12 = vsel %vm566_vm2, %v5574_v11, 0.0 }
 0x33e   : > { %1011 = vadd.xlane.f32.xlu1 %v1010_v12 }
 0x34f   : > { %1173 = vrot.lane.b32.xlu1 %v5919_v16, %s6751_s21 }
 0x350   : > { %1249 = vrot.lane.b32.xlu0 %v5916_v13, %s6751_s21  ;;  %s6757_s21 = smov 16  }
 0x353   : > { %1352 = vrot.lane.b32.xlu1 %v5846_v0, %s6761_s15 }
 0x354   : > { %1350 = vrot.lane.b32.xlu0 %v5853_v2, %s6761_s15 }
 0x358   : > { %1348 = vrot.lane.b32.xlu0 %v5866_v3, %s6761_s15 }
 0x35b   : > { %v1003_v14 = vpop.xlane.xlu0 %1002 }
 0x35c   : > { %5575 = vrcp.f32 %v1003_v14 }
 0x369   : > { %v5576_v15 = vpop.eup %5575 }
 0x36a   : > { %v1017_v17 = vmul.f32 %v5576_v15, %v5568_v50  ;;  %v6020_v50 = vld [vmem:[%s6744_s9 + $0x50] sm:$0xff] }
 0x36c   : > { %5191 = vmatmul.mubr.msk.f32.vlgmr.msra.gmra.mxu0 %vm566_vm2, %v1017_v17  ;;  %v560_v17 = vld [vmem:[%s6788_s8 + $0x8] sm:$0xff] }
 0x36d   : > { %5200 = vmatprep.mubr.msk.f32.mxu0 %vm5707_vm0, %v5706_v1 }
 0x3be   : > { %v1006_v13 = vpop.xlane.xlu1 %1005 }
 0x3bf   : > { %5577 = vrcp.f32 %v1006_v13 }
 0x3c3   : > { %v1009_v16 = vpop.xlane.xlu0 %1008 }
 0x3c4   : > { %5579 = vrcp.f32 %v1009_v16 }
 0x3c7   : > { %v1012_v18 = vpop.xlane.xlu1 %1011  ;;  %v1250_v25 = vpop.permute.xlu0 %1249 }
 0x3c8   : > { %5581 = vrcp.f32 %v1012_v18 }
 0x3cb   : > { %v1174_v19 = vpop.permute.xlu1 %1173  ;;  %v1351_v31 = vpop.permute.xlu0 %1350 }
 0x3cc   : > { %v5578_v20 = vpop.eup %5577  ;;  %5199 = vmatpush3.msra.mxu0 %v1174_v19 }
 0x3cd   : > { %v1018_v21 = vmul.f32 %v5578_v20, %v5570_v63  ;;  %5208 = vmatprep.subr.mxu0 %v5706_v1  ;;  %v4928_v20 = vld [vmem:[%s6745_s10] ss:$0 sm:$0xff] }
 0x3cf   : > { %5196 = vmatmul.mubr.msk.f32.vlgmr.msra.gmra.mxu1 %vm566_vm2, %v1018_v21  ;;  %v1353_v28 = vpop.permute.xlu1 %1352  ;;  %v1349_v32 = vpop.permute.xlu0 %1348 }
 0x3d0   : > { %5204 = vmatpush3.msra.mxu1 %v1250_v25  ;;  %5205 = vmatprep.mubr.msk.f32.mxu1 %vm5707_vm0, %v5706_v1  ;;  %v4929_v25 = vld [vmem:[%s6745_s10 + $0x3] ss:$0 sm:$0xff] }
 0x3d1   : > { %v5580_v0 = vpop.eup %5579  ;;  %5219 = vmatprep.subr.mxu1 %v5706_v1 }
 0x3d2   : > { %v1019_v2 = vmul.f32 %v5580_v0, %v5572_v7 }
 0x3d4   : > { %5201 = vmatmul.mubr.msk.f32.vlgmr.msra.gmra.mxu0 %vm566_vm2, %v1019_v2 }
 0x3d5   : > { %v5582_v3 = vpop.eup %5581  ;;  %5216 = vmatprep.mubr.msk.f32.mxu0 %vm5707_vm0, %v5706_v1  ;;  %5209 = vmatpush3.msra.mxu0 %v1353_v28 }
 0x3d6   : > { %v1020_v27 = vmul.f32 %v5582_v3, %v5574_v11  ;;  %5210 = vmatprep.subr.mxu0 %v5706_v1  ;;  %v6068_v11 = vld [vmem:[%s6744_s9 + $0x128] ss:$0 sm:$0xff] }
 0x3d7   : > { %5211 = vmatpush3.msra.mxu0 %v1351_v31 }
 0x3d8   : > { %5206 = vmatmul.mubr.msk.f32.vlgmr.msra.gmra.mxu1 %vm566_vm2, %v1020_v27  ;;  %5212 = vmatprep.subr.mxu0 %v5706_v1 }
 0x3d9   : > { %5227 = vmatprep.mubr.msk.f32.mxu1 %vm5707_vm0, %v5706_v1  ;;  %5213 = vmatpush3.msra.mxu0 %v1349_v32 }
 0x3da   : > { %5214 = vmatprep.subr.mxu0 %v5706_v1  ;;  %5220 = vmatpush3.msra.mxu1 %v6020_v50 }
 0x3db   : > { %5221 = vmatprep.subr.mxu1 %v5706_v1 }
 0x42c   : > { %v1093_v29 = vpop.f32.mrf.mxu0 }
 0x42e   : > { %v5192_v30 = vpop.f32.mrf.mxu0 }
 0x48f   : > { %v1169_v33 = vpop.f32.mrf.mxu1 }
 0x490   : > { %1326 = vrot.lane.b32.xlu1 %v1169_v33, %s6759_s22  ;;  %s541_s22 = scalar_lea.vmem %s6792_s6, %s5859_s18  ;;  %s6793_s18 = smov 32  }
 0x491   : > { %v5197_v34 = vpop.f32.mrf.mxu1 }
 0x494   : > { %v1245_v35 = vpop.f32.mrf.mxu0 }
 0x495   : > { %1330 = vrot.lane.b32.xlu1 %v1245_v35, %s6757_s21  ;;  %s535_s21 = scalar_lea.vmem %s6787_s4, %s5872_s25 }
 0x496   : > { %v5202_v36 = vpop.f32.mrf.mxu0  ;;  %v552_v5 = vld [vmem:[%s535_s21] sm:$0xff]  ;;  %s6790_s21 = smov 112  }
 0x498   : > { %v1321_v37 = vpop.f32.mrf.mxu1 }
 0x499   : > { %1334 = vrot.lane.b32.xlu0 %v1321_v37, %s6755_s26  ;;  %1346 = vrot.lane.b32.xlu1 %v5878_v4, %s6761_s15  ;;  %s6789_s26 = smov 120  }
 0x49a   : > { %v5207_v38 = vpop.f32.mrf.mxu1 }
 0x49d   : > { %1359 = vrot.lane.b32.xlu0 %v5903_v9, %s6761_s15  ;;  %s527_s15 = scalar_lea.vmem %s6786_s1, %s5872_s25 }
 0x49e   : > { %v546_v62 = vld [vmem:[%s527_s15] sm:$0xff]  ;;  %s6795_s15 = smov 16  }
 0x49f   : > { %v547_v63 = vmul.f32 5.656854, %v546_v62 }
 0x4a1   : > { %v548_v10 = vadd.f32 %v547_v63, %v5888_v6  ;;  %v553_v6 = vld [vmem:[%s6788_s8] sm:$0xff] }
 0x502   : > { %v1327_v39 = vpop.permute.xlu1 %1326 }
 0x503   : > { %v1337_v41 = vsel %vm566_vm2, %v1093_v29, %v1327_v39 }
 0x507   : > { %v1331_v40 = vpop.permute.xlu1 %1330 }
 0x508   : > { %v1339_v42 = vsel %vm1338_vm4, %v1337_v41, %v1331_v40 }
 0x50b   : > { %v1335_v43 = vpop.permute.xlu0 %1334  ;;  %v1347_v44 = vpop.permute.xlu1 %1346 }
 0x50c   : > { %v1341_v45 = vsel %vm1340_vm5, %v1339_v42, %v1335_v43  ;;  %5215 = vmatpush3.msra.mxu0 %v1347_v44  ;;  %v565_v43 = vld [vmem:[%s541_s22] sm:$0x1]  ;;  %s6796_s22 = smov 24  }
 0x50d   : > { %5217 = vmatmul.mubr.msk.f32.vlgmr.msra.gmra.mxu0 %vm578_vm1, %v1341_v45  ;;  %v567_v44 = vsel %vm566_vm2, %v565_v43, 1.0 }
 0x50e   : > { %5238 = vmatprep.mubr.msk.f32.mxu0 %vm578_vm1, %v548_v10  ;;  %vm568_vm6 = vcmp.gt.f32.partialorder %v567_v44, 0.0 }
 0x50f   : > { %v1360_v4 = vpop.permute.xlu0 %1359  ;;  %v569_v45 = vsel %vm568_vm6, 0.0, %v5712_v24 }
 0x5cd   : > { %v1431_v46 = vpop.f32.mrf.mxu0 }
 0x5ce   : > { %v1432_v47 = vadd.f32 %v1431_v46, %v1360_v4  ;;  %v1973_v4 = vrot.slane %v569_v45, %v970_v23 }
 0x5cf   : > { %v5218_v48 = vpop.f32.mrf.mxu0 }
 0x5d0   : > { %v1435_v9 = vadd.f32 %v1432_v47, %v5893_v8  ;;  %v6029_v8 = vld [vmem:[%s6744_s9 + $0x38] sm:$0xff] }
 0x5d1   : > { %5222 = vmatpush3.msra.mxu1 %v6029_v8 }
 0x5d2   : > { %v1438_v49 = vsel %vm578_vm1, %v1435_v9, 0.0  ;;  %5223 = vmatprep.subr.mxu1 %v5706_v1 }
 0x5d3   : > { %1439 = vadd.xlane.f32.xlu1 %v1438_v49  ;;  %5224 = vmatpush3.msra.mxu1 %v6037_v52 }
 0x5d4   : > { %5225 = vmatprep.subr.mxu1 %v5706_v1 }
 0x5d5   : > { %5226 = vmatpush3.msra.mxu1 %v6044_v53 }
 0x5d6   : > { %5241 = vmatprep.subr.mxu1 %v5706_v1 }
 0x5e4   : > { %1550 = vrot.lane.b32.xlu1 %v6020_v50, %s6767_s28 }
 0x5e8   : > { %1548 = vrot.lane.b32.xlu1 %v6029_v8, %s6767_s28 }
 0x5ec   : > { %1546 = vrot.lane.b32.xlu1 %v6037_v52, %s6767_s28 }
 0x5f0   : > { %1544 = vrot.lane.b32.xlu1 %v6044_v53, %s6767_s28 }
 0x5f4   : > { %1557 = vrot.lane.b32.xlu1 %v6068_v11, %s6767_s28 }
 0x65c   : > { %v1440_v54 = vpop.xlane.xlu1 %1439 }
 0x65d   : > { %v1442_v55 = vmul.f32 0.03125, %v1440_v54 }
 0x65f   : > { %v1443_v56 = vsub.f32 %v1435_v9, %v1442_v55 }
 0x660   : > { %v1551_v57 = vpop.permute.xlu1 %1550 }
 0x661   : > { %v1444_v58 = vmul.f32 %v1443_v56, %v1443_v56  ;;  %5230 = vmatprep.subr.mxu0 %v1551_v57 }
 0x662   : > { %5231 = vmatpush3.msra.mxu0 %v1551_v57 }
 0x663   : > { %v1445_v59 = vsel %vm578_vm1, %v1444_v58, 0.0 }
 0x664   : > { %1446 = vadd.xlane.f32.xlu0 %v1445_v59  ;;  %v1549_v60 = vpop.permute.xlu1 %1548 }
 0x665   : > { %5232 = vmatprep.subr.mxu0 %v1549_v60 }
 0x666   : > { %5233 = vmatpush3.msra.mxu0 %v1549_v60 }
 0x668   : > { %v1547_v61 = vpop.permute.xlu1 %1546 }
 0x669   : > { %5234 = vmatprep.subr.mxu0 %v1547_v61 }
 0x66a   : > { %5235 = vmatpush3.msra.mxu0 %v1547_v61 }
 0x66c   : > { %v1545_v7 = vpop.permute.xlu1 %1544 }
 0x66d   : > { %5236 = vmatprep.subr.mxu0 %v1545_v7 }
 0x66e   : > { %5237 = vmatpush3.msra.mxu0 %v1545_v7 }
 0x66f   : > { %5248 = vmatprep.subr.mxu0 %v5706_v1 }
 0x670   : > { %v1558_v3 = vpop.permute.xlu1 %1557 }
 0x67a   : > { %556 = vperm.xlu0 %5566, %v552_v5  }
 0x6ed   : > { %v1447_v12 = vpop.xlane.xlu0 %1446 }
 0x6ee   : > { %v1448_v14 = vmul.f32 0.03125, %v1447_v12 }
 0x6f0   : > { %v1449_v15 = vadd.f32 1e-05, %v1448_v14 }
 0x6f2   : > { %5583 = vrsqrt.f32 %v1449_v15 }
 0x6f5   : > { %v557_v13 = vpop.permute.xlu0 %556 }
 0x6f6   : > { %v559_v16 = vmul.f32 %v557_v13, %v553_v6 }
 0x6f8   : > { %v561_v18 = vadd.f32 %v560_v17, %v559_v16 }
 0x6fa   : > { %5239 = vmatmul.mubr.msk.f32.vlgmr.msra.gmra.mxu0 %vm578_vm1, %v561_v18 }
 0x6fb   : > { %5252 = vmatprep.mubr.msk.f32.mxu0 %vm5707_vm0, %v5706_v1 }
 0x6ff   : > { %v5584_v19 = vpop.eup %5583 }
 0x700   : > { %v1451_v21 = vmul.f32 %v5584_v19, %v1443_v56 }
 0x702   : > { %v1456_v0 = vmul.f32 %v4928_v20, %v1451_v21 }
 0x704   : > { %v6087_v2 = vadd.f32 %v4929_v25, %v1456_v0 }
 0x706   : > { %5228 = vmatmul.mubr.msk.f32.vlgmr.msra.gmra.mxu1 %vm578_vm1, %v6087_v2 }
 0x707   : > { %5245 = vmatprep.mubr.msk.f32.mxu1 %vm5707_vm0, %v5706_v1 }
 0x7ba   : > { %v5240_v27 = vpop.f32.mrf.mxu0 }
 0x7bb   : > { %v6093_v28 = vadd.f32 %v5240_v27, %v1558_v3 }
 0x7bc   : > { %v1632_v29 = vpop.f32.mrf.mxu0 }
 0x7bd   : > { %1652 = vrot.lane.b32.xlu1 %v6093_v28, %s6789_s26  ;;  %5242 = vmatpush3.xpose.msk.msra.mxu1 %vm566_vm2, %v6093_v28  ;;  %v6099_v30 = vadd.f32 %v1632_v29, %v1558_v3 }
 0x7be   : > { %5243 = vmatprep.subr.mxu1 %v5706_v1 }
 0x7c1   : > { %1650 = vrot.lane.b32.xlu1 %v6099_v30, %s6789_s26  ;;  %5244 = vmatpush3.xpose.msk.msra.mxu1 %vm566_vm2, %v6099_v30 }
 0x7c2   : > { %5255 = vmatprep.subr.mxu1 %v5706_v1 }
 0x7c5   : > { %1656 = vrot.lane.b32.xlu1 %v6093_v28, %s6790_s21 }
 0x7c6   : > { %v1536_v31 = vpop.f32.mrf.mxu1 }
 0x7c7   : > { %v1537_v32 = vadd.f32 %v1536_v31, %v6068_v11 }
 0x7c8   : > { %v5229_v33 = vpop.f32.mrf.mxu1 }
 0x7c9   : > { %1642 = vrot.lane.b32.xlu0 %v1537_v32, %s6789_s26  ;;  %1660 = vrot.lane.b32.xlu1 %v6093_v28, %s6791_s27 }
 0x7ca   : > { %5246 = vmatmul.mubr.msk.f32.vlgmr.msra.gmra.mxu1 %vm566_vm2, %v1537_v32 }
 0x7cb   : > { %5259 = vmatprep.mubr.msk.f32.mxu1 %vm5707_vm0, %v5706_v1 }
 0x7cd   : > { %1654 = vrot.lane.b32.xlu0 %v6099_v30, %s6790_s21  ;;  %1658 = vrot.lane.b32.xlu1 %v6099_v30, %s6791_s27 }
 0x7d1   : > { %1644 = vrot.lane.b32.xlu0 %v1537_v32, %s6790_s21  ;;  %1646 = vrot.lane.b32.xlu1 %v1537_v32, %s6791_s27 }
 0x82f   : > { %v1653_v34 = vpop.permute.xlu1 %1652 }
 0x830   : > { %5249 = vmatpush3.xpose.msk.msra.mxu0 %vm566_vm2, %v1653_v34 }
 0x831   : > { %5250 = vmatprep.subr.mxu0 %v5706_v1 }
 0x833   : > { %v1651_v35 = vpop.permute.xlu1 %1650 }
 0x834   : > { %5251 = vmatpush3.xpose.msk.msra.mxu0 %vm566_vm2, %v1651_v35 }
 0x835   : > { %5262 = vmatprep.subr.mxu0 %v5706_v1 }
 0x837   : > { %v1657_v36 = vpop.permute.xlu1 %1656 }
 0x838   : > { %5256 = vmatpush3.xpose.msk.msra.mxu1 %vm566_vm2, %v1657_v36 }
 0x839   : > { %5257 = vmatprep.subr.mxu1 %v5706_v1 }
 0x83b   : > { %v1643_v37 = vpop.permute.xlu0 %1642  ;;  %v1661_v38 = vpop.permute.xlu1 %1660 }
 0x83c   : > { %5253 = vmatmul.mubr.msk.f32.vlgmr.msra.gmra.mxu0 %vm566_vm2, %v1643_v37 }
 0x83d   : > { %5263 = vmatpush3.xpose.msk.msra.mxu0 %vm566_vm2, %v1661_v38  ;;  %5266 = vmatprep.mubr.msk.f32.mxu0 %vm5707_vm0, %v5706_v1 }
 0x83e   : > { %5264 = vmatprep.subr.mxu0 %v5706_v1 }
 0x83f   : > { %v6133_v39 = vpop.permute.xlu0 %1654  ;;  %v6135_v40 = vpop.permute.xlu1 %1658 }
 0x840   : > { %5258 = vmatpush3.xpose.msk.msra.mxu1 %vm566_vm2, %v6133_v39 }
 0x841   : > { %5265 = vmatpush3.xpose.msk.msra.mxu0 %vm566_vm2, %v6135_v40  ;;  %5269 = vmatprep.subr.mxu1 %v5706_v1 }
 0x842   : > { %5283 = vmatprep.subr.mxu0 %v5706_v1 }
 0x843   : > { %v1645_v41 = vpop.permute.xlu0 %1644  ;;  %v1647_v42 = vpop.permute.xlu1 %1646 }
 0x844   : > { %5260 = vmatmul.mubr.msk.f32.vlgmr.msra.gmra.mxu1 %vm566_vm2, %v1645_v41  ;;  %5267 = vmatmul.mubr.msk.f32.vlgmr.msra.gmra.mxu0 %vm566_vm2, %v1647_v42 }
 0x845   : > { %5273 = vmatprep.mubr.msk.f32.mxu1 %vm5707_vm0, %v5706_v1  ;;  %5287 = vmatprep.mubr.msk.f32.mxu0 %vm5707_vm0, %v5706_v1 }
 0x88a   : > { %v1734_v46 = vpop.f32.mrf.mxu1 }
 0x88b   : > { %v1966_v47 = vmul.f32 0.35355338, %v1734_v46 }
 0x88c   : > { %v5247_v48 = vpop.f32.mrf.mxu1 }
 0x88d   : > { %v1974_v9 = vadd.f32 %v1973_v4, %v1966_v47 }
 0x88f   : > { %v1978_v49 = vsel %vm1338_vm4, %v1974_v9, -inf }
 0x890   : > { %1979 = vmax.xlane.f32.xlu0 %v1978_v49 }
 0x8fc   : > { %v1810_v51 = vpop.f32.mrf.mxu0 }
 0x8fd   : > { %v1967_v54 = vmul.f32 0.35355338, %v1810_v51 }
 0x8fe   : > { %v5254_v55 = vpop.f32.mrf.mxu0 }
 0x8ff   : > { %v1975_v56 = vadd.f32 %v1973_v4, %v1967_v54 }
 0x901   : > { %v1981_v57 = vsel %vm1338_vm4, %v1975_v56, -inf }
 0x902   : > { %1982 = vmax.xlane.f32.xlu1 %v1981_v57 }
 0x904   : > { %v1886_v58 = vpop.f32.mrf.mxu1  ;;  %v1962_v59 = vpop.f32.mrf.mxu0 }
 0x905   : > { %v1968_v60 = vmul.f32 0.35355338, %v1886_v58  ;;  %v1969_v61 = vmul.f32 0.35355338, %v1962_v59 }
 0x906   : > { %v5261_v22 = vpop.f32.mrf.mxu1  ;;  %v5268_v23 = vpop.f32.mrf.mxu0 }
 0x907   : > { %v1976_v62 = vadd.f32 %v1973_v4, %v1968_v60  ;;  %v1977_v5 = vadd.f32 %v1973_v4, %v1969_v61 }
 0x909   : > { %v1984_v63 = vsel %vm1338_vm4, %v1976_v62, -inf  ;;  %v1987_v7 = vsel %vm1338_vm4, %v1977_v5, -inf }
 0x90a   : > { %1985 = vmax.xlane.f32.xlu0 %v1984_v63 }
 0x90e   : > { %1988 = vmax.xlane.f32.xlu0 %v1987_v7 }
 0x913   : > { %2024 = vrot.lane.b32.xlu1 %v6093_v28, %s6767_s28 }
 0x917   : > { %2103 = vrot.lane.b32.xlu1 %v1653_v34, %s6767_s28 }
 0x919   : > { %v1980_v10 = vpop.xlane.xlu0 %1979 }
 0x91a   : > { %v1990_v12 = vsub.f32 %v1974_v9, %v1980_v10 }
 0x91b   : > { %2101 = vrot.lane.b32.xlu1 %v1651_v35, %s6767_s28 }
 0x91c   : > { %v1994_v14 = vmul.f32 1.442695, %v1990_v12 }
 0x91e   : > { %5585 = vpow2.f32 %v1994_v14 }
 0x91f   : > { %2261 = vrot.lane.b32.xlu1 %v1661_v38, %s6767_s28 }
 0x924   : > { %2022 = vrot.lane.b32.xlu0 %v6099_v30, %s6767_s28 }
 0x928   : > { %2182 = vrot.lane.b32.xlu0 %v1657_v36, %s6767_s28 }
 0x92b   : > { %v5586_v15 = vpop.eup %5585 }
 0x92c   : > { %v2002_v6 = vsel %vm1338_vm4, %v5586_v15, 0.0 }
 0x943   : > { %2003 = vadd.xlane.f32.xlu1 %v2002_v6 }
 0x98b   : > { %v1983_v17 = vpop.xlane.xlu1 %1982 }
 0x98c   : > { %v1991_v13 = vsub.f32 %v1975_v56, %v1983_v17 }
 0x98e   : > { %v1996_v16 = vmul.f32 1.442695, %v1991_v13 }
 0x98f   : > { %v2025_v18 = vpop.permute.xlu1 %2024 }
 0x990   : > { %5587 = vpow2.f32 %v1996_v16  ;;  %5270 = vmatpush3.msra.mxu1 %v2025_v18 }
 0x991   : > { %5271 = vmatprep.subr.mxu1 %v5706_v1 }
 0x993   : > { %v1986_v19 = vpop.xlane.xlu0 %1985  ;;  %v2104_v35 = vpop.permute.xlu1 %2103 }
 0x994   : > { %v1992_v20 = vsub.f32 %v1976_v62, %v1986_v19  ;;  %v2470_v19 = vld [vmem:[%s6744_s9 + $0x58] sm:$0xff] }
 0x996   : > { %v1998_v21 = vmul.f32 1.442695, %v1992_v20  ;;  %v2468_v20 = vld [vmem:[%s6744_s9 + $0x28] sm:$0xff] }
 0x997   : > { %v1989_v25 = vpop.xlane.xlu0 %1988  ;;  %v2102_v36 = vpop.permute.xlu1 %2101 }
 0x998   : > { %5589 = vpow2.f32 %v1998_v21  ;;  %v1993_v0 = vsub.f32 %v1977_v5, %v1989_v25  ;;  %v2467_v21 = vld [vmem:[%s6744_s9 + $0x10] sm:$0xff]  ;;  %v2553_v25 = vld [vmem:[%s6744_s9 + $0x108] sm:$0xff] }
 0x99a   : > { %v2000_v3 = vmul.f32 1.442695, %v1993_v0  ;;  %v2552_v0 = vld [vmem:[%s6744_s9 + $0xf0] sm:$0xff] }
 0x99b   : > { %v2023_v27 = vpop.permute.xlu0 %2022  ;;  %v2262_v37 = vpop.permute.xlu1 %2261 }
 0x99c   : > { %5591 = vpow2.f32 %v2000_v3  ;;  %5272 = vmatpush3.msra.mxu1 %v2023_v27  ;;  %v2551_v3 = vld [vmem:[%s6744_s9 + $0xd8] sm:$0xff]  ;;  %v2550_v27 = vld [vmem:[%s6744_s9 + $0xc0] sm:$0xff] }
 0x99d   : > { %v5588_v28 = vpop.eup %5587  ;;  %5276 = vmatprep.subr.mxu1 %v5706_v1 }
 0x99e   : > { %v2005_v29 = vsel %vm1338_vm4, %v5588_v28, 0.0 }
 0x99f   : > { %2006 = vadd.xlane.f32.xlu0 %v2005_v29  ;;  %v2183_v30 = vpop.permute.xlu0 %2182 }
 0x9a0   : > { %5284 = vmatpush3.msra.mxu0 %v2183_v30 }
 0x9a1   : > { %5285 = vmatprep.subr.mxu0 %v5706_v1 }
 0x9a5   : > { %v5590_v31 = vpop.eup %5589 }
 0x9a6   : > { %v2008_v32 = vsel %vm1338_vm4, %v5590_v31, 0.0 }
 0x9a7   : > { %2009 = vadd.xlane.f32.xlu1 %v2008_v32 }
 0x9a9   : > { %v5592_v33 = vpop.eup %5591 }
 0x9aa   : > { %v2011_v34 = vsel %vm1338_vm4, %v5592_v33, 0.0 }
 0x9ab   : > { %2012 = vadd.xlane.f32.xlu0 %v2011_v34 }
 0x9b8   : > { %2259 = vrot.lane.b32.xlu1 %v6135_v40, %s6767_s28 }
 0x9bc   : > { %2357 = vrot.lane.b32.xlu1 %v6029_v8, %s6793_s18 }
 0x9c0   : > { %2355 = vrot.lane.b32.xlu1 %v6037_v52, %s6793_s18 }
 0x9c1   : > { %2180 = vrot.lane.b32.xlu0 %v6133_v39, %s6767_s28 }
 0x9c5   : > { %2359 = vrot.lane.b32.xlu0 %v6020_v50, %s6793_s18 }
 0x9cc   : > { %v2004_v38 = vpop.xlane.xlu1 %2003 }
 0x9cd   : > { %5593 = vrcp.f32 %v2004_v38 }
 0x9da   : > { %v5594_v41 = vpop.eup %5593 }
 0x9db   : > { %v2018_v42 = vmul.f32 %v5594_v41, %v5586_v15  ;;  %v6274_v41 = vld [vmem:[%s6746_s11 + $0x48] sm:$0xff] }
 0x9dd   : > { %5274 = vmatmul.mubr.msk.f32.vlgmr.msra.gmra.mxu1 %vm1338_vm4, %v2018_v42  ;;  %v6281_v42 = vld [vmem:[%s6746_s11 + $0x30] sm:$0xff] }
 0x9de   : > { %5277 = vmatpush3.msra.mxu1 %v2104_v35  ;;  %5280 = vmatprep.mubr.msk.f32.mxu1 %vm5707_vm0, %v5706_v1  ;;  %v4951_v35 = vld [vmem:[%s6745_s10 + $0x4] ss:$0 sm:$0xff] }
 0x9df   : > { %5278 = vmatprep.subr.mxu1 %v5706_v1 }
 0x9e0   : > { %5279 = vmatpush3.msra.mxu1 %v2102_v36 }
 0x9e1   : > { %5290 = vmatprep.subr.mxu1 %v5706_v1 }
 0xa28   : > { %v2007_v8 = vpop.xlane.xlu0 %2006 }
 0xa29   : > { %5595 = vrcp.f32 %v2007_v8 }
 0xa30   : > { %v2010_v52 = vpop.xlane.xlu1 %2009 }
 0xa31   : > { %5597 = vrcp.f32 %v2010_v52  ;;  %v6290_v52 = vld [vmem:[%s6746_s11 + $0x18] sm:$0xff] }
 0xa34   : > { %v2013_v50 = vpop.xlane.xlu0 %2012  ;;  %v2260_v44 = vpop.permute.xlu1 %2259 }
 0xa35   : > { %5599 = vrcp.f32 %v2013_v50  ;;  %v6297_v50 = vld [vmem:[%s6746_s11] sm:$0xff] }
 0xa36   : > { %v5596_v39 = vpop.eup %5595 }
 0xa37   : > { %v2019_v40 = vmul.f32 %v5596_v39, %v5588_v28  ;;  %v2549_v28 = vld [vmem:[%s6744_s9 + $0xa8] sm:$0xff]  ;;  %v5643_v39 = vld [vmem:[%s6738_s3] sm:$0xff] }
 0xa38   : > { %v2181_v43 = vpop.permute.xlu0 %2180  ;;  %v2358_v51 = vpop.permute.xlu1 %2357 }
 0xa39   : > { %5281 = vmatmul.mubr.msk.f32.vlgmr.msra.gmra.mxu1 %vm1338_vm4, %v2019_v40  ;;  %5286 = vmatpush3.msra.mxu0 %v2181_v43  ;;  %v2548_v43 = vld [vmem:[%s6744_s9 + $0x90] sm:$0xff] }
 0xa3a   : > { %5291 = vmatpush3.msra.mxu1 %v2262_v37  ;;  %5294 = vmatprep.mubr.msk.f32.mxu1 %vm5707_vm0, %v5706_v1  ;;  %v549_v37 = vld [vmem:[%s531_s19] sm:$0xff]  ;;  %s517_s19 = sand.u32 1, %s5696_s30  }
 0xa3b   : > { %5292 = vmatprep.subr.mxu1 %v5706_v1  ;;  %5297 = vmatprep.subr.mxu0 %v5706_v1  ;;  %v550_v8 = vmul.f32 5.656854, %v549_v37  ;;  %s4909_s28 = sshll.u32 %s517_s19, 3 }
 0xa3c   : > { %5293 = vmatpush3.msra.mxu1 %v2260_v44  ;;  %v2360_v48 = vpop.permute.xlu0 %2359  ;;  %v2356_v54 = vpop.permute.xlu1 %2355  ;;  %v2547_v44 = vld [vmem:[%s6744_s9 + $0x78] sm:$0xff]  ;;  %s519_s25 = scalar_lea.vmem [#allocation2], %s4909_s28 }
 0xa3d   : > { %5308 = vmatprep.subr.mxu1 %v5706_v1  ;;  %v6302_v40 = vadd.f32 %v5643_v39, %v550_v8  ;;  %s4792_s24 = sshll.u32 %s519_s25, 4  ;;  %s4793_s24 = int_to_ptr.vmem [resolvable:$true] %s4792_s24 }
 0xa3e   : > { %v5598_v45 = vpop.eup %5597 }
 0xa3f   : > { %v2020_v4 = vmul.f32 %v5598_v45, %v5590_v31  ;;  %v2546_v45 = vld [vmem:[%s6744_s9 + $0x60] sm:$0xff] }
 0xa41   : > { %5288 = vmatmul.mubr.msk.f32.vlgmr.msra.gmra.mxu0 %vm1338_vm4, %v2020_v4  ;;  %v2471_v4 = vld [vmem:[%s6744_s9 + $0x130] ss:$0 sm:$0xff] }
 0xa42   : > { %v5600_v46 = vpop.eup %5599  ;;  %5305 = vmatprep.mubr.msk.f32.mxu0 %vm5707_vm0, %v5706_v1  ;;  %5298 = vmatpush3.msra.mxu0 %v2360_v48 }
 0xa43   : > { %v2021_v47 = vmul.f32 %v5600_v46, %v5592_v33  ;;  %5299 = vmatprep.subr.mxu0 %v5706_v1  ;;  %v4950_v33 = vld [vmem:[%s6745_s10 + $0x1] ss:$0 sm:$0xff] }
 0xa44   : > { %5300 = vmatpush3.msra.mxu0 %v2358_v51 }
 0xa45   : > { %5295 = vmatmul.mubr.msk.f32.vlgmr.msra.gmra.mxu1 %vm1338_vm4, %v2021_v47  ;;  %5301 = vmatprep.subr.mxu0 %v5706_v1 }
 0xa46   : > { %5316 = vmatprep.mubr.msk.f32.mxu1 %vm5707_vm0, %v5706_v1  ;;  %5302 = vmatpush3.msra.mxu0 %v2356_v54 }
 0xa47   : > { %5303 = vmatprep.subr.mxu0 %v5706_v1  ;;  %5309 = vmatpush3.msra.mxu1 %v2470_v19 }
 0xa48   : > { %5310 = vmatprep.subr.mxu1 %v5706_v1 }
 0xa9d   : > { %v2097_v9 = vpop.f32.mrf.mxu1 }
 0xa9f   : > { %v5275_v49 = vpop.f32.mrf.mxu1 }
 0xaa0   : > { %v6331_v49 = vld [vmem:[%s6746_s11 + $0x120] ss:$0 sm:$0xff] }
 0xaf9   : > { %v2176_v55 = vpop.f32.mrf.mxu1 }
 0xafa   : > { %2339 = vrot.lane.b32.xlu0 %v2176_v55, %s6794_s20 }
 0xafb   : > { %v5282_v56 = vpop.f32.mrf.mxu1 }
 0xb01   : > { %v2255_v57 = vpop.f32.mrf.mxu0 }
 0xb02   : > { %2343 = vrot.lane.b32.xlu0 %v2255_v57, %s6795_s15 }
 0xb03   : > { %v5289_v58 = vpop.f32.mrf.mxu0 }
 0xb05   : > { %v2334_v59 = vpop.f32.mrf.mxu1 }
 0xb06   : > { %2353 = vrot.lane.b32.xlu0 %v6044_v53, %s6793_s18  ;;  %2347 = vrot.lane.b32.xlu1 %v2334_v59, %s6796_s22 }
 0xb07   : > { %v5296_v60 = vpop.f32.mrf.mxu1 }
 0xb0a   : > { %2365 = vrot.lane.b32.xlu1 %v6068_v11, %s6793_s18 }
 0xb6c   : > { %v2340_v61 = vpop.permute.xlu0 %2339 }
 0xb6d   : > { %v2350_v23 = vsel %vm566_vm2, %v2097_v9, %v2340_v61 }
 0xb74   : > { %v2344_v22 = vpop.permute.xlu0 %2343 }
 0xb75   : > { %v2351_v62 = vsel %vm1338_vm4, %v2350_v23, %v2344_v22 }
 0xb78   : > { %v2354_v63 = vpop.permute.xlu0 %2353  ;;  %v2348_v5 = vpop.permute.xlu1 %2347 }
 0xb79   : > { %v2352_v7 = vsel %vm1340_vm5, %v2351_v62, %v2348_v5  ;;  %5304 = vmatpush3.msra.mxu0 %v2354_v63  ;;  %v570_v63 = vld [vmem:[%s6742_s7] sm:$0xff] }
 0xb7a   : > { %5306 = vmatmul.mubr.msk.f32.vlgmr.msra.gmra.mxu0 %vm578_vm1, %v2352_v7  ;;  %5319 = vmatprep.subr.mxu0 %v5706_v1  ;;  %vm571_vm8 = vcmp.gt.f32.partialorder %v570_v63, 0.0 }
 0xb7b   : > { %5335 = vmatprep.mubr.msk.f32.mxu0 %vm5707_vm0, %v5706_v1  ;;  %5320 = vmatpush3.msra.mxu0 %v2553_v25  ;;  %v572_v7 = vsel %vm571_vm8, 0.0, %v5712_v24 }
 0xb7c   : > { %v2366_v53 = vpop.permute.xlu1 %2365  ;;  %5321 = vmatprep.subr.mxu0 %v5706_v1 }
 0xb7d   : > { %5322 = vmatpush3.msra.mxu0 %v2552_v0 }
 0xb7e   : > { %5323 = vmatprep.subr.mxu0 %v5706_v1 }
 0xb7f   : > { %5324 = vmatpush3.msra.mxu0 %v2551_v3 }
 0xb80   : > { %5325 = vmatprep.subr.mxu0 %v5706_v1 }
 0xb81   : > { %5326 = vmatpush3.msra.mxu0 %v2550_v27 }
 0xb82   : > { %5327 = vmatprep.subr.mxu0 %v5706_v1 }
 0xb83   : > { %5328 = vmatpush3.msra.mxu0 %v2549_v28 }
 0xb84   : > { %5329 = vmatprep.subr.mxu0 %v5706_v1 }
 0xb85   : > { %5330 = vmatpush3.msra.mxu0 %v2548_v43 }
 0xb86   : > { %5331 = vmatprep.subr.mxu0 %v5706_v1 }
 0xb87   : > { %5332 = vmatpush3.msra.mxu0 %v2547_v44 }
 0xb88   : > { %5333 = vmatprep.subr.mxu0 %v5706_v1 }
 0xb89   : > { %5334 = vmatpush3.msra.mxu0 %v2546_v45 }
 0xb8a   : > { %5359 = vmatprep.subr.mxu0 %v5706_v1 }
 0xc3a   : > { %v2437_v11 = vpop.f32.mrf.mxu0 }
 0xc3b   : > { %v2438_v10 = vadd.f32 %v2437_v11, %v2366_v53 }
 0xc3c   : > { %v5307_v12 = vpop.f32.mrf.mxu0 }
 0xc3d   : > { %v2441_v14 = vadd.f32 %v2438_v10, %v6087_v2  ;;  %v2469_v2 = vld [vmem:[%s6744_s9 + $0x40] sm:$0xff] }
 0xc3e   : > { %5311 = vmatpush3.msra.mxu1 %v2469_v2 }
 0xc3f   : > { %v2444_v15 = vsel %vm578_vm1, %v2441_v14, 0.0  ;;  %5312 = vmatprep.subr.mxu1 %v5706_v1 }
 0xc40   : > { %2445 = vadd.xlane.f32.xlu0 %v2444_v15  ;;  %5313 = vmatpush3.msra.mxu1 %v2468_v20 }
 0xc41   : > { %5314 = vmatprep.subr.mxu1 %v5706_v1 }
 0xc42   : > { %5315 = vmatpush3.msra.mxu1 %v2467_v21 }
 0xc43   : > { %5338 = vmatprep.subr.mxu1 %v5706_v1 }
 0xcc9   : > { %v2446_v6 = vpop.xlane.xlu0 %2445 }
 0xcca   : > { %v2447_v17 = vmul.f32 0.03125, %v2446_v6 }
 0xccc   : > { %v2448_v13 = vsub.f32 %v2441_v14, %v2447_v17 }
 0xcce   : > { %v2449_v16 = vmul.f32 %v2448_v13, %v2448_v13 }
 0xcd0   : > { %v2450_v18 = vsel %vm578_vm1, %v2449_v16, 0.0 }
 0xcd1   : > { %2451 = vadd.xlane.f32.xlu1 %v2450_v18 }
 0xd5a   : > { %v2452_v29 = vpop.xlane.xlu1 %2451 }
 0xd5b   : > { %v2453_v30 = vmul.f32 0.03125, %v2452_v29 }
 0xd5d   : > { %v2454_v31 = vadd.f32 1e-05, %v2453_v30 }
 0xd5f   : > { %5601 = vrsqrt.f32 %v2454_v31 }
 0xd6c   : > { %v5602_v32 = vpop.eup %5601 }
 0xd6d   : > { %v2456_v34 = vmul.f32 %v5602_v32, %v2448_v13 }
 0xd6f   : > { %v2461_v36 = vmul.f32 %v4950_v33, %v2456_v34 }
 0xd71   : > { %v6269_v38 = vadd.f32 %v4951_v35, %v2461_v36 }
 0xd73   : > { %5317 = vmatmul.mubr.msk.f32.vlgmr.msra.gmra.mxu1 %vm578_vm1, %v6269_v38 }
 0xd74   : > { %5339 = vmatpush3.msra.mxu1 %v6274_v41  ;;  %5346 = vmatprep.mubr.msk.f32.mxu1 %vm5707_vm0, %v5706_v1 }
 0xd75   : > { %5340 = vmatprep.subr.mxu1 %v5706_v1 }
 0xd76   : > { %5341 = vmatpush3.msra.mxu1 %v6281_v42 }
 0xd77   : > { %5342 = vmatprep.subr.mxu1 %v5706_v1 }
 0xd78   : > { %5343 = vmatpush3.msra.mxu1 %v6290_v52 }
 0xd79   : > { %5344 = vmatprep.subr.mxu1 %v5706_v1 }
 0xd7a   : > { %5345 = vmatpush3.msra.mxu1 %v6297_v50 }
 0xd7b   : > { %5347 = vmatmul.mubr.msk.f32.vlgmr.msra.gmra.mxu1 %vm578_vm1, %v6302_v40  ;;  %5349 = vmatprep.subr.mxu1 %v5706_v1 }
 0xd7c   : > { %5351 = vmatprep.mubr.msk.f32.mxu1 %vm5707_vm0, %v5706_v1 }
 0xe33   : > { %v2541_v46 = vpop.f32.mrf.mxu1 }
 0xe34   : > { %v2542_v47 = vadd.f32 %v2541_v46, %v2471_v4 }
 0xe35   : > { %v5318_v48 = vpop.f32.mrf.mxu1 }
 0xe36   : > { %v2545_v9 = vmax.f32 %v2542_v47, 0.0 }
 0xe38   : > { %5336 = vmatmul.mubr.msk.f32.vlgmr.msra.gmra.mxu0 %vm2559_vm7, %v2545_v9 }
 0xe39   : > { %5361 = vmatprep.mubr.msk.f32.mxu0 %vm5707_vm0, %v5706_v1 }
 0xe3b   : > { %v2733_v51 = vpop.f32.mrf.mxu1 }
 0xe3c   : > { %v2734_v54 = vadd.f32 %v2733_v51, %v6331_v49 }
 0xe3d   : > { %v5348_v55 = vpop.f32.mrf.mxu1 }
 0xe3e   : > { %2740 = vrot.lane.b32.xlu1 %v2734_v54, %s6790_s21  ;;  %2738 = vrot.lane.b32.xlu0 %v2734_v54, %s6789_s26 }
 0xe42   : > { %2744 = vrot.lane.b32.xlu1 %v2734_v54, %s6797_s0  ;;  %2742 = vrot.lane.b32.xlu0 %v2734_v54, %s6791_s27 }
 0xeb0   : > { %v6340_v56 = vpop.permute.xlu1 %2740  ;;  %v2739_v57 = vpop.permute.xlu0 %2738 }
 0xeb1   : > { %2896 = vrot.lane.b32.xlu1 %v6340_v56, %s6797_s0  ;;  %2820 = vrot.lane.b32.xlu0 %v2739_v57, %s6797_s0 }
 0xeb4   : > { %v2745_v58 = vpop.permute.xlu1 %2744  ;;  %v6345_v59 = vpop.permute.xlu0 %2742 }
 0xeb5   : > { %5350 = vmatpush3.xpose.msk.msra.mxu1 %vm566_vm2, %v2745_v58  ;;  %2972 = vrot.lane.b32.xlu0 %v6345_v59, %s6797_s0 }
 0xeb6   : > { %5354 = vmatprep.subr.mxu1 %v5706_v1 }
 0xeb8   : > { %5352 = vmatmul.mubr.msk.f32.vlgmr.msra.gmra.mxu1 %vm566_vm2, %v2734_v54 }
 0xeb9   : > { %5356 = vmatprep.mubr.msk.f32.mxu1 %vm5707_vm0, %v5706_v1 }
 0xef8   : > { %v6354_v60 = vpop.f32.mrf.mxu0 }
 0xefa   : > { %v5337_v61 = vpop.f32.mrf.mxu0 }
 0xf23   : > { %v2897_v22 = vpop.permute.xlu1 %2896  ;;  %v2821_v23 = vpop.permute.xlu0 %2820 }
 0xf24   : > { %5355 = vmatpush3.xpose.msk.msra.mxu1 %vm566_vm2, %v2821_v23  ;;  %5360 = vmatpush3.xpose.msk.msra.mxu0 %vm566_vm2, %v2897_v22 }
 0xf25   : > { %5364 = vmatprep.subr.mxu1 %v5706_v1  ;;  %5369 = vmatprep.subr.mxu0 %v5706_v1 }
 0xf27   : > { %5357 = vmatmul.mubr.msk.f32.vlgmr.msra.gmra.mxu1 %vm566_vm2, %v2739_v57  ;;  %5362 = vmatmul.mubr.msk.f32.vlgmr.msra.gmra.mxu0 %vm566_vm2, %v6340_v56  ;;  %v2973_v62 = vpop.permute.xlu0 %2972 }
 0xf28   : > { %5365 = vmatpush3.xpose.msk.msra.mxu1 %vm566_vm2, %v2973_v62  ;;  %5366 = vmatprep.mubr.msk.f32.mxu1 %vm5707_vm0, %v5706_v1 }
 0xf29   : > { %5374 = vmatprep.subr.mxu1 %v5706_v1  ;;  %5371 = vmatprep.mubr.msk.f32.mxu0 %vm5707_vm0, %v5706_v1 }
 0xf2b   : > { %5367 = vmatmul.mubr.msk.f32.vlgmr.msra.gmra.mxu1 %vm566_vm2, %v6345_v59 }
 0xf2c   : > { %5376 = vmatprep.mubr.msk.f32.mxu1 %vm5707_vm0, %v5706_v1 }
 0xf78   : > { %v2816_v5 = vpop.f32.mrf.mxu1 }
 0xf79   : > { %v3048_v53 = vmul.f32 0.35355338, %v2816_v5 }
 0xf7a   : > { %v5353_v11 = vpop.f32.mrf.mxu1 }
 0xf7b   : > { %v3052_v10 = vadd.f32 %v3048_v53, %v572_v7 }
 0xf7d   : > { %v3056_v12 = vsel %vm566_vm2, %v3052_v10, -inf }
 0xf7e   : > { %3057 = vmax.xlane.f32.xlu1 %v3056_v12 }
 0xfe7   : > { %v2892_v14 = vpop.f32.mrf.mxu1  ;;  %v2968_v15 = vpop.f32.mrf.mxu0 }
 0xfe8   : > { %v3049_v6 = vmul.f32 0.35355338, %v2892_v14  ;;  %v3050_v17 = vmul.f32 0.35355338, %v2968_v15 }
 0xfe9   : > { %v5358_v13 = vpop.f32.mrf.mxu1  ;;  %v5363_v16 = vpop.f32.mrf.mxu0 }
 0xfea   : > { %v3053_v18 = vadd.f32 %v3049_v6, %v572_v7  ;;  %v3054_v21 = vadd.f32 %v3050_v17, %v572_v7  ;;  %v4953_v16 = vld [vmem:[%s6745_s10 + $0x6] ss:$0 sm:$0xff] }
 0xfeb   : > { %v3044_v19 = vpop.f32.mrf.mxu1 }
 0xfec   : > { %v3051_v2 = vmul.f32 0.35355338, %v3044_v19  ;;  %v3059_v20 = vsel %vm566_vm2, %v3053_v18, -inf  ;;  %v3062_v0 = vsel %vm566_vm2, %v3054_v21, -inf }
 0xfed   : > { %3060 = vmax.xlane.f32.xlu0 %v3059_v20  ;;  %v5368_v24 = vpop.f32.mrf.mxu1 }
 0xfee   : > { %v3055_v25 = vadd.f32 %v3051_v2, %v572_v7 }
 0xff0   : > { %v3065_v3 = vsel %vm566_vm2, %v3055_v25, -inf }
 0xff1   : > { %3063 = vmax.xlane.f32.xlu0 %v3062_v0  ;;  %3066 = vmax.xlane.f32.xlu1 %v3065_v3 }
0x1002   : > { %3176 = vrot.lane.b32.xlu1 %v2739_v57, %s6798_s5 }
0x1007   : > { %3100 = vrot.lane.b32.xlu0 %v2734_v54, %s6798_s5  ;;  %v3058_v27 = vpop.xlane.xlu1 %3057 }
0x1008   : > { %v3068_v28 = vsub.f32 %v3052_v10, %v3058_v27 }
0x100a   : > { %v3072_v29 = vmul.f32 1.442695, %v3068_v28 }
0x100c   : > { %5603 = vpow2.f32 %v3072_v29 }
0x1019   : > { %v5604_v30 = vpop.eup %5603 }
0x101a   : > { %v3080_v31 = vsel %vm566_vm2, %v5604_v30, 0.0 }
0x1026   : > { %3081 = vadd.xlane.f32.xlu0 %v3080_v31 }
0x1076   : > { %v3061_v32 = vpop.xlane.xlu0 %3060 }
0x1077   : > { %v3069_v33 = vsub.f32 %v3053_v18, %v3061_v32  ;;  %v2630_v18 = vadd.f32 %v4953_v16, %v6354_v60  ;;  %v6446_v60 = vld [vmem:[%s6746_s11 + $0x38] sm:$0xff] }
0x1079   : > { %v3074_v34 = vmul.f32 1.442695, %v3069_v33  ;;  %v2633_v19 = vadd.f32 %v2630_v18, %v6269_v38  ;;  %v6439_v38 = vld [vmem:[%s6746_s11 + $0x50] sm:$0xff] }
0x107a   : > { %v3064_v35 = vpop.xlane.xlu0 %3063  ;;  %v3067_v36 = vpop.xlane.xlu1 %3066 }
0x107b   : > { %5605 = vpow2.f32 %v3074_v34  ;;  %v3070_v37 = vsub.f32 %v3054_v21, %v3064_v35  ;;  %v3071_v8 = vsub.f32 %v3055_v25, %v3067_v36  ;;  %v2636_v2 = vsel %vm578_vm1, %v2633_v19, 0.0 }
0x107d   : > { %v3076_v39 = vmul.f32 1.442695, %v3070_v37  ;;  %v3078_v43 = vmul.f32 1.442695, %v3071_v8  ;;  %v6460_v37 = vld [vmem:[%s6746_s11 + $0x20] sm:$0xff] }
0x107e   : > { %v3101_v44 = vpop.permute.xlu0 %3100  ;;  %v3177_v45 = vpop.permute.xlu1 %3176 }
0x107f   : > { %5607 = vpow2.f32 %v3076_v39  ;;  %5370 = vmatpush3.msra.mxu0 %v3101_v44  ;;  %5375 = vmatpush3.msra.mxu1 %v3177_v45 }
0x1080   : > { %5609 = vpow2.f32 %v3078_v43  ;;  %5379 = vmatprep.subr.mxu0 %v5706_v1  ;;  %5384 = vmatprep.subr.mxu1 %v5706_v1 }
0x1088   : > { %v5606_v4 = vpop.eup %5605 }
0x1089   : > { %v3083_v46 = vsel %vm566_vm2, %v5606_v4, 0.0 }
0x108a   : > { %3084 = vadd.xlane.f32.xlu1 %v3083_v46 }
0x108c   : > { %v5608_v47 = vpop.eup %5607 }
0x108d   : > { %v5610_v48 = vpop.eup %5609  ;;  %v3086_v9 = vsel %vm566_vm2, %v5608_v47, 0.0 }
0x108e   : > { %3087 = vadd.xlane.f32.xlu0 %v3086_v9  ;;  %v3089_v51 = vsel %vm566_vm2, %v5610_v48, 0.0 }
0x108f   : > { %3090 = vadd.xlane.f32.xlu1 %v3089_v51 }
0x10a0   : > { %3252 = vrot.lane.b32.xlu1 %v6340_v56, %s6798_s5 }
0x10a4   : > { %3328 = vrot.lane.b32.xlu0 %v6345_v59, %s6798_s5  ;;  %3429 = vrot.lane.b32.xlu1 %v6274_v41, %s6793_s18  ;;  %s4998_s5 = sshll.u32 %s5816_s17, 7 }
0x10a8   : > { %3427 = vrot.lane.b32.xlu0 %v6281_v42, %s6793_s18 }
0x10ac   : > { %3425 = vrot.lane.b32.xlu0 %v6290_v52, %s6793_s18 }
0x10af   : > { %v3082_v54 = vpop.xlane.xlu0 %3081 }
0x10b0   : > { %5611 = vrcp.f32 %v3082_v54 }
0x10bd   : > { %v5612_v55 = vpop.eup %5611 }
0x10be   : > { %v3096_v57 = vmul.f32 %v5612_v55, %v5604_v30 }
0x10c0   : > { %5372 = vmatmul.mubr.msk.f32.vlgmr.msra.gmra.mxu0 %vm566_vm2, %v3096_v57  ;;  %v4955_v57 = vld [vmem:[%s6745_s10 + $0x2] ss:$0 sm:$0xff] }
0x10c1   : > { %5381 = vmatprep.mubr.msk.f32.mxu0 %vm5707_vm0, %v5706_v1 }
0x1113   : > { %v3085_v56 = vpop.xlane.xlu1 %3084 }
0x1114   : > { %5613 = vrcp.f32 %v3085_v56 }
0x1117   : > { %v3088_v58 = vpop.xlane.xlu0 %3087 }
0x1118   : > { %5615 = vrcp.f32 %v3088_v58  ;;  %v3091_v41 = vpop.xlane.xlu1 %3090 }
0x1119   : > { %5617 = vrcp.f32 %v3091_v41 }
0x111b   : > { %v3329_v61 = vpop.permute.xlu0 %3328 }
0x111c   : > { %v3253_v59 = vpop.permute.xlu1 %3252 }
0x111d   : > { %5380 = vmatpush3.msra.mxu0 %v3253_v59 }
0x111e   : > { %5389 = vmatprep.subr.mxu0 %v5706_v1 }
0x111f   : > { %v3428_v53 = vpop.permute.xlu0 %3427 }
0x1120   : > { %v3430_v11 = vpop.permute.xlu1 %3429 }
0x1121   : > { %v5614_v42 = vpop.eup %5613 }
0x1122   : > { %v3097_v52 = vmul.f32 %v5614_v42, %v5606_v4  ;;  %v4956_v42 = vld [vmem:[%s6745_s10 + $0x5] ss:$0 sm:$0xff] }
0x1123   : > { %v3426_v10 = vpop.permute.xlu0 %3425 }
0x1124   : > { %5377 = vmatmul.mubr.msk.f32.vlgmr.msra.gmra.mxu1 %vm566_vm2, %v3097_v52 }
0x1125   : > { %v5616_v22 = vpop.eup %5615  ;;  %5385 = vmatpush3.msra.mxu1 %v3329_v61  ;;  %5386 = vmatprep.mubr.msk.f32.mxu1 %vm5707_vm0, %v5706_v1 }
0x1126   : > { %v5618_v23 = vpop.eup %5617  ;;  %v3098_v62 = vmul.f32 %v5616_v22, %v5608_v47  ;;  %5400 = vmatprep.subr.mxu1 %v5706_v1 }
0x1127   : > { %v3099_v63 = vmul.f32 %v5618_v23, %v5610_v48  ;;  %v6481_v48 = vld [vmem:[%s6746_s11 + $0x128] ss:$0 sm:$0xff] }
0x1128   : > { %5382 = vmatmul.mubr.msk.f32.vlgmr.msra.gmra.mxu0 %vm566_vm2, %v3098_v62  ;;  %v4971_v62 = vld [vmem:[%s6747_s12] ss:$0 sm:$0xff] }
0x1129   : > { %5387 = vmatmul.mubr.msk.f32.vlgmr.msra.gmra.mxu1 %vm566_vm2, %v3099_v63  ;;  %5397 = vmatprep.mubr.msk.f32.mxu0 %vm5707_vm0, %v5706_v1 }
0x112a   : > { %5408 = vmatprep.mubr.msk.f32.mxu1 %vm5707_vm0, %v5706_v1  ;;  %5390 = vmatpush3.msra.mxu0 %v3430_v11 }
0x112b   : > { %5391 = vmatprep.subr.mxu0 %v5706_v1  ;;  %5401 = vmatpush3.msra.mxu1 %v6439_v38 }
0x112c   : > { %5392 = vmatpush3.msra.mxu0 %v3428_v53  ;;  %5402 = vmatprep.subr.mxu1 %v5706_v1 }
0x112d   : > { %5393 = vmatprep.subr.mxu0 %v5706_v1  ;;  %5403 = vmatpush3.msra.mxu1 %v6446_v60 }
0x112e   : > { %5394 = vmatpush3.msra.mxu0 %v3426_v10  ;;  %5404 = vmatprep.subr.mxu1 %v5706_v1 }
0x112f   : > { %5395 = vmatprep.subr.mxu0 %v5706_v1  ;;  %5405 = vmatpush3.msra.mxu1 %v6460_v37 }
0x1130   : > { %5406 = vmatprep.subr.mxu1 %v5706_v1 }
0x1180   : > { %v3172_v5 = vpop.f32.mrf.mxu0 }
0x1182   : > { %v5373_v7 = vpop.f32.mrf.mxu0 }
0x11e4   : > { %v3248_v12 = vpop.f32.mrf.mxu1 }
0x11e5   : > { %3405 = vrot.lane.b32.xlu1 %v3248_v12, %s6794_s20 }
0x11e6   : > { %v5378_v14 = vpop.f32.mrf.mxu1 }
0x11e8   : > { %v3324_v15 = vpop.f32.mrf.mxu0 }
0x11e9   : > { %v3400_v6 = vpop.f32.mrf.mxu1  ;;  %3409 = vrot.lane.b32.xlu1 %v3324_v15, %s6795_s15 }
0x11ea   : > { %3413 = vrot.lane.b32.xlu0 %v3400_v6, %s6796_s22  ;;  %v5383_v17 = vpop.f32.mrf.mxu0 }
0x11eb   : > { %v5388_v13 = vpop.f32.mrf.mxu1 }
0x11ed   : > { %3423 = vrot.lane.b32.xlu1 %v6297_v50, %s6793_s18 }
0x11ee   : > { %3436 = vrot.lane.b32.xlu0 %v6331_v49, %s6793_s18 }
0x1211   : > { %2637 = vadd.xlane.f32.xlu1 %v2636_v2 }
0x1222   : > { %3624 = vrot.lane.b32.xlu1 %v6446_v60, %s6797_s0 }
0x1257   : > { %v3406_v20 = vpop.permute.xlu1 %3405 }
0x1258   : > { %v3416_v24 = vsel %vm566_vm2, %v3172_v5, %v3406_v20  ;;  %v4972_v5 = vld [vmem:[%s6747_s12 + $0x3] ss:$0 sm:$0xff] }
0x125b   : > { %v3410_v21 = vpop.permute.xlu1 %3409 }
0x125c   : > { %v3417_v50 = vsel %vm1338_vm4, %v3416_v24, %v3410_v21  ;;  %v3414_v25 = vpop.permute.xlu0 %3413 }
0x125d   : > { %v3418_v49 = vsel %vm1340_vm5, %v3417_v50, %v3414_v25 }
0x125f   : > { %v3424_v0 = vpop.permute.xlu1 %3423 }
0x1260   : > { %5396 = vmatpush3.msra.mxu0 %v3424_v0  ;;  %v3437_v28 = vpop.permute.xlu0 %3436 }
0x1261   : > { %5398 = vmatmul.mubr.msk.f32.vlgmr.msra.gmra.mxu0 %vm578_vm1, %v3418_v49  ;;  %5411 = vmatprep.subr.mxu0 %v5706_v1 }
0x1262   : > { %5419 = vmatprep.mubr.msk.f32.mxu0 %vm5707_vm0, %v5706_v1 }
0x129a   : > { %v2638_v3 = vpop.xlane.xlu1 %2637 }
0x129b   : > { %v2639_v27 = vmul.f32 0.03125, %v2638_v3 }
0x129d   : > { %v2640_v30 = vsub.f32 %v2633_v19, %v2639_v27 }
0x129e   : > { %v3625_v47 = vpop.permute.xlu1 %3624 }
0x129f   : > { %v2641_v35 = vmul.f32 %v2640_v30, %v2640_v30 }
0x12a1   : > { %v2642_v36 = vsel %vm578_vm1, %v2641_v35, 0.0 }
0x1321   : > { %v3508_v29 = vpop.f32.mrf.mxu0 }
0x1322   : > { %v3509_v31 = vadd.f32 %v3508_v29, %v3437_v28 }
0x1323   : > { %v5399_v32 = vpop.f32.mrf.mxu0 }
0x1324   : > { %v3512_v33 = vadd.f32 %v3509_v31, %v6302_v40  ;;  %v6466_v40 = vld [vmem:[%s6746_s11 + $0x8] sm:$0xff] }
0x1325   : > { %5407 = vmatpush3.msra.mxu1 %v6466_v40 }
0x1326   : > { %v3515_v34 = vsel %vm578_vm1, %v3512_v33, 0.0  ;;  %5422 = vmatprep.subr.mxu1 %v5706_v1 }
0x1327   : > { %3516 = vadd.xlane.f32.xlu0 %v3515_v34 }
0x132b   : > { %2643 = vadd.xlane.f32.xlu0 %v2642_v36 }
0x1341   : > { %3626 = vrot.lane.b32.xlu0 %v6439_v38, %s6797_s0 }
0x1345   : > { %3620 = vrot.lane.b32.xlu0 %v6466_v40, %s6797_s0 }
0x13b0   : > { %v3517_v8 = vpop.xlane.xlu0 %3516 }
0x13b1   : > { %v3518_v39 = vmul.f32 0.03125, %v3517_v8 }
0x13b3   : > { %v3519_v43 = vsub.f32 %v3512_v33, %v3518_v39 }
0x13b4   : > { %v2644_v44 = vpop.xlane.xlu0 %2643 }
0x13b5   : > { %v3520_v45 = vmul.f32 %v3519_v43, %v3519_v43  ;;  %v2645_v9 = vmul.f32 0.03125, %v2644_v44 }
0x13b7   : > { %v3521_v4 = vsel %vm578_vm1, %v3520_v45, 0.0  ;;  %v2646_v51 = vadd.f32 1e-05, %v2645_v9 }
0x13b8   : > { %3522 = vadd.xlane.f32.xlu1 %v3521_v4  ;;  %v3627_v46 = vpop.permute.xlu0 %3626 }
0x13b9   : > { %5412 = vmatpush3.msra.mxu0 %v3627_v46  ;;  %5619 = vrsqrt.f32 %v2646_v51 }
0x13ba   : > { %5413 = vmatprep.subr.mxu0 %v5706_v1 }
0x13bb   : > { %5414 = vmatpush3.msra.mxu0 %v3625_v47 }
0x13bc   : > { %5415 = vmatprep.subr.mxu0 %v5706_v1  ;;  %v3621_v61 = vpop.permute.xlu0 %3620 }
0x13c6   : > { %v5620_v54 = vpop.eup %5619 }
0x13c7   : > { %v2648_v55 = vmul.f32 %v5620_v54, %v2640_v30 }
0x13c9   : > { %3622 = vrot.lane.b32.xlu1 %v6460_v37, %s6797_s0  ;;  %v2653_v41 = vmul.f32 %v4955_v57, %v2648_v55 }
0x13cb   : > { %v2658_v22 = vadd.f32 %v4956_v42, %v2653_v41 }
0x13cd   : > { %3633 = vrot.lane.b32.xlu1 %v6481_v48, %s6797_s0 }
0x1441   : > { %v3523_v56 = vpop.xlane.xlu1 %3522 }
0x1442   : > { %v3524_v58 = vmul.f32 0.03125, %v3523_v56 }
0x1444   : > { %v3525_v59 = vadd.f32 1e-05, %v3524_v58 }
0x1445   : > { %v3623_v52 = vpop.permute.xlu1 %3622 }
0x1446   : > { %5621 = vrsqrt.f32 %v3525_v59  ;;  %5416 = vmatpush3.msra.mxu0 %v3623_v52 }
0x1447   : > { %5417 = vmatprep.subr.mxu0 %v5706_v1 }
0x1448   : > { %5418 = vmatpush3.msra.mxu0 %v3621_v61 }
0x1449   : > { %5420 = vmatmul.mubr.msk.f32.vlgmr.msra.gmra.mxu0 %vm578_vm1, %v2658_v22  ;;  %5432 = vmatprep.subr.mxu0 %v5706_v1  ;;  %v3634_v11 = vpop.permute.xlu1 %3633 }
0x144a   : > { %5434 = vmatprep.mubr.msk.f32.mxu0 %vm5707_vm0, %v5706_v1 }
0x1453   : > { %v5622_v23 = vpop.eup %5621 }
0x1454   : > { %v3527_v63 = vmul.f32 %v5622_v23, %v3519_v43 }
0x1456   : > { %v3532_v7 = vmul.f32 %v4971_v62, %v3527_v63 }
0x1458   : > { %v6502_v53 = vadd.f32 %v4972_v5, %v3532_v7 }
0x145a   : > { %5409 = vmatmul.mubr.msk.f32.vlgmr.msra.gmra.mxu1 %vm578_vm1, %v6502_v53 }
0x145b   : > { %5424 = vmatprep.mubr.msk.f32.mxu1 %vm5707_vm0, %v5706_v1 }
0x1509   : > { %v3705_v10 = vpop.f32.mrf.mxu0 }
0x150a   : > { %v3706_v12 = vadd.f32 %v3705_v10, %v3634_v11 }
0x150b   : > { %v5421_v14 = vpop.f32.mrf.mxu0 }
0x150c   : > { %3721 = vrot.lane.b32.xlu1 %v3706_v12, %s6791_s27  ;;  %3717 = vrot.lane.b32.xlu0 %v3706_v12, %s6789_s26 }
0x150d   : > { %5423 = vmatpush3.xpose.msk.msra.mxu1 %vm566_vm2, %v3706_v12 }
0x150e   : > { %5427 = vmatprep.subr.mxu1 %v5706_v1 }
0x1510   : > { %3719 = vrot.lane.b32.xlu0 %v3706_v12, %s6790_s21 }
0x151a   : > { %v3612_v15 = vpop.f32.mrf.mxu1 }
0x151b   : > { %v3613_v6 = vadd.f32 %v3612_v15, %v6481_v48 }
0x151c   : > { %v5410_v17 = vpop.f32.mrf.mxu1 }
0x151d   : > { %3712 = vrot.lane.b32.xlu0 %v3613_v6, %s6790_s21  ;;  %3710 = vrot.lane.b32.xlu1 %v3613_v6, %s6789_s26 }
0x151e   : > { %5425 = vmatmul.mubr.msk.f32.vlgmr.msra.gmra.mxu1 %vm566_vm2, %v3613_v6 }
0x151f   : > { %5429 = vmatprep.mubr.msk.f32.mxu1 %vm5707_vm0, %v5706_v1 }
0x1521   : > { %3714 = vrot.lane.b32.xlu1 %v3613_v6, %s6791_s27  ;;  %s6700_s27 = scalar_lea.hbm %s6749_s14, %s4998_s5 }
0x157e   : > { %v6520_v13 = vpop.permute.xlu0 %3717  ;;  %v6530_v18 = vpop.permute.xlu1 %3721 }
0x157f   : > { %5428 = vmatpush3.xpose.msk.msra.mxu1 %vm566_vm2, %v6520_v13 }
0x1580   : > { %5437 = vmatprep.subr.mxu1 %v5706_v1 }
0x1582   : > { %v6525_v16 = vpop.permute.xlu0 %3719 }
0x1583   : > { %5433 = vmatpush3.xpose.msk.msra.mxu0 %vm566_vm2, %v6525_v16 }
0x1584   : > { %5442 = vmatprep.subr.mxu0 %v5706_v1 }
0x158f   : > { %v3713_v19 = vpop.permute.xlu0 %3712  ;;  %v3711_v2 = vpop.permute.xlu1 %3710 }
0x1590   : > { %5430 = vmatmul.mubr.msk.f32.vlgmr.msra.gmra.mxu1 %vm566_vm2, %v3711_v2  ;;  %5435 = vmatmul.mubr.msk.f32.vlgmr.msra.gmra.mxu0 %vm566_vm2, %v3713_v19 }
0x1591   : > { %5438 = vmatpush3.xpose.msk.msra.mxu1 %vm566_vm2, %v6530_v18  ;;  %5439 = vmatprep.mubr.msk.f32.mxu1 %vm5707_vm0, %v5706_v1 }
0x1592   : > { %5444 = vmatprep.mubr.msk.f32.mxu0 %vm5707_vm0, %v5706_v1  ;;  %5447 = vmatprep.subr.mxu1 %v5706_v1 }
0x1593   : > { %v3715_v20 = vpop.permute.xlu1 %3714 }
0x1594   : > { %5440 = vmatmul.mubr.msk.f32.vlgmr.msra.gmra.mxu1 %vm566_vm2, %v3715_v20 }
0x1595   : > { %5449 = vmatprep.mubr.msk.f32.mxu1 %vm5707_vm0, %v5706_v1 }
0x15de   : > { %v3793_v21 = vpop.f32.mrf.mxu1 }
0x15df   : > { %v4019_v24 = vmul.f32 0.35355338, %v3793_v21 }
0x15e0   : > { %v5426_v50 = vpop.f32.mrf.mxu1 }
0x15e1   : > { %v4023_v25 = vadd.f32 %v4019_v24, %v5958_v26 }
0x15e3   : > { %v4027_v0 = vsel %vm566_vm2, %v4023_v25, -inf }
0x15e4   : > { %4028 = vmax.xlane.f32.xlu0 %v4027_v0 }
0x1650   : > { %v3867_v49 = vpop.f32.mrf.mxu1  ;;  %v3941_v3 = vpop.f32.mrf.mxu0 }
0x1651   : > { %v4020_v27 = vmul.f32 0.35355338, %v3867_v49  ;;  %v4021_v28 = vmul.f32 0.35355338, %v3941_v3 }
0x1652   : > { %v5431_v29 = vpop.f32.mrf.mxu1  ;;  %v5436_v30 = vpop.f32.mrf.mxu0 }
0x1653   : > { %v4024_v31 = vadd.f32 %v4020_v27, %v5958_v26  ;;  %v4025_v32 = vadd.f32 %v4021_v28, %v5958_v26 }
0x1654   : > { %v4015_v33 = vpop.f32.mrf.mxu1 }
0x1655   : > { %v4022_v34 = vmul.f32 0.35355338, %v4015_v33  ;;  %v4033_v35 = vsel %vm566_vm2, %v4025_v32, -inf  ;;  %v4030_v36 = vsel %vm566_vm2, %v4024_v31, -inf }
0x1656   : > { %4034 = vmax.xlane.f32.xlu0 %v4033_v35  ;;  %4031 = vmax.xlane.f32.xlu1 %v4030_v36  ;;  %v5441_v8 = vpop.f32.mrf.mxu1 }
0x1657   : > { %v4026_v39 = vadd.f32 %v4022_v34, %v5958_v26 }
0x1659   : > { %v4036_v43 = vsel %vm566_vm2, %v4026_v39, -inf }
0x165a   : > { %4037 = vmax.xlane.f32.xlu0 %v4036_v43 }
0x1667   : > { %4071 = vrot.lane.b32.xlu1 %v3706_v12, %s6797_s0 }
0x166d   : > { %v4029_v44 = vpop.xlane.xlu0 %4028 }
0x166e   : > { %v4039_v45 = vsub.f32 %v4023_v25, %v4029_v44 }
0x1670   : > { %v4043_v4 = vmul.f32 1.442695, %v4039_v45 }
0x1672   : > { %5623 = vpow2.f32 %v4043_v4 }
0x167f   : > { %v5624_v46 = vpop.eup %5623 }
0x1680   : > { %v4051_v47 = vsel %vm566_vm2, %v5624_v46, 0.0 }
0x168b   : > { %4052 = vadd.xlane.f32.xlu1 %v4051_v47  ;;  %v4506_v47 = vld [vmem:[%s6746_s11 + $0x40] sm:$0xff] }
0x16df   : > { %v4035_v9 = vpop.xlane.xlu0 %4034  ;;  %v4032_v51 = vpop.xlane.xlu1 %4031 }
0x16e0   : > { %v4041_v54 = vsub.f32 %v4025_v32, %v4035_v9  ;;  %v4040_v55 = vsub.f32 %v4024_v31, %v4032_v51  ;;  %v4504_v9 = vld [vmem:[%s6746_s11 + $0x10] sm:$0xff]  ;;  %v4590_v51 = vld [vmem:[%s6746_s11 + $0x108] sm:$0xff] }
0x16e2   : > { %v4047_v57 = vmul.f32 1.442695, %v4041_v54  ;;  %v4045_v56 = vmul.f32 1.442695, %v4040_v55  ;;  %v4589_v54 = vld [vmem:[%s6746_s11 + $0xf0] sm:$0xff]  ;;  %v4588_v55 = vld [vmem:[%s6746_s11 + $0xd8] sm:$0xff] }
0x16e3   : > { %v4072_v26 = vpop.permute.xlu1 %4071  ;;  %v4038_v58 = vpop.xlane.xlu0 %4037 }
0x16e4   : > { %5625 = vpow2.f32 %v4047_v57  ;;  %v4042_v41 = vsub.f32 %v4026_v39, %v4038_v58  ;;  %5443 = vmatpush3.msra.mxu0 %v4072_v26  ;;  %v4587_v57 = vld [vmem:[%s6746_s11 + $0xc0] sm:$0xff] }
0x16e5   : > { %5627 = vpow2.f32 %v4045_v56  ;;  %5452 = vmatprep.subr.mxu0 %v5706_v1  ;;  %v4586_v56 = vld [vmem:[%s6746_s11 + $0xa8] sm:$0xff] }
0x16e6   : > { %v4049_v59 = vmul.f32 1.442695, %v4042_v41 }
0x16e8   : > { %5629 = vpow2.f32 %v4049_v59 }
0x16f1   : > { %v5626_v42 = vpop.eup %5625 }
0x16f2   : > { %v5628_v52 = vpop.eup %5627  ;;  %v4057_v61 = vsel %vm566_vm2, %v5626_v42, 0.0 }
0x16f3   : > { %4058 = vadd.xlane.f32.xlu1 %v4057_v61  ;;  %v4054_v22 = vsel %vm566_vm2, %v5628_v52, 0.0  ;;  %v4989_v61 = vld [vmem:[%s6747_s12 + $0x4] ss:$0 sm:$0xff] }
0x16f4   : > { %4055 = vadd.xlane.f32.xlu0 %v4054_v22 }
0x16f5   : > { %v5630_v23 = vpop.eup %5629 }
0x16f6   : > { %v4060_v62 = vsel %vm566_vm2, %v5630_v23, 0.0 }
0x16f8   : > { %4061 = vadd.xlane.f32.xlu0 %v4060_v62  ;;  %v4585_v62 = vld [vmem:[%s6746_s11 + $0x90] sm:$0xff] }
0x1704   : > { %4223 = vrot.lane.b32.xlu1 %v6525_v16, %s6797_s0 }
0x1708   : > { %4299 = vrot.lane.b32.xlu1 %v6530_v18, %s6797_s0 }
0x170c   : > { %4394 = vrot.lane.b32.xlu1 %v6446_v60, %s6793_s18 }
0x170e   : > { %4147 = vrot.lane.b32.xlu0 %v6520_v13, %s6797_s0 }
0x1710   : > { %4392 = vrot.lane.b32.xlu1 %v6460_v37, %s6793_s18 }
0x1712   : > { %4396 = vrot.lane.b32.xlu0 %v6439_v38, %s6793_s18 }
0x1714   : > { %v4053_v63 = vpop.xlane.xlu1 %4052 }
0x1715   : > { %5631 = vrcp.f32 %v4053_v63  ;;  %v4584_v63 = vld [vmem:[%s6746_s11 + $0x78] sm:$0xff] }
0x1722   : > { %v5632_v5 = vpop.eup %5631 }
0x1723   : > { %v4067_v7 = vmul.f32 %v5632_v5, %v5624_v46  ;;  %v4507_v46 = vld [vmem:[%s6746_s11 + $0x58] sm:$0xff]  ;;  %v4583_v5 = vld [vmem:[%s6746_s11 + $0x60] sm:$0xff] }
0x1725   : > { %5445 = vmatmul.mubr.msk.f32.vlgmr.msra.gmra.mxu0 %vm566_vm2, %v4067_v7  ;;  %v4508_v7 = vld [vmem:[%s6746_s11 + $0x130] ss:$0 sm:$0xff] }
0x1726   : > { %5454 = vmatprep.mubr.msk.f32.mxu0 %vm5707_vm0, %v5706_v1 }
0x177c   : > { %v4059_v11 = vpop.xlane.xlu1 %4058 }
0x177d   : > { %5633 = vrcp.f32 %v4059_v11  ;;  %v4056_v60 = vpop.xlane.xlu0 %4055 }
0x177e   : > { %5635 = vrcp.f32 %v4056_v60 }
0x1780   : > { %v4224_v10 = vpop.permute.xlu1 %4223 }
0x1781   : > { %v4062_v12 = vpop.xlane.xlu0 %4061  ;;  %5453 = vmatpush3.msra.mxu0 %v4224_v10 }
0x1782   : > { %5637 = vrcp.f32 %v4062_v12  ;;  %5462 = vmatprep.subr.mxu0 %v5706_v1 }
0x1784   : > { %v4300_v17 = vpop.permute.xlu1 %4299 }
0x1785   : > { %v4148_v38 = vpop.permute.xlu0 %4147 }
0x1786   : > { %5448 = vmatpush3.msra.mxu1 %v4148_v38  ;;  %v4991_v38 = vld [vmem:[%s6747_s12 + $0x6] ss:$0 sm:$0xff] }
0x1787   : > { %5457 = vmatprep.subr.mxu1 %v5706_v1 }
0x1788   : > { %v4395_v18 = vpop.permute.xlu1 %4394 }
0x1789   : > { %v4397_v19 = vpop.permute.xlu0 %4396 }
0x178a   : > { %v5634_v37 = vpop.eup %5633 }
0x178b   : > { %v5636_v14 = vpop.eup %5635  ;;  %v4069_v15 = vmul.f32 %v5634_v37, %v5626_v42  ;;  %v4988_v42 = vld [vmem:[%s6747_s12 + $0x1] ss:$0 sm:$0xff] }
0x178c   : > { %v4068_v6 = vmul.f32 %v5636_v14, %v5628_v52  ;;  %v4393_v2 = vpop.permute.xlu1 %4392 }
0x178d   : > { %5455 = vmatmul.mubr.msk.f32.vlgmr.msra.gmra.mxu0 %vm566_vm2, %v4069_v15 }
0x178e   : > { %5450 = vmatmul.mubr.msk.f32.vlgmr.msra.gmra.mxu1 %vm566_vm2, %v4068_v6  ;;  %5470 = vmatprep.mubr.msk.f32.mxu0 %vm5707_vm0, %v5706_v1 }
0x178f   : > { %v5638_v13 = vpop.eup %5637  ;;  %5458 = vmatpush3.msra.mxu1 %v4300_v17  ;;  %5459 = vmatprep.mubr.msk.f32.mxu1 %vm5707_vm0, %v5706_v1 }
0x1790   : > { %v4070_v16 = vmul.f32 %v5638_v13, %v5630_v23  ;;  %5473 = vmatprep.subr.mxu1 %v5706_v1  ;;  %5463 = vmatpush3.msra.mxu0 %v4397_v19 }
0x1791   : > { %5464 = vmatprep.subr.mxu0 %v5706_v1 }
0x1792   : > { %5460 = vmatmul.mubr.msk.f32.vlgmr.msra.gmra.mxu1 %vm566_vm2, %v4070_v16  ;;  %5465 = vmatpush3.msra.mxu0 %v4395_v18 }
0x1793   : > { %5481 = vmatprep.mubr.msk.f32.mxu1 %vm5707_vm0, %v5706_v1  ;;  %5466 = vmatprep.subr.mxu0 %v5706_v1 }
0x1794   : > { %5467 = vmatpush3.msra.mxu0 %v4393_v2  ;;  %5474 = vmatpush3.msra.mxu1 %v4507_v46 }
0x1795   : > { %5468 = vmatprep.subr.mxu0 %v5706_v1  ;;  %5475 = vmatprep.subr.mxu1 %v5706_v1 }
0x1796   : > { %5476 = vmatpush3.msra.mxu1 %v4506_v47 }
0x1797   : > { %5477 = vmatprep.subr.mxu1 %v5706_v1 }
0x17e5   : > { %v4143_v20 = vpop.f32.mrf.mxu0 }
0x17e7   : > { %v5446_v21 = vpop.f32.mrf.mxu0 }
0x17e8   : > { %v4697_v21 = vld [vmem:[%s6748_s13 + $0x10] sm:$0xff] }
0x184d   : > { %v4295_v24 = vpop.f32.mrf.mxu0 }
0x184e   : > { %v4219_v50 = vpop.f32.mrf.mxu1 }
0x184f   : > { %4376 = vrot.lane.b32.xlu0 %v4219_v50, %s6794_s20  ;;  %v5456_v25 = vpop.f32.mrf.mxu0  ;;  %v4695_v50 = vld [vmem:[%s6748_s13] sm:$0xff]  ;;  %s5644_s20 = scalar_lea.vmem %s4793_s24, 128 }
0x1850   : > { %v5451_v0 = vpop.f32.mrf.mxu1  ;;  %p5645_p11 = scmp.ne.s32.totalorder %s4793_s24, %s5644_s20 }
0x1852   : > { %v4371_v49 = vpop.f32.mrf.mxu1  ;;  %p5646_p12 = pnand %p5645_p11, %p5833_p5 }
0x1853   : > { %4380 = vrot.lane.b32.xlu0 %v4295_v24, %s6795_s15  ;;  %4384 = vrot.lane.b32.xlu1 %v4371_v49, %s6796_s22  ;;  %v4696_v24 = vld [vmem:[%s6748_s13 + $0x8] sm:$0xff]  ;;  %s5719_s15 = smov [#allocation2]  }
0x1854   : > { %v5461_v3 = vpop.f32.mrf.mxu1  ;;  %p5647_p13 = pneg %p5646_p12  ;;  %s5648_s17 = sshll.u32 %s5719_s15, 4  ;;  %s5649_s17 = int_to_ptr.vmem [resolvable:$false] %s5648_s17 }
0x1855   : > { %s5650_s22 = scalar_lea.vmem %s5649_s17, 256  ;;  %p5651_p0 = scmp.lt.s32.totalorder %s4793_s24, %s5649_s17 }
0x1856   : > { %p5652_p1 = scmp.lt.s32.totalorder %s5650_s22, %s5644_s20 }
0x1857   : > { %4390 = vrot.lane.b32.xlu0 %v6466_v40, %s6793_s18  ;;  %4402 = vrot.lane.b32.xlu1 %v6481_v48, %s6793_s18  ;;  %s4779_s18 = scalar_lea.sflag [#allocation3], %s517_s19 }
0x1858   : > { %p5653_p2 = por %p5652_p1, %p5651_p0 }
0x185a   : > { %p5654_p3 = pnand %p5653_p2, %p5647_p13 }
0x18c1   : > { %v4377_v27 = vpop.permute.xlu0 %4376 }
0x18c2   : > { %v4387_v29 = vsel %vm566_vm2, %v4143_v20, %v4377_v27  ;;  %v4698_v20 = vld [vmem:[%s6748_s13 + $0x18] sm:$0xff]  ;;  %v4993_v27 = vld [vmem:[%s6747_s12 + $0x2] ss:$0 sm:$0xff] }
0x18c5   : > { %v4381_v28 = vpop.permute.xlu0 %4380  ;;  %v4385_v31 = vpop.permute.xlu1 %4384 }
0x18c6   : > { %v4388_v30 = vsel %vm1338_vm4, %v4387_v29, %v4381_v28  ;;  %v4994_v29 = vld [vmem:[%s6747_s12 + $0x5] ss:$0 sm:$0xff] }
0x18c7   : > { %v4389_v33 = vsel %vm1340_vm5, %v4388_v30, %v4385_v31 }
0x18c9   : > { %v4391_v32 = vpop.permute.xlu0 %4390  ;;  %v4403_v40 = vpop.permute.xlu1 %4402 }
0x18ca   : > { %5469 = vmatpush3.msra.mxu0 %v4391_v32 }
0x18cb   : > { %5471 = vmatmul.mubr.msk.f32.vlgmr.msra.gmra.mxu0 %vm578_vm1, %v4389_v33  ;;  %5484 = vmatprep.subr.mxu0 %v5706_v1 }
0x18cc   : > { %5500 = vmatprep.mubr.msk.f32.mxu0 %vm5707_vm0, %v5706_v1  ;;  %5485 = vmatpush3.msra.mxu0 %v4590_v51 }
0x18cd   : > { %5486 = vmatprep.subr.mxu0 %v5706_v1 }
0x18ce   : > { %5487 = vmatpush3.msra.mxu0 %v4589_v54 }
0x18cf   : > { %5488 = vmatprep.subr.mxu0 %v5706_v1 }
0x18d0   : > { %5489 = vmatpush3.msra.mxu0 %v4588_v55 }
0x18d1   : > { %5490 = vmatprep.subr.mxu0 %v5706_v1 }
0x18d2   : > { %5491 = vmatpush3.msra.mxu0 %v4587_v57 }
0x18d3   : > { %5492 = vmatprep.subr.mxu0 %v5706_v1 }
0x18d4   : > { %5493 = vmatpush3.msra.mxu0 %v4586_v56 }
0x18d5   : > { %5494 = vmatprep.subr.mxu0 %v5706_v1 }
0x18d6   : > { %5495 = vmatpush3.msra.mxu0 %v4585_v62 }
0x18d7   : > { %5496 = vmatprep.subr.mxu0 %v5706_v1 }
0x18d8   : > { %5497 = vmatpush3.msra.mxu0 %v4584_v63 }
0x18d9   : > { %5498 = vmatprep.subr.mxu0 %v5706_v1 }
0x18da   : > { %5499 = vmatpush3.msra.mxu0 %v4583_v5 }
0x198b   : > { %v4474_v48 = vpop.f32.mrf.mxu0 }
0x198c   : > { %v4475_v34 = vadd.f32 %v4474_v48, %v4403_v40 }
0x198d   : > { %v5472_v35 = vpop.f32.mrf.mxu0 }
0x198e   : > { %v4478_v36 = vadd.f32 %v4475_v34, %v6502_v53  ;;  %v4505_v53 = vld [vmem:[%s6746_s11 + $0x28] sm:$0xff] }
0x198f   : > { %5478 = vmatpush3.msra.mxu1 %v4505_v53 }
0x1990   : > { %v4481_v8 = vsel %vm578_vm1, %v4478_v36, 0.0  ;;  %5479 = vmatprep.subr.mxu1 %v5706_v1 }
0x1991   : > { %4482 = vadd.xlane.f32.xlu0 %v4481_v8  ;;  %5480 = vmatpush3.msra.mxu1 %v4504_v9 }
0x1992   : > { %5503 = vmatprep.subr.mxu1 %v5706_v1 }
0x1a1a   : > { %v4483_v39 = vpop.xlane.xlu0 %4482 }
0x1a1b   : > { %v4484_v43 = vmul.f32 0.03125, %v4483_v39 }
0x1a1d   : > { %v4485_v44 = vsub.f32 %v4478_v36, %v4484_v43 }
0x1a1f   : > { %v4486_v45 = vmul.f32 %v4485_v44, %v4485_v44 }
0x1a21   : > { %v4487_v4 = vsel %vm578_vm1, %v4486_v45, 0.0 }
0x1a22   : > { %4488 = vadd.xlane.f32.xlu1 %v4487_v4 }
0x1aab   : > { %v4489_v26 = vpop.xlane.xlu1 %4488 }
0x1aac   : > { %v4490_v58 = vmul.f32 0.03125, %v4489_v26 }
0x1aae   : > { %v4491_v41 = vadd.f32 1e-05, %v4490_v58 }
0x1ab0   : > { %5639 = vrsqrt.f32 %v4491_v41 }
0x1abd   : > { %v5640_v59 = vpop.eup %5639 }
0x1abe   : > { %v4493_v52 = vmul.f32 %v5640_v59, %v4485_v44 }
0x1ac0   : > { %v4498_v22 = vmul.f32 %v4988_v42, %v4493_v52 }
0x1ac2   : > { %v4503_v23 = vadd.f32 %v4989_v61, %v4498_v22 }
0x1ac4   : > { %5482 = vmatmul.mubr.msk.f32.vlgmr.msra.gmra.mxu1 %vm578_vm1, %v4503_v23 }
0x1ac5   : > { %5511 = vmatprep.mubr.msk.f32.mxu1 %vm5707_vm0, %v5706_v1  ;;  %5504 = vmatpush3.msra.mxu1 %v4698_v20 }
0x1ac6   : > { %5505 = vmatprep.subr.mxu1 %v5706_v1 }
0x1ac7   : > { %5506 = vmatpush3.msra.mxu1 %v4697_v21 }
0x1ac8   : > { %5507 = vmatprep.subr.mxu1 %v5706_v1 }
0x1ac9   : > { %5508 = vmatpush3.msra.mxu1 %v4696_v24 }
0x1aca   : > { %5509 = vmatprep.subr.mxu1 %v5706_v1  ;;  %v4995_v1 = vld [vmem:[%s6748_s13 + $0x20] ss:$0 sm:$0xff] }
0x1acb   : > { %5510 = vmatpush3.msra.mxu1 %v4695_v50 }
0x1b84   : > { %v4578_v11 = vpop.f32.mrf.mxu1 }
0x1b85   : > { %v4579_v60 = vadd.f32 %v4578_v11, %v4508_v7 }
0x1b86   : > { %v5483_v10 = vpop.f32.mrf.mxu1 }
0x1b87   : > { %v4582_v12 = vmax.f32 %v4579_v60, 0.0 }
0x1b89   : > { %5501 = vmatmul.mubr.msk.f32.vlgmr.msra.gmra.mxu0 %vm2559_vm7, %v4582_v12 }
0x1c49   : > { %v4665_v37 = vpop.f32.mrf.mxu0 }
0x1c4a   : > { %v4666_v14 = vadd.f32 %v4991_v38, %v4665_v37 }
0x1c4b   : > { %v5502_v15 = vpop.f32.mrf.mxu0 }
0x1c4c   : > { %v4669_v6 = vadd.f32 %v4666_v14, %v4503_v23 }
0x1c4e   : > { %v4672_v17 = vsel %vm578_vm1, %v4669_v6, 0.0 }
0x1c4f   : > { %4673 = vadd.xlane.f32.xlu0 %v4672_v17 }
0x1cd8   : > { %v4674_v13 = vpop.xlane.xlu0 %4673 }
0x1cd9   : > { %v4675_v16 = vmul.f32 0.03125, %v4674_v13 }
0x1cdb   : > { %v4676_v18 = vsub.f32 %v4669_v6, %v4675_v16 }
0x1cdd   : > { %v4677_v19 = vmul.f32 %v4676_v18, %v4676_v18 }
0x1cdf   : > { %v4678_v2 = vsel %vm578_vm1, %v4677_v19, 0.0 }
0x1ce0   : > { %4679 = vadd.xlane.f32.xlu0 %v4678_v2 }
0x1d69   : > { %v4680_v25 = vpop.xlane.xlu0 %4679 }
0x1d6a   : > { %v4681_v0 = vmul.f32 0.03125, %v4680_v25 }
0x1d6c   : > { %v4682_v49 = vadd.f32 1e-05, %v4681_v0 }
0x1d6e   : > { %5641 = vrsqrt.f32 %v4682_v49 }
0x1d7b   : > { %v5642_v3 = vpop.eup %5641 }
0x1d7c   : > { %v4684_v28 = vmul.f32 %v5642_v3, %v4676_v18 }
0x1d7e   : > { %v4689_v30 = vmul.f32 %v4993_v27, %v4684_v28 }
0x1d80   : > { %v4694_v31 = vadd.f32 %v4994_v29, %v4689_v30 }
0x1d82   : > { %5512 = vmatmul.mubr.msk.f32.vlgmr.msra.gmra.mxu1 %vm578_vm1, %v4694_v31 }
0x1e42   : > { %v4773_v32 = vpop.f32.mrf.mxu1 }
0x1e43   : > { %v4774_v33 = vadd.f32 %v4995_v1, %v4773_v32 }
0x1e44   : > { %v5513_v40 = vpop.f32.mrf.mxu1 }
0x1e45   : > { %4777 = vst [vmem:[%s519_s25] sm:$0xff] %v4774_v33 }
0x1e46   : > { %5657 = shalt.err (!%p5654_p3)
}
0x1e47   : > { %s5658_s0 = scalar_lea.hbm %s6700_s27, 128  ;;  %s5662_s19 = scalar_lea.hbm %s6749_s14, 256 }
0x1e48   : > { %p5659_p4 = scmp.ne.s32.totalorder %s6700_s27, %s5658_s0  ;;  %p5663_p9 = scmp.lt.s32.totalorder %s6700_s27, %s6749_s14 }
0x1e49   : > { %p5664_p10 = scmp.lt.s32.totalorder %s5662_s19, %s5658_s0 }
0x1e4a   : > { %p5660_p7 = pnand %p5659_p4, %p5833_p5 }
0x1e4b   : > { %p5665_p11 = por %p5664_p10, %p5663_p9 }
0x1e4c   : > { %p5661_p8 = pneg %p5660_p7 }
0x1e4e   : > { %p5666_p12 = pnand %p5665_p11, %p5661_p8 }
0x1e50   : > { %5669 = shalt.err (!%p5666_p12)
}
0x1e51   : > { %5514 = dma.vmem_to_hbm [thread:$0]  (%p5833_p5), %s4793_s24, 128, %s6700_s27, %s4779_s18  }
0x1e52 PF: > { %p5520_p13 = scmp.ge.s32.totalorder %s5704_s16, 2  ;;  %s4804_s5 = sand.u32 1, %s5692_s29  }
0x1e53   : > { %s4805_s25 = scalar_lea.sflag [#allocation3], %s4804_s5 }
0x1e54   : > { %p5517_p0 = pnand %p5520_p13, %p5837_p6 }
0x1e56   : > { %p5518_p1 = pneg %p5517_p0 }
0x1e58   : > { %5687 = dma.done.wait (%p5518_p1), %s4805_s25, 128  }
0x1e59   : > { %5689 = vsyncadd (%p5518_p1), %s4805_s25, 4294967168  ;;  %s6800_s16 = sld [smem:[#allocation6_spill]]  ;;  %s6803_s29 = smov %s5696_s30 }
0x1e5a   : > { %s6801_s26 = sld [smem:[#allocation5_spill]] }
0x1e5b   : > { %s6802_s15 = sld [smem:[#allocation7_spill]] }
0x1e5f   : > { %p24_p2 = scmp.ge.s32.totalorder %s6800_s16, 4  }
0x1e60   : > { %s6804_s30 = smov %s6801_s26 }
0x1e61   :  { %26 = sbr.rel (!%p24_p2) target bundleno = 10 (0xa), region = 126 }
0x1e66   :  { %4810 = vsyncpa [#allocation3], 1 }
0x1e67   :  { %4812 = vsyncpa [#allocation3 + $0x1], 1 }

</bundles_post_ra>
